<compile_context>
chip_gen: v7x
topology: tpu7x:2x2x1
jax: 0.10.0
libtpu: 0.0.40
codegen_flags: <defaults>
</compile_context>

<pallas_src>
import math
import functools

import jax
import jax.numpy as jnp
from jax import lax
from jax.experimental import pallas as pl
from jax.experimental.pallas import tpu as pltpu

# ---------------- configuration (small, consistent with DocREModel.__init__) ----
BATCH = 2
SEQ = 16            # number of sub-word tokens per document
HIDDEN = 32         # config.hidden_size
EMB = 32            # emb_size (== hidden_size, mirroring the original 768/768 setup)
GCN_DIM = 16        # config.gcn_dim
GCN_LAYERS = 2      # config.gcn_layers
BANK = EMB + GCN_DIM * (GCN_LAYERS + 1)   # bank_size = 80
FINAL = BANK * 5                          # final_fea_dim = 400
NUM_CLASS = 5       # config.num_labels == config.num_class
NUM_NODES = 10      # graph nodes per document (mention / sentence / entity nodes)
NUM_ENT = 4         # entities per document (last NUM_ENT graph nodes)
PATH_LEN = 3        # one fixed-length path per (h, t) pair
NUM_PAIRS = NUM_ENT * (NUM_ENT - 1)       # 12 ordered (h, t) pairs per document

# ---- TPU-friendly padded sizes --------------------------------------------------
NODES_PAD = 16                 # 10 -> 16 (sublane multiple of 8)
FEAT_PAD = 128                 # EMB / HIDDEN / GCN_DIM feature blocks -> 128 lanes
BANK_PAD = 128                 # packed bank (80) -> 128 lanes
GATE_PAD = 128                 # one LSTM gate block -> 128 lanes
PAIRS_PAD = 16                 # 12 (h,t) pairs -> 16 rows
FEAT5 = 5 * BANK_PAD           # relation-head W1 rows (5 segments, 128-stride)
HID_PAD = 512                  # FINAL 400 -> 512 (multiple of 256 for wide MXUs)
OUT_PAD = 128                  # NUM_CLASS 5 -> 128 lane-dense output slab


# ------------------------------ the fused per-document kernel -------------------
def _fused_doc_kernel(*refs):
    """Whole forward() graph stage + gathers + LSTM + relation head for one doc.

    x0 = sub2word @ encoder_output
    x  = start_gcn(adj, x0)                        (A_hat X W + b, no activation)
    for each layer: x1 = relu(A_hat x W + b); x2 = relu(softmax(x x1^T/sqrt(d)) x1)
                    x = x1 + x2
    bank = [x0 | x_start | x_L1 | x_L2] packed into 80 of 128 lanes
    head/tail/path features gathered with one-hot selector matmuls,
    2-layer LSTM (unrolled, PATH_LEN steps) -> max over time,
    logits = out_linear(relu(predict([h|t||h-t||h*t|path]))).
    """
    f32 = jnp.float32
    bf = jnp.bfloat16

    s2w_ref, enc_ref, adj_ref, hsel_ref, tsel_ref, psel_ref = refs[:6]
    sw_ref, sb_ref = refs[6], refs[7]
    gcn_refs = refs[8:8 + 2 * GCN_LAYERS]
    base = 8 + 2 * GCN_LAYERS
    lstm_refs = refs[base:base + 6]
    w1_ref, b1_ref, w2_ref, b2_ref = refs[base + 6:base + 10]
    out_ref = refs[base + 10]

    s2w = s2w_ref[0]                       # (NODES_PAD, SEQ)        bf16
    enc = enc_ref[0]                       # (SEQ, FEAT_PAD)         bf16
    adj = adj_ref[0]                       # (NODES_PAD, NODES_PAD)  bf16

    # ---- node aggregation: x0 = sub2word @ encoder_output -----------------------
    x0 = jnp.dot(s2w, enc, preferred_element_type=f32)        # (16, 128), lanes 0:EMB real

    # ---- start GCN (TODO(synk): GCNLayer source is external; A_hat X W + b,
    # no activation for start_gcn assumed) ----------------------------------------
    xw = jnp.dot(x0.astype(bf), sw_ref[...], preferred_element_type=f32)
    x = jnp.dot(adj, xw.astype(bf), preferred_element_type=f32) + sb_ref[...]

    # shifted-identity matmul packs a 128-lane block into bank lanes [off, off+w)
    def shift_eye(width, offset):
        r = lax.broadcasted_iota(jnp.int32, (FEAT_PAD, BANK_PAD), 0)
        c = lax.broadcasted_iota(jnp.int32, (FEAT_PAD, BANK_PAD), 1)
        return ((c == r + offset) & (r < width)).astype(bf)

    # x0's real lanes already sit at 0:EMB and its padded lanes are exactly zero.
    bank = x0 + jnp.dot(x.astype(bf), shift_eye(GCN_DIM, EMB),
                        preferred_element_type=f32)

    col_ids = lax.broadcasted_iota(jnp.int32, (NODES_PAD, NODES_PAD), 1)
    key_mask = col_ids < NUM_NODES                               # mask padded key nodes
    scale = 1.0 / math.sqrt(GCN_DIM)

    for l in range(GCN_LAYERS):
        w = gcn_refs[2 * l][...]
        b = gcn_refs[2 * l + 1][...]
        x1w = jnp.dot(x.astype(bf), w, preferred_element_type=f32)
        x1 = jnp.maximum(jnp.dot(adj, x1w.astype(bf), preferred_element_type=f32) + b, 0.0)

        # TODO(synk): AttnLayer source is external; scaled dot-product attention
        # followed by ReLU (its `activation`) assumed.
        s = lax.dot_general(x.astype(bf), x1.astype(bf), (((1,), (1,)), ((), ())),
                            preferred_element_type=f32) * scale
        s = jnp.where(key_mask, s, -1e30)
        s = s - jnp.max(s, axis=-1, keepdims=True)
        p = jnp.exp(s)
        p = p * pl.reciprocal(jnp.sum(p, axis=-1, keepdims=True), approx=True)
        x2 = jnp.maximum(jnp.dot(p.astype(bf), x1.astype(bf),
                                 preferred_element_type=f32), 0.0)

        x = x1 + x2
        bank = bank + jnp.dot(x.astype(bf),
                              shift_eye(GCN_DIM, EMB + (l + 1) * GCN_DIM),
                              preferred_element_type=f32)

    bank_b = bank.astype(bf)                                     # (NODES_PAD, BANK_PAD)

    # ---- gathers via one-hot selector matmuls (hts / paths) ---------------------
    hfe = jnp.dot(hsel_ref[0], bank_b, preferred_element_type=f32)   # (PAIRS_PAD, 128)
    tfe = jnp.dot(tsel_ref[0], bank_b, preferred_element_type=f32)
    xs = [jnp.dot(psel_ref[0, t], bank_b, preferred_element_type=f32)
          for t in range(PATH_LEN)]

    # ---- 2-layer LSTM over the fixed-length path, fully unrolled ----------------
    def sigmoid(z):
        return 1.0 / (1.0 + jnp.exp(-z))

    for layer in range(2):
        wih = lstm_refs[3 * layer]
        whh = lstm_refs[3 * layer + 1]
        bl = lstm_refs[3 * layer + 2][...]
        h = jnp.zeros_like(xs[0])
        c = jnp.zeros_like(xs[0])
        outs = []
        for t in range(PATH_LEN):
            gates = (jnp.dot(xs[t].astype(bf), wih[...], preferred_element_type=f32)
                     + jnp.dot(h.astype(bf), whh[...], preferred_element_type=f32)
                     + bl)
            gi = sigmoid(gates[:, 0:GATE_PAD])
            gf = sigmoid(gates[:, GATE_PAD:2 * GATE_PAD])
            gg = jnp.tanh(gates[:, 2 * GATE_PAD:3 * GATE_PAD])
            go = sigmoid(gates[:, 3 * GATE_PAD:4 * GATE_PAD])
            c = gf * c + gi * gg
            h = go * jnp.tanh(c)
            outs.append(h)
        xs = outs
    pmax = functools.reduce(jnp.maximum, xs)                     # cur_hs2.max(1)[0]

    # ---- relation head: predict (Linear+ReLU, dropout=identity) + out_linear ----
    segs = [hfe, tfe, jnp.abs(hfe - tfe), hfe * tfe, pmax]
    hid = b1_ref[...]
    for sidx, seg in enumerate(segs):
        hid = hid + jnp.dot(seg.astype(bf),
                            w1_ref[sidx * BANK_PAD:(sidx + 1) * BANK_PAD, :],
                            preferred_element_type=f32)
    hid = jnp.maximum(hid, 0.0)
    out = jnp.dot(hid.astype(bf), w2_ref[...], preferred_element_type=f32) + b2_ref[...]
    out_ref[0, :, :] = out


# ------------------------------ parameters ---------------------------------------
def _linear_init(key, fan_in, fan_out):
    kw, kb = jax.random.split(key)
    bound = 1.0 / math.sqrt(fan_in)
    w = jax.random.uniform(kw, (fan_in, fan_out), jnp.float32, -bound, bound)
    b = jax.random.uniform(kb, (1, fan_out), jnp.float32, -bound, bound)
    return w, b


def _pad_to(x, shape):
    return jnp.pad(x, [(0, s - d) for d, s in zip(x.shape, shape)])


def init_params(key):
    keys = jax.random.split(key, 12)
    p = {}
    p["start_gcn_w"], p["start_gcn_b"] = _linear_init(keys[0], EMB, GCN_DIM)
    for l in range(GCN_LAYERS):
        p[f"gcn{l}_w"], p[f"gcn{l}_b"] = _linear_init(keys[1 + l], GCN_DIM, GCN_DIM)
    # nn.LSTM(bank_size, bank_size, 2, bidirectional=False, batch_first=True)
    # NOTE: stored as (BANK, 4*BANK) for x @ W; PyTorch weight_ih_l{k} is (4H, H),
    # so loading real checkpoints would require a transpose.
    for l in range(2):
        kk = jax.random.split(keys[4 + l], 4)
        bound = 1.0 / math.sqrt(BANK)
        p[f"lstm{l}_wih"] = jax.random.uniform(kk[0], (BANK, 4 * BANK), jnp.float32, -bound, bound)
        p[f"lstm{l}_whh"] = jax.random.uniform(kk[1], (BANK, 4 * BANK), jnp.float32, -bound, bound)
        p[f"lstm{l}_bih"] = jax.random.uniform(kk[2], (1, 4 * BANK), jnp.float32, -bound, bound)
        p[f"lstm{l}_bhh"] = jax.random.uniform(kk[3], (1, 4 * BANK), jnp.float32, -bound, bound)
    p["predict_w"], p["predict_b"] = _linear_init(keys[8], FINAL, FINAL)   # predict[0]
    p["out_w"], p["out_b"] = _linear_init(keys[9], FINAL, NUM_CLASS)       # out_linear

    # ---- one-time padded / packed copies for the fused Pallas kernel ------------
    bf = jnp.bfloat16

    def bias_rows(b1row, rows):
        return jnp.tile(b1row, (rows, 1))          # full-sublane bias tiles (unmasked vld)

    p["start_gcn_w_pad"] = _pad_to(p["start_gcn_w"], (FEAT_PAD, FEAT_PAD)).astype(bf)
    p["start_gcn_b_pad"] = bias_rows(_pad_to(p["start_gcn_b"], (1, FEAT_PAD)), NODES_PAD)
    for l in range(GCN_LAYERS):
        p[f"gcn{l}_w_pad"] = _pad_to(p[f"gcn{l}_w"], (FEAT_PAD, FEAT_PAD)).astype(bf)
        p[f"gcn{l}_b_pad"] = bias_rows(_pad_to(p[f"gcn{l}_b"], (1, FEAT_PAD)), NODES_PAD)

    # LSTM weights re-laid into 128-lane-aligned gate blocks (i, f, g, o).
    def pack_lstm_w(w):
        wp = jnp.zeros((BANK_PAD, 4 * GATE_PAD), jnp.float32)
        for g in range(4):
            wp = wp.at[:BANK, g * GATE_PAD:g * GATE_PAD + BANK].set(
                w[:, g * BANK:(g + 1) * BANK])
        return wp.astype(bf)

    def pack_lstm_b(bih, bhh):
        b = (bih + bhh)[0]
        bp = jnp.zeros((4 * GATE_PAD,), jnp.float32)
        for g in range(4):
            bp = bp.at[g * GATE_PAD:g * GATE_PAD + BANK].set(b[g * BANK:(g + 1) * BANK])
        return jnp.tile(bp[None, :], (PAIRS_PAD, 1))

    for l in range(2):
        p[f"lstm{l}_wih_pad"] = pack_lstm_w(p[f"lstm{l}_wih"])
        p[f"lstm{l}_whh_pad"] = pack_lstm_w(p[f"lstm{l}_whh"])
        p[f"lstm{l}_b_pad"] = pack_lstm_b(p[f"lstm{l}_bih"], p[f"lstm{l}_bhh"])

    # relation head: W1 rows re-laid into five 128-row segments matching the
    # 128-lane padded bank layout of [h | t | |h-t| | h*t | path].
    w1p = jnp.zeros((FEAT5, HID_PAD), jnp.float32)
    for s in range(5):
        w1p = w1p.at[s * BANK_PAD:s * BANK_PAD + BANK, :FINAL].set(
            p["predict_w"][s * BANK:(s + 1) * BANK, :])
    p["predict_w_pad"] = w1p.astype(bf)
    p["predict_b_pad"] = bias_rows(_pad_to(p["predict_b"], (1, HID_PAD)), PAIRS_PAD)
    p["out_w_pad"] = _pad_to(p["out_w"], (HID_PAD, OUT_PAD)).astype(bf)
    p["out_b_pad"] = bias_rows(_pad_to(p["out_b"], (1, OUT_PAD)), PAIRS_PAD)
    return p


# ------------------------------ JAX glue ------------------------------------------
def at_get_label(logits, num_labels=-1):
    # TODO(synk): ATLoss is defined outside this module; standard ATLOP adaptive-threshold
    # labelling implemented here (num_labels == -1, i.e. no top-k restriction).
    th = logits[:, :1]
    mask = logits > th
    out = mask.astype(jnp.float32)
    out = out.at[:, 0].set((jnp.sum(out, axis=1) == 0.0).astype(jnp.float32))
    return out


def docre_forward(params, sequence_output, sub2words, graphs, hts, paths):
    bf = jnp.bfloat16
    n_pairs = hts.shape[1]

    # ---- per-document operands (pad only what is needed, cast MXU operands bf16) -
    s2w_pad = jnp.pad(sub2words, ((0, 0), (0, NODES_PAD - NUM_NODES), (0, 0))).astype(bf)
    enc_pad = jnp.pad(sequence_output, ((0, 0), (0, 0), (0, FEAT_PAD - HIDDEN))).astype(bf)
    # TODO(synk): filter_g is external; the (self-loop, row-normalised) graph is used as-is.
    adj_pad = jnp.pad(graphs, ((0, 0), (0, NODES_PAD - NUM_NODES),
                               (0, NODES_PAD - NUM_NODES))).astype(bf)

    # one-hot selectors for head / tail entities and path nodes
    head_nodes = NUM_NODES - NUM_ENT + hts[..., 0]                # entity idx -> node idx
    tail_nodes = NUM_NODES - NUM_ENT + hts[..., 1]
    hsel = jax.nn.one_hot(head_nodes, NODES_PAD, dtype=bf)        # (B, P, 16)
    tsel = jax.nn.one_hot(tail_nodes, NODES_PAD, dtype=bf)
    psel = jax.nn.one_hot(paths, NODES_PAD, dtype=bf)             # (B, P, L, 16)
    psel = jnp.transpose(psel, (0, 2, 1, 3))                      # (B, L, P, 16)
    pair_pad = PAIRS_PAD - n_pairs
    hsel = jnp.pad(hsel, ((0, 0), (0, pair_pad), (0, 0)))
    tsel = jnp.pad(tsel, ((0, 0), (0, pair_pad), (0, 0)))
    psel = jnp.pad(psel, ((0, 0), (0, 0), (0, pair_pad), (0, 0)))

    weight_args = [params["start_gcn_w_pad"], params["start_gcn_b_pad"]]
    for l in range(GCN_LAYERS):
        weight_args += [params[f"gcn{l}_w_pad"], params[f"gcn{l}_b_pad"]]
    for l in range(2):
        weight_args += [params[f"lstm{l}_wih_pad"], params[f"lstm{l}_whh_pad"],
                        params[f"lstm{l}_b_pad"]]
    weight_args += [params["predict_w_pad"], params["predict_b_pad"],
                    params["out_w_pad"], params["out_b_pad"]]

    in_specs = [
        pl.BlockSpec((1, NODES_PAD, SEQ), lambda i: (i, 0, 0)),
        pl.BlockSpec((1, SEQ, FEAT_PAD), lambda i: (i, 0, 0)),
        pl.BlockSpec((1, NODES_PAD, NODES_PAD), lambda i: (i, 0, 0)),
        pl.BlockSpec((1, PAIRS_PAD, NODES_PAD), lambda i: (i, 0, 0)),
        pl.BlockSpec((1, PAIRS_PAD, NODES_PAD), lambda i: (i, 0, 0)),
        pl.BlockSpec((1, PATH_LEN, PAIRS_PAD, NODES_PAD), lambda i: (i, 0, 0, 0)),
    ] + [pl.BlockSpec(w.shape, lambda i, nd=w.ndim: (0,) * nd) for w in weight_args]

    # One fused call; "parallel" batch axis shards documents across TensorCores on
    # v7x (no-op on v5e/v6e). At production dims (hidden 768, seq 512+) the per-doc
    # block would need re-deriving against v7x's 64 MiB VMEM (set vmem_limit_bytes).
    out = pl.pallas_call(
        _fused_doc_kernel,
        out_shape=jax.ShapeDtypeStruct((BATCH, PAIRS_PAD, OUT_PAD), jnp.float32),
        grid=(BATCH,),
        in_specs=in_specs,
        out_specs=pl.BlockSpec((1, PAIRS_PAD, OUT_PAD), lambda i: (i, 0, 0)),
        compiler_params=pltpu.CompilerParams(dimension_semantics=("parallel",)),
    )(s2w_pad, enc_pad, adj_pad, hsel, tsel, psel, *weight_args)

    logits = out[:, :n_pairs, :NUM_CLASS].reshape(BATCH * n_pairs, NUM_CLASS)
    preds = at_get_label(logits, num_labels=-1)
    return logits, preds


# ------------------------------ example run ---------------------------------------
if __name__ == "__main__":
    key = jax.random.PRNGKey(0)
    kp, kseq, ks2w, kadj, kpath = jax.random.split(key, 5)
    params = init_params(kp)

    # TODO(synk): the transformer encoder (self.model / process_long_input) is external;
    # its output sequence_output is supplied directly as an input here.
    sequence_output = jax.random.normal(kseq, (BATCH, SEQ, HIDDEN), jnp.float32)
    sub2words = jax.nn.softmax(
        jax.random.normal(ks2w, (BATCH, NUM_NODES, SEQ), jnp.float32), axis=-1)

    adj = (jax.random.uniform(kadj, (BATCH, NUM_NODES, NUM_NODES)) > 0.6).astype(jnp.float32)
    adj = jnp.maximum(adj, jnp.transpose(adj, (0, 2, 1)))
    adj = adj + jnp.eye(NUM_NODES, dtype=jnp.float32)[None]
    adj = adj / jnp.sum(adj, axis=-1, keepdims=True)

    pairs = jnp.asarray([(a, b) for a in range(NUM_ENT) for b in range(NUM_ENT) if a != b],
                        dtype=jnp.int32)                          # (12, 2) head/tail entity ids
    hts = jnp.stack([pairs for _ in range(BATCH)], axis=0)        # (B, 12, 2)
    # TODO(synk): variable-length path grouping + the nn.MultiheadAttention multi-path
    # branch are host-side dynamic control flow; exactly one fixed-length path per pair
    # is used here (the single-path branch of get_entity_path_info).
    paths = jax.random.randint(kpath, (BATCH, pairs.shape[0], PATH_LEN), 0, NUM_NODES)

    assert pairs.shape[0] <= PAIRS_PAD

    fwd = jax.jit(docre_forward)
    logits, preds = fwd(params, sequence_output, sub2words, adj, hts, paths)
    jax.block_until_ready((logits, preds))
    assert logits.shape == (BATCH * int(pairs.shape[0]), NUM_CLASS)
    assert preds.shape == logits.shape
    print("KERNEL_OK")
</pallas_src>

<mosaic_0001>
module attributes {stable_mosaic.version = 11 : i64} {
  func.func @_fused_doc_kernel(%arg0: i32, %arg1: memref<1x16x16xbf16, #tpu.memory_space<vmem>>, %arg2: memref<1x16x128xbf16, #tpu.memory_space<vmem>>, %arg3: memref<1x16x16xbf16, #tpu.memory_space<vmem>>, %arg4: memref<1x16x16xbf16, #tpu.memory_space<vmem>>, %arg5: memref<1x16x16xbf16, #tpu.memory_space<vmem>>, %arg6: memref<1x3x16x16xbf16, #tpu.memory_space<vmem>>, %arg7: memref<128x128xbf16, #tpu.memory_space<vmem>>, %arg8: memref<16x128xf32, #tpu.memory_space<vmem>>, %arg9: memref<128x128xbf16, #tpu.memory_space<vmem>>, %arg10: memref<16x128xf32, #tpu.memory_space<vmem>>, %arg11: memref<128x128xbf16, #tpu.memory_space<vmem>>, %arg12: memref<16x128xf32, #tpu.memory_space<vmem>>, %arg13: memref<128x512xbf16, #tpu.memory_space<vmem>>, %arg14: memref<128x512xbf16, #tpu.memory_space<vmem>>, %arg15: memref<16x512xf32, #tpu.memory_space<vmem>>, %arg16: memref<128x512xbf16, #tpu.memory_space<vmem>>, %arg17: memref<128x512xbf16, #tpu.memory_space<vmem>>, %arg18: memref<16x512xf32, #tpu.memory_space<vmem>>, %arg19: memref<640x512xbf16, #tpu.memory_space<vmem>>, %arg20: memref<16x512xf32, #tpu.memory_space<vmem>>, %arg21: memref<512x128xbf16, #tpu.memory_space<vmem>>, %arg22: memref<16x128xf32, #tpu.memory_space<vmem>>, %arg23: memref<1x16x128xf32, #tpu.memory_space<vmem>>) attributes {dimension_semantics = [#tpu.dimension_semantics<parallel>], iteration_bounds = array<i64: 2>, scalar_prefetch = 0 : i64, scratch_operands = 0 : i64, tpu.core_type = #tpu.core_type<tc>, window_params = [{transform_indices = @transform_0, window_bounds = array<i64: 1, 16, 16>}, {transform_indices = @transform_1, window_bounds = array<i64: 1, 16, 128>}, {transform_indices = @transform_2, window_bounds = array<i64: 1, 16, 16>}, {transform_indices = @transform_3, window_bounds = array<i64: 1, 16, 16>}, {transform_indices = @transform_4, window_bounds = array<i64: 1, 16, 16>}, {transform_indices = @transform_5, window_bounds = array<i64: 1, 3, 16, 16>}, {pipeline_mode = #tpu.pipeline_mode<synchronous>, transform_indices = @transform_6, window_bounds = array<i64: 128, 128>}, {pipeline_mode = #tpu.pipeline_mode<synchronous>, transform_indices = @transform_7, window_bounds = array<i64: 16, 128>}, {pipeline_mode = #tpu.pipeline_mode<synchronous>, transform_indices = @transform_8, window_bounds = array<i64: 128, 128>}, {pipeline_mode = #tpu.pipeline_mode<synchronous>, transform_indices = @transform_9, window_bounds = array<i64: 16, 128>}, {pipeline_mode = #tpu.pipeline_mode<synchronous>, transform_indices = @transform_10, window_bounds = array<i64: 128, 128>}, {pipeline_mode = #tpu.pipeline_mode<synchronous>, transform_indices = @transform_11, window_bounds = array<i64: 16, 128>}, {pipeline_mode = #tpu.pipeline_mode<synchronous>, transform_indices = @transform_12, window_bounds = array<i64: 128, 512>}, {pipeline_mode = #tpu.pipeline_mode<synchronous>, transform_indices = @transform_13, window_bounds = array<i64: 128, 512>}, {pipeline_mode = #tpu.pipeline_mode<synchronous>, transform_indices = @transform_14, window_bounds = array<i64: 16, 512>}, {pipeline_mode = #tpu.pipeline_mode<synchronous>, transform_indices = @transform_15, window_bounds = array<i64: 128, 512>}, {pipeline_mode = #tpu.pipeline_mode<synchronous>, transform_indices = @transform_16, window_bounds = array<i64: 128, 512>}, {pipeline_mode = #tpu.pipeline_mode<synchronous>, transform_indices = @transform_17, window_bounds = array<i64: 16, 512>}, {pipeline_mode = #tpu.pipeline_mode<synchronous>, transform_indices = @transform_18, window_bounds = array<i64: 640, 512>}, {pipeline_mode = #tpu.pipeline_mode<synchronous>, transform_indices = @transform_19, window_bounds = array<i64: 16, 512>}, {pipeline_mode = #tpu.pipeline_mode<synchronous>, transform_indices = @transform_20, window_bounds = array<i64: 512, 128>}, {pipeline_mode = #tpu.pipeline_mode<synchronous>, transform_indices = @transform_21, window_bounds = array<i64: 16, 128>}, {transform_indices = @transform_22, window_bounds = array<i64: 1, 16, 128>}]} {
    %c0 = arith.constant 0 : index
    %c0_0 = arith.constant 0 : index
    %c0_1 = arith.constant 0 : index
    %0 = vector.load %arg1[%c0, %c0_0, %c0_1] : memref<1x16x16xbf16, #tpu.memory_space<vmem>>, vector<1x16x16xbf16>
    %1 = vector.shape_cast %0 : vector<1x16x16xbf16> to vector<16x16xbf16>
    %c0_2 = arith.constant 0 : index
    %c0_3 = arith.constant 0 : index
    %c0_4 = arith.constant 0 : index
    %2 = vector.load %arg2[%c0_2, %c0_3, %c0_4] : memref<1x16x128xbf16, #tpu.memory_space<vmem>>, vector<1x16x128xbf16>
    %3 = vector.shape_cast %2 : vector<1x16x128xbf16> to vector<16x128xbf16>
    %c0_5 = arith.constant 0 : index
    %c0_6 = arith.constant 0 : index
    %c0_7 = arith.constant 0 : index
    %4 = vector.load %arg3[%c0_5, %c0_6, %c0_7] : memref<1x16x16xbf16, #tpu.memory_space<vmem>>, vector<1x16x16xbf16>
    %5 = vector.shape_cast %4 : vector<1x16x16xbf16> to vector<16x16xbf16>
    %cst = arith.constant dense<0.000000e+00> : vector<16x128xf32>
    %6 = tpu.matmul %1, %3, %cst {dimension_numbers = #tpu.dot_dimension_numbers<[1], [0], [0], [1], [0, 0, 1, 1], [], []>} : vector<16x16xbf16>, vector<16x128xbf16>, vector<16x128xf32> -> vector<16x128xf32>
    %7 = arith.truncf %6 : vector<16x128xf32> to vector<16x128xbf16>
    %c0_8 = arith.constant 0 : index
    %c0_9 = arith.constant 0 : index
    %8 = vector.load %arg7[%c0_8, %c0_9] : memref<128x128xbf16, #tpu.memory_space<vmem>>, vector<128x128xbf16>
    %cst_10 = arith.constant dense<0.000000e+00> : vector<16x128xf32>
    %9 = tpu.matmul %7, %8, %cst_10 {dimension_numbers = #tpu.dot_dimension_numbers<[1], [0], [0], [1], [0, 0, 1, 1], [], []>} : vector<16x128xbf16>, vector<128x128xbf16>, vector<16x128xf32> -> vector<16x128xf32>
    %10 = arith.truncf %9 : vector<16x128xf32> to vector<16x128xbf16>
    %cst_11 = arith.constant dense<0.000000e+00> : vector<16x128xf32>
    %11 = tpu.matmul %5, %10, %cst_11 {dimension_numbers = #tpu.dot_dimension_numbers<[1], [0], [0], [1], [0, 0, 1, 1], [], []>} : vector<16x16xbf16>, vector<16x128xbf16>, vector<16x128xf32> -> vector<16x128xf32>
    %c0_12 = arith.constant 0 : index
    %c0_13 = arith.constant 0 : index
    %12 = vector.load %arg8[%c0_12, %c0_13] : memref<16x128xf32, #tpu.memory_space<vmem>>, vector<16x128xf32>
    %13 = arith.addf %11, %12 : vector<16x128xf32>
    %14 = arith.truncf %13 : vector<16x128xf32> to vector<16x128xbf16>
    %15 = tpu.iota {dimensions = array<i32: 0>} : vector<128x128xi32>
    %16 = tpu.iota {dimensions = array<i32: 1>} : vector<128x128xi32>
    %c32_i32 = arith.constant 32 : i32
    %17 = vector.broadcast %c32_i32 : i32 to vector<128x128xi32>
    %18 = arith.addi %15, %17 : vector<128x128xi32>
    %19 = arith.cmpi eq, %16, %18 : vector<128x128xi32>
    %c16_i32 = arith.constant 16 : i32
    %20 = vector.broadcast %c16_i32 : i32 to vector<128x128xi32>
    %21 = arith.cmpi slt, %15, %20 : vector<128x128xi32>
    %22 = arith.andi %19, %21 : vector<128x128xi1>
    %23 = arith.extui %22 : vector<128x128xi1> to vector<128x128xi32>
    %24 = arith.sitofp %23 : vector<128x128xi32> to vector<128x128xf32>
    %25 = arith.truncf %24 : vector<128x128xf32> to vector<128x128xbf16>
    %cst_14 = arith.constant dense<0.000000e+00> : vector<16x128xf32>
    %26 = tpu.matmul %14, %25, %cst_14 {dimension_numbers = #tpu.dot_dimension_numbers<[1], [0], [0], [1], [0, 0, 1, 1], [], []>} : vector<16x128xbf16>, vector<128x128xbf16>, vector<16x128xf32> -> vector<16x128xf32>
    %27 = arith.addf %6, %26 : vector<16x128xf32>
    %28 = tpu.iota {dimensions = array<i32: 1>} : vector<16x16xi32>
    %c10_i32 = arith.constant 10 : i32
    %29 = vector.broadcast %c10_i32 : i32 to vector<16x16xi32>
    %30 = arith.cmpi slt, %28, %29 : vector<16x16xi32>
    %c0_15 = arith.constant 0 : index
    %c0_16 = arith.constant 0 : index
    %31 = vector.load %arg9[%c0_15, %c0_16] : memref<128x128xbf16, #tpu.memory_space<vmem>>, vector<128x128xbf16>
    %c0_17 = arith.constant 0 : index
    %c0_18 = arith.constant 0 : index
    %32 = vector.load %arg10[%c0_17, %c0_18] : memref<16x128xf32, #tpu.memory_space<vmem>>, vector<16x128xf32>
    %33 = arith.truncf %13 : vector<16x128xf32> to vector<16x128xbf16>
    %cst_19 = arith.constant dense<0.000000e+00> : vector<16x128xf32>
    %34 = tpu.matmul %33, %31, %cst_19 {dimension_numbers = #tpu.dot_dimension_numbers<[1], [0], [0], [1], [0, 0, 1, 1], [], []>} : vector<16x128xbf16>, vector<128x128xbf16>, vector<16x128xf32> -> vector<16x128xf32>
    %35 = arith.truncf %34 : vector<16x128xf32> to vector<16x128xbf16>
    %cst_20 = arith.constant dense<0.000000e+00> : vector<16x128xf32>
    %36 = tpu.matmul %5, %35, %cst_20 {dimension_numbers = #tpu.dot_dimension_numbers<[1], [0], [0], [1], [0, 0, 1, 1], [], []>} : vector<16x16xbf16>, vector<16x128xbf16>, vector<16x128xf32> -> vector<16x128xf32>
    %37 = arith.addf %36, %32 : vector<16x128xf32>
    %cst_21 = arith.constant 0.000000e+00 : f32
    %38 = vector.broadcast %cst_21 : f32 to vector<16x128xf32>
    %39 = arith.maximumf %37, %38 : vector<16x128xf32>
    %40 = arith.truncf %13 : vector<16x128xf32> to vector<16x128xbf16>
    %41 = arith.truncf %39 : vector<16x128xf32> to vector<16x128xbf16>
    %cst_22 = arith.constant dense<0.000000e+00> : vector<16x16xf32>
    %42 = tpu.matmul %40, %41, %cst_22 {dimension_numbers = #tpu.dot_dimension_numbers<[1], [1], [0], [0], [0, 0, 1, 0], [], []>} : vector<16x128xbf16>, vector<16x128xbf16>, vector<16x16xf32> -> vector<16x16xf32>
    %cst_23 = arith.constant 2.500000e-01 : f32
    %43 = vector.broadcast %cst_23 : f32 to vector<16x16xf32>
    %44 = arith.mulf %42, %43 : vector<16x16xf32>
    %cst_24 = arith.constant -1.000000e+30 : f32
    %45 = vector.broadcast %cst_24 : f32 to vector<16x16xf32>
    %46 = arith.select %30, %44, %45 : vector<16x16xi1>, vector<16x16xf32>
    %cst_25 = arith.constant dense<0xFF800000> : vector<16xf32>
    %47 = vector.multi_reduction <maximumf>, %46, %cst_25 [1] : vector<16x16xf32> to vector<16xf32>
    %48 = vector.shape_cast %47 : vector<16xf32> to vector<16x1xf32>
    %49 = vector.broadcast %48 : vector<16x1xf32> to vector<16x16xf32>
    %50 = arith.subf %46, %49 : vector<16x16xf32>
    %51 = math.exp %50 : vector<16x16xf32>
    %cst_26 = arith.constant dense<0.000000e+00> : vector<16xf32>
    %52 = vector.multi_reduction <add>, %51, %cst_26 [1] : vector<16x16xf32> to vector<16xf32>
    %53 = vector.shape_cast %52 : vector<16xf32> to vector<16x1xf32>
    %54 = tpu.reciprocal %53 {approx = true} : vector<16x1xf32> -> vector<16x1xf32>
    %55 = vector.broadcast %54 : vector<16x1xf32> to vector<16x16xf32>
    %56 = arith.mulf %51, %55 : vector<16x16xf32>
    %57 = arith.truncf %56 : vector<16x16xf32> to vector<16x16xbf16>
    %58 = arith.truncf %39 : vector<16x128xf32> to vector<16x128xbf16>
    %cst_27 = arith.constant dense<0.000000e+00> : vector<16x128xf32>
    %59 = tpu.matmul %57, %58, %cst_27 {dimension_numbers = #tpu.dot_dimension_numbers<[1], [0], [0], [1], [0, 0, 1, 1], [], []>} : vector<16x16xbf16>, vector<16x128xbf16>, vector<16x128xf32> -> vector<16x128xf32>
    %cst_28 = arith.constant 0.000000e+00 : f32
    %60 = vector.broadcast %cst_28 : f32 to vector<16x128xf32>
    %61 = arith.maximumf %59, %60 : vector<16x128xf32>
    %62 = arith.addf %39, %61 : vector<16x128xf32>
    %63 = arith.truncf %62 : vector<16x128xf32> to vector<16x128xbf16>
    %64 = tpu.iota {dimensions = array<i32: 0>} : vector<128x128xi32>
    %65 = tpu.iota {dimensions = array<i32: 1>} : vector<128x128xi32>
    %c48_i32 = arith.constant 48 : i32
    %66 = vector.broadcast %c48_i32 : i32 to vector<128x128xi32>
    %67 = arith.addi %64, %66 : vector<128x128xi32>
    %68 = arith.cmpi eq, %65, %67 : vector<128x128xi32>
    %c16_i32_29 = arith.constant 16 : i32
    %69 = vector.broadcast %c16_i32_29 : i32 to vector<128x128xi32>
    %70 = arith.cmpi slt, %64, %69 : vector<128x128xi32>
    %71 = arith.andi %68, %70 : vector<128x128xi1>
    %72 = arith.extui %71 : vector<128x128xi1> to vector<128x128xi32>
    %73 = arith.sitofp %72 : vector<128x128xi32> to vector<128x128xf32>
    %74 = arith.truncf %73 : vector<128x128xf32> to vector<128x128xbf16>
    %cst_30 = arith.constant dense<0.000000e+00> : vector<16x128xf32>
    %75 = tpu.matmul %63, %74, %cst_30 {dimension_numbers = #tpu.dot_dimension_numbers<[1], [0], [0], [1], [0, 0, 1, 1], [], []>} : vector<16x128xbf16>, vector<128x128xbf16>, vector<16x128xf32> -> vector<16x128xf32>
    %76 = arith.addf %27, %75 : vector<16x128xf32>
    %c0_31 = arith.constant 0 : index
    %c0_32 = arith.constant 0 : index
    %77 = vector.load %arg11[%c0_31, %c0_32] : memref<128x128xbf16, #tpu.memory_space<vmem>>, vector<128x128xbf16>
    %c0_33 = arith.constant 0 : index
    %c0_34 = arith.constant 0 : index
    %78 = vector.load %arg12[%c0_33, %c0_34] : memref<16x128xf32, #tpu.memory_space<vmem>>, vector<16x128xf32>
    %79 = arith.truncf %62 : vector<16x128xf32> to vector<16x128xbf16>
    %cst_35 = arith.constant dense<0.000000e+00> : vector<16x128xf32>
    %80 = tpu.matmul %79, %77, %cst_35 {dimension_numbers = #tpu.dot_dimension_numbers<[1], [0], [0], [1], [0, 0, 1, 1], [], []>} : vector<16x128xbf16>, vector<128x128xbf16>, vector<16x128xf32> -> vector<16x128xf32>
    %81 = arith.truncf %80 : vector<16x128xf32> to vector<16x128xbf16>
    %cst_36 = arith.constant dense<0.000000e+00> : vector<16x128xf32>
    %82 = tpu.matmul %5, %81, %cst_36 {dimension_numbers = #tpu.dot_dimension_numbers<[1], [0], [0], [1], [0, 0, 1, 1], [], []>} : vector<16x16xbf16>, vector<16x128xbf16>, vector<16x128xf32> -> vector<16x128xf32>
    %83 = arith.addf %82, %78 : vector<16x128xf32>
    %cst_37 = arith.constant 0.000000e+00 : f32
    %84 = vector.broadcast %cst_37 : f32 to vector<16x128xf32>
    %85 = arith.maximumf %83, %84 : vector<16x128xf32>
    %86 = arith.truncf %62 : vector<16x128xf32> to vector<16x128xbf16>
    %87 = arith.truncf %85 : vector<16x128xf32> to vector<16x128xbf16>
    %cst_38 = arith.constant dense<0.000000e+00> : vector<16x16xf32>
    %88 = tpu.matmul %86, %87, %cst_38 {dimension_numbers = #tpu.dot_dimension_numbers<[1], [1], [0], [0], [0, 0, 1, 0], [], []>} : vector<16x128xbf16>, vector<16x128xbf16>, vector<16x16xf32> -> vector<16x16xf32>
    %cst_39 = arith.constant 2.500000e-01 : f32
    %89 = vector.broadcast %cst_39 : f32 to vector<16x16xf32>
    %90 = arith.mulf %88, %89 : vector<16x16xf32>
    %cst_40 = arith.constant -1.000000e+30 : f32
    %91 = vector.broadcast %cst_40 : f32 to vector<16x16xf32>
    %92 = arith.select %30, %90, %91 : vector<16x16xi1>, vector<16x16xf32>
    %cst_41 = arith.constant dense<0xFF800000> : vector<16xf32>
    %93 = vector.multi_reduction <maximumf>, %92, %cst_41 [1] : vector<16x16xf32> to vector<16xf32>
    %94 = vector.shape_cast %93 : vector<16xf32> to vector<16x1xf32>
    %95 = vector.broadcast %94 : vector<16x1xf32> to vector<16x16xf32>
    %96 = arith.subf %92, %95 : vector<16x16xf32>
    %97 = math.exp %96 : vector<16x16xf32>
    %cst_42 = arith.constant dense<0.000000e+00> : vector<16xf32>
    %98 = vector.multi_reduction <add>, %97, %cst_42 [1] : vector<16x16xf32> to vector<16xf32>
    %99 = vector.shape_cast %98 : vector<16xf32> to vector<16x1xf32>
    %100 = tpu.reciprocal %99 {approx = true} : vector<16x1xf32> -> vector<16x1xf32>
    %101 = vector.broadcast %100 : vector<16x1xf32> to vector<16x16xf32>
    %102 = arith.mulf %97, %101 : vector<16x16xf32>
    %103 = arith.truncf %102 : vector<16x16xf32> to vector<16x16xbf16>
    %104 = arith.truncf %85 : vector<16x128xf32> to vector<16x128xbf16>
    %cst_43 = arith.constant dense<0.000000e+00> : vector<16x128xf32>
    %105 = tpu.matmul %103, %104, %cst_43 {dimension_numbers = #tpu.dot_dimension_numbers<[1], [0], [0], [1], [0, 0, 1, 1], [], []>} : vector<16x16xbf16>, vector<16x128xbf16>, vector<16x128xf32> -> vector<16x128xf32>
    %cst_44 = arith.constant 0.000000e+00 : f32
    %106 = vector.broadcast %cst_44 : f32 to vector<16x128xf32>
    %107 = arith.maximumf %105, %106 : vector<16x128xf32>
    %108 = arith.addf %85, %107 : vector<16x128xf32>
    %109 = arith.truncf %108 : vector<16x128xf32> to vector<16x128xbf16>
    %110 = tpu.iota {dimensions = array<i32: 0>} : vector<128x128xi32>
    %111 = tpu.iota {dimensions = array<i32: 1>} : vector<128x128xi32>
    %c64_i32 = arith.constant 64 : i32
    %112 = vector.broadcast %c64_i32 : i32 to vector<128x128xi32>
    %113 = arith.addi %110, %112 : vector<128x128xi32>
    %114 = arith.cmpi eq, %111, %113 : vector<128x128xi32>
    %c16_i32_45 = arith.constant 16 : i32
    %115 = vector.broadcast %c16_i32_45 : i32 to vector<128x128xi32>
    %116 = arith.cmpi slt, %110, %115 : vector<128x128xi32>
    %117 = arith.andi %114, %116 : vector<128x128xi1>
    %118 = arith.extui %117 : vector<128x128xi1> to vector<128x128xi32>
    %119 = arith.sitofp %118 : vector<128x128xi32> to vector<128x128xf32>
    %120 = arith.truncf %119 : vector<128x128xf32> to vector<128x128xbf16>
    %cst_46 = arith.constant dense<0.000000e+00> : vector<16x128xf32>
    %121 = tpu.matmul %109, %120, %cst_46 {dimension_numbers = #tpu.dot_dimension_numbers<[1], [0], [0], [1], [0, 0, 1, 1], [], []>} : vector<16x128xbf16>, vector<128x128xbf16>, vector<16x128xf32> -> vector<16x128xf32>
    %122 = arith.addf %76, %121 : vector<16x128xf32>
    %123 = arith.truncf %122 : vector<16x128xf32> to vector<16x128xbf16>
    %c0_47 = arith.constant 0 : index
    %c0_48 = arith.constant 0 : index
    %c0_49 = arith.constant 0 : index
    %124 = vector.load %arg4[%c0_47, %c0_48, %c0_49] : memref<1x16x16xbf16, #tpu.memory_space<vmem>>, vector<1x16x16xbf16>
    %125 = vector.shape_cast %124 : vector<1x16x16xbf16> to vector<16x16xbf16>
    %cst_50 = arith.constant dense<0.000000e+00> : vector<16x128xf32>
    %126 = tpu.matmul %125, %123, %cst_50 {dimension_numbers = #tpu.dot_dimension_numbers<[1], [0], [0], [1], [0, 0, 1, 1], [], []>} : vector<16x16xbf16>, vector<16x128xbf16>, vector<16x128xf32> -> vector<16x128xf32>
    %c0_51 = arith.constant 0 : index
    %c0_52 = arith.constant 0 : index
    %c0_53 = arith.constant 0 : index
    %127 = vector.load %arg5[%c0_51, %c0_52, %c0_53] : memref<1x16x16xbf16, #tpu.memory_space<vmem>>, vector<1x16x16xbf16>
    %128 = vector.shape_cast %127 : vector<1x16x16xbf16> to vector<16x16xbf16>
    %cst_54 = arith.constant dense<0.000000e+00> : vector<16x128xf32>
    %129 = tpu.matmul %128, %123, %cst_54 {dimension_numbers = #tpu.dot_dimension_numbers<[1], [0], [0], [1], [0, 0, 1, 1], [], []>} : vector<16x16xbf16>, vector<16x128xbf16>, vector<16x128xf32> -> vector<16x128xf32>
    %c0_55 = arith.constant 0 : index
    %c0_56 = arith.constant 0 : index
    %c0_57 = arith.constant 0 : index
    %c0_58 = arith.constant 0 : index
    %130 = vector.load %arg6[%c0_55, %c0_56, %c0_57, %c0_58] : memref<1x3x16x16xbf16, #tpu.memory_space<vmem>>, vector<1x1x16x16xbf16>
    %131 = vector.shape_cast %130 : vector<1x1x16x16xbf16> to vector<16x16xbf16>
    %cst_59 = arith.constant dense<0.000000e+00> : vector<16x128xf32>
    %132 = tpu.matmul %131, %123, %cst_59 {dimension_numbers = #tpu.dot_dimension_numbers<[1], [0], [0], [1], [0, 0, 1, 1], [], []>} : vector<16x16xbf16>, vector<16x128xbf16>, vector<16x128xf32> -> vector<16x128xf32>
    %c0_60 = arith.constant 0 : index
    %c1 = arith.constant 1 : index
    %c0_61 = arith.constant 0 : index
    %c0_62 = arith.constant 0 : index
    %133 = vector.load %arg6[%c0_60, %c1, %c0_61, %c0_62] : memref<1x3x16x16xbf16, #tpu.memory_space<vmem>>, vector<1x1x16x16xbf16>
    %134 = vector.shape_cast %133 : vector<1x1x16x16xbf16> to vector<16x16xbf16>
    %cst_63 = arith.constant dense<0.000000e+00> : vector<16x128xf32>
    %135 = tpu.matmul %134, %123, %cst_63 {dimension_numbers = #tpu.dot_dimension_numbers<[1], [0], [0], [1], [0, 0, 1, 1], [], []>} : vector<16x16xbf16>, vector<16x128xbf16>, vector<16x128xf32> -> vector<16x128xf32>
    %c0_64 = arith.constant 0 : index
    %c2 = arith.constant 2 : index
    %c0_65 = arith.constant 0 : index
    %c0_66 = arith.constant 0 : index
    %136 = vector.load %arg6[%c0_64, %c2, %c0_65, %c0_66] : memref<1x3x16x16xbf16, #tpu.memory_space<vmem>>, vector<1x1x16x16xbf16>
    %137 = vector.shape_cast %136 : vector<1x1x16x16xbf16> to vector<16x16xbf16>
    %cst_67 = arith.constant dense<0.000000e+00> : vector<16x128xf32>
    %138 = tpu.matmul %137, %123, %cst_67 {dimension_numbers = #tpu.dot_dimension_numbers<[1], [0], [0], [1], [0, 0, 1, 1], [], []>} : vector<16x16xbf16>, vector<16x128xbf16>, vector<16x128xf32> -> vector<16x128xf32>
    %c0_68 = arith.constant 0 : index
    %c0_69 = arith.constant 0 : index
    %139 = vector.load %arg15[%c0_68, %c0_69] : memref<16x512xf32, #tpu.memory_space<vmem>>, vector<16x512xf32>
    %cst_70 = arith.constant 0.000000e+00 : f32
    %140 = vector.broadcast %cst_70 : f32 to vector<16x128xf32>
    %cst_71 = arith.constant 0.000000e+00 : f32
    %141 = vector.broadcast %cst_71 : f32 to vector<16x128xf32>
    %142 = arith.truncf %132 : vector<16x128xf32> to vector<16x128xbf16>
    %c0_72 = arith.constant 0 : index
    %c0_73 = arith.constant 0 : index
    %143 = vector.load %arg13[%c0_72, %c0_73] : memref<128x512xbf16, #tpu.memory_space<vmem>>, vector<128x512xbf16>
    %cst_74 = arith.constant dense<0.000000e+00> : vector<16x512xf32>
    %144 = tpu.matmul %142, %143, %cst_74 {dimension_numbers = #tpu.dot_dimension_numbers<[1], [0], [0], [1], [0, 0, 1, 1], [], []>} : vector<16x128xbf16>, vector<128x512xbf16>, vector<16x512xf32> -> vector<16x512xf32>
    %145 = arith.truncf %140 : vector<16x128xf32> to vector<16x128xbf16>
    %c0_75 = arith.constant 0 : index
    %c0_76 = arith.constant 0 : index
    %146 = vector.load %arg14[%c0_75, %c0_76] : memref<128x512xbf16, #tpu.memory_space<vmem>>, vector<128x512xbf16>
    %cst_77 = arith.constant dense<0.000000e+00> : vector<16x512xf32>
    %147 = tpu.matmul %145, %146, %cst_77 {dimension_numbers = #tpu.dot_dimension_numbers<[1], [0], [0], [1], [0, 0, 1, 1], [], []>} : vector<16x128xbf16>, vector<128x512xbf16>, vector<16x512xf32> -> vector<16x512xf32>
    %148 = arith.addf %144, %147 : vector<16x512xf32>
    %149 = arith.addf %148, %139 : vector<16x512xf32>
    %150 = vector.extract_strided_slice %149 {offsets = [0, 0], sizes = [16, 128], strides = [1, 1]} : vector<16x512xf32> to vector<16x128xf32>
    %cst_78 = arith.constant 0.000000e+00 : f32
    %151 = vector.broadcast %cst_78 : f32 to vector<16x128xf32>
    %152 = arith.subf %151, %150 : vector<16x128xf32>
    %153 = math.exp %152 : vector<16x128xf32>
    %cst_79 = arith.constant 1.000000e+00 : f32
    %154 = vector.broadcast %cst_79 : f32 to vector<16x128xf32>
    %155 = arith.addf %154, %153 : vector<16x128xf32>
    %cst_80 = arith.constant 1.000000e+00 : f32
    %156 = vector.broadcast %cst_80 : f32 to vector<16x128xf32>
    %157 = arith.divf %156, %155 : vector<16x128xf32>
    %158 = vector.extract_strided_slice %149 {offsets = [0, 128], sizes = [16, 128], strides = [1, 1]} : vector<16x512xf32> to vector<16x128xf32>
    %cst_81 = arith.constant 0.000000e+00 : f32
    %159 = vector.broadcast %cst_81 : f32 to vector<16x128xf32>
    %160 = arith.subf %159, %158 : vector<16x128xf32>
    %161 = math.exp %160 : vector<16x128xf32>
    %cst_82 = arith.constant 1.000000e+00 : f32
    %162 = vector.broadcast %cst_82 : f32 to vector<16x128xf32>
    %163 = arith.addf %162, %161 : vector<16x128xf32>
    %cst_83 = arith.constant 1.000000e+00 : f32
    %164 = vector.broadcast %cst_83 : f32 to vector<16x128xf32>
    %165 = arith.divf %164, %163 : vector<16x128xf32>
    %166 = vector.extract_strided_slice %149 {offsets = [0, 256], sizes = [16, 128], strides = [1, 1]} : vector<16x512xf32> to vector<16x128xf32>
    %167 = math.tanh %166 : vector<16x128xf32>
    %168 = vector.extract_strided_slice %149 {offsets = [0, 384], sizes = [16, 128], strides = [1, 1]} : vector<16x512xf32> to vector<16x128xf32>
    %cst_84 = arith.constant 0.000000e+00 : f32
    %169 = vector.broadcast %cst_84 : f32 to vector<16x128xf32>
    %170 = arith.subf %169, %168 : vector<16x128xf32>
    %171 = math.exp %170 : vector<16x128xf32>
    %cst_85 = arith.constant 1.000000e+00 : f32
    %172 = vector.broadcast %cst_85 : f32 to vector<16x128xf32>
    %173 = arith.addf %172, %171 : vector<16x128xf32>
    %cst_86 = arith.constant 1.000000e+00 : f32
    %174 = vector.broadcast %cst_86 : f32 to vector<16x128xf32>
    %175 = arith.divf %174, %173 : vector<16x128xf32>
    %176 = arith.mulf %165, %141 : vector<16x128xf32>
    %177 = arith.mulf %157, %167 : vector<16x128xf32>
    %178 = arith.addf %176, %177 : vector<16x128xf32>
    %179 = math.tanh %178 : vector<16x128xf32>
    %180 = arith.mulf %175, %179 : vector<16x128xf32>
    %181 = arith.truncf %135 : vector<16x128xf32> to vector<16x128xbf16>
    %c0_87 = arith.constant 0 : index
    %c0_88 = arith.constant 0 : index
    %182 = vector.load %arg13[%c0_87, %c0_88] : memref<128x512xbf16, #tpu.memory_space<vmem>>, vector<128x512xbf16>
    %cst_89 = arith.constant dense<0.000000e+00> : vector<16x512xf32>
    %183 = tpu.matmul %181, %182, %cst_89 {dimension_numbers = #tpu.dot_dimension_numbers<[1], [0], [0], [1], [0, 0, 1, 1], [], []>} : vector<16x128xbf16>, vector<128x512xbf16>, vector<16x512xf32> -> vector<16x512xf32>
    %184 = arith.truncf %180 : vector<16x128xf32> to vector<16x128xbf16>
    %c0_90 = arith.constant 0 : index
    %c0_91 = arith.constant 0 : index
    %185 = vector.load %arg14[%c0_90, %c0_91] : memref<128x512xbf16, #tpu.memory_space<vmem>>, vector<128x512xbf16>
    %cst_92 = arith.constant dense<0.000000e+00> : vector<16x512xf32>
    %186 = tpu.matmul %184, %185, %cst_92 {dimension_numbers = #tpu.dot_dimension_numbers<[1], [0], [0], [1], [0, 0, 1, 1], [], []>} : vector<16x128xbf16>, vector<128x512xbf16>, vector<16x512xf32> -> vector<16x512xf32>
    %187 = arith.addf %183, %186 : vector<16x512xf32>
    %188 = arith.addf %187, %139 : vector<16x512xf32>
    %189 = vector.extract_strided_slice %188 {offsets = [0, 0], sizes = [16, 128], strides = [1, 1]} : vector<16x512xf32> to vector<16x128xf32>
    %cst_93 = arith.constant 0.000000e+00 : f32
    %190 = vector.broadcast %cst_93 : f32 to vector<16x128xf32>
    %191 = arith.subf %190, %189 : vector<16x128xf32>
    %192 = math.exp %191 : vector<16x128xf32>
    %cst_94 = arith.constant 1.000000e+00 : f32
    %193 = vector.broadcast %cst_94 : f32 to vector<16x128xf32>
    %194 = arith.addf %193, %192 : vector<16x128xf32>
    %cst_95 = arith.constant 1.000000e+00 : f32
    %195 = vector.broadcast %cst_95 : f32 to vector<16x128xf32>
    %196 = arith.divf %195, %194 : vector<16x128xf32>
    %197 = vector.extract_strided_slice %188 {offsets = [0, 128], sizes = [16, 128], strides = [1, 1]} : vector<16x512xf32> to vector<16x128xf32>
    %cst_96 = arith.constant 0.000000e+00 : f32
    %198 = vector.broadcast %cst_96 : f32 to vector<16x128xf32>
    %199 = arith.subf %198, %197 : vector<16x128xf32>
    %200 = math.exp %199 : vector<16x128xf32>
    %cst_97 = arith.constant 1.000000e+00 : f32
    %201 = vector.broadcast %cst_97 : f32 to vector<16x128xf32>
    %202 = arith.addf %201, %200 : vector<16x128xf32>
    %cst_98 = arith.constant 1.000000e+00 : f32
    %203 = vector.broadcast %cst_98 : f32 to vector<16x128xf32>
    %204 = arith.divf %203, %202 : vector<16x128xf32>
    %205 = vector.extract_strided_slice %188 {offsets = [0, 256], sizes = [16, 128], strides = [1, 1]} : vector<16x512xf32> to vector<16x128xf32>
    %206 = math.tanh %205 : vector<16x128xf32>
    %207 = vector.extract_strided_slice %188 {offsets = [0, 384], sizes = [16, 128], strides = [1, 1]} : vector<16x512xf32> to vector<16x128xf32>
    %cst_99 = arith.constant 0.000000e+00 : f32
    %208 = vector.broadcast %cst_99 : f32 to vector<16x128xf32>
    %209 = arith.subf %208, %207 : vector<16x128xf32>
    %210 = math.exp %209 : vector<16x128xf32>
    %cst_100 = arith.constant 1.000000e+00 : f32
    %211 = vector.broadcast %cst_100 : f32 to vector<16x128xf32>
    %212 = arith.addf %211, %210 : vector<16x128xf32>
    %cst_101 = arith.constant 1.000000e+00 : f32
    %213 = vector.broadcast %cst_101 : f32 to vector<16x128xf32>
    %214 = arith.divf %213, %212 : vector<16x128xf32>
    %215 = arith.mulf %204, %178 : vector<16x128xf32>
    %216 = arith.mulf %196, %206 : vector<16x128xf32>
    %217 = arith.addf %215, %216 : vector<16x128xf32>
    %218 = math.tanh %217 : vector<16x128xf32>
    %219 = arith.mulf %214, %218 : vector<16x128xf32>
    %220 = arith.truncf %138 : vector<16x128xf32> to vector<16x128xbf16>
    %c0_102 = arith.constant 0 : index
    %c0_103 = arith.constant 0 : index
    %221 = vector.load %arg13[%c0_102, %c0_103] : memref<128x512xbf16, #tpu.memory_space<vmem>>, vector<128x512xbf16>
    %cst_104 = arith.constant dense<0.000000e+00> : vector<16x512xf32>
    %222 = tpu.matmul %220, %221, %cst_104 {dimension_numbers = #tpu.dot_dimension_numbers<[1], [0], [0], [1], [0, 0, 1, 1], [], []>} : vector<16x128xbf16>, vector<128x512xbf16>, vector<16x512xf32> -> vector<16x512xf32>
    %223 = arith.truncf %219 : vector<16x128xf32> to vector<16x128xbf16>
    %c0_105 = arith.constant 0 : index
    %c0_106 = arith.constant 0 : index
    %224 = vector.load %arg14[%c0_105, %c0_106] : memref<128x512xbf16, #tpu.memory_space<vmem>>, vector<128x512xbf16>
    %cst_107 = arith.constant dense<0.000000e+00> : vector<16x512xf32>
    %225 = tpu.matmul %223, %224, %cst_107 {dimension_numbers = #tpu.dot_dimension_numbers<[1], [0], [0], [1], [0, 0, 1, 1], [], []>} : vector<16x128xbf16>, vector<128x512xbf16>, vector<16x512xf32> -> vector<16x512xf32>
    %226 = arith.addf %222, %225 : vector<16x512xf32>
    %227 = arith.addf %226, %139 : vector<16x512xf32>
    %228 = vector.extract_strided_slice %227 {offsets = [0, 0], sizes = [16, 128], strides = [1, 1]} : vector<16x512xf32> to vector<16x128xf32>
    %cst_108 = arith.constant 0.000000e+00 : f32
    %229 = vector.broadcast %cst_108 : f32 to vector<16x128xf32>
    %230 = arith.subf %229, %228 : vector<16x128xf32>
    %231 = math.exp %230 : vector<16x128xf32>
    %cst_109 = arith.constant 1.000000e+00 : f32
    %232 = vector.broadcast %cst_109 : f32 to vector<16x128xf32>
    %233 = arith.addf %232, %231 : vector<16x128xf32>
    %cst_110 = arith.constant 1.000000e+00 : f32
    %234 = vector.broadcast %cst_110 : f32 to vector<16x128xf32>
    %235 = arith.divf %234, %233 : vector<16x128xf32>
    %236 = vector.extract_strided_slice %227 {offsets = [0, 128], sizes = [16, 128], strides = [1, 1]} : vector<16x512xf32> to vector<16x128xf32>
    %cst_111 = arith.constant 0.000000e+00 : f32
    %237 = vector.broadcast %cst_111 : f32 to vector<16x128xf32>
    %238 = arith.subf %237, %236 : vector<16x128xf32>
    %239 = math.exp %238 : vector<16x128xf32>
    %cst_112 = arith.constant 1.000000e+00 : f32
    %240 = vector.broadcast %cst_112 : f32 to vector<16x128xf32>
    %241 = arith.addf %240, %239 : vector<16x128xf32>
    %cst_113 = arith.constant 1.000000e+00 : f32
    %242 = vector.broadcast %cst_113 : f32 to vector<16x128xf32>
    %243 = arith.divf %242, %241 : vector<16x128xf32>
    %244 = vector.extract_strided_slice %227 {offsets = [0, 256], sizes = [16, 128], strides = [1, 1]} : vector<16x512xf32> to vector<16x128xf32>
    %245 = math.tanh %244 : vector<16x128xf32>
    %246 = vector.extract_strided_slice %227 {offsets = [0, 384], sizes = [16, 128], strides = [1, 1]} : vector<16x512xf32> to vector<16x128xf32>
    %cst_114 = arith.constant 0.000000e+00 : f32
    %247 = vector.broadcast %cst_114 : f32 to vector<16x128xf32>
    %248 = arith.subf %247, %246 : vector<16x128xf32>
    %249 = math.exp %248 : vector<16x128xf32>
    %cst_115 = arith.constant 1.000000e+00 : f32
    %250 = vector.broadcast %cst_115 : f32 to vector<16x128xf32>
    %251 = arith.addf %250, %249 : vector<16x128xf32>
    %cst_116 = arith.constant 1.000000e+00 : f32
    %252 = vector.broadcast %cst_116 : f32 to vector<16x128xf32>
    %253 = arith.divf %252, %251 : vector<16x128xf32>
    %254 = arith.mulf %243, %217 : vector<16x128xf32>
    %255 = arith.mulf %235, %245 : vector<16x128xf32>
    %256 = arith.addf %254, %255 : vector<16x128xf32>
    %257 = math.tanh %256 : vector<16x128xf32>
    %258 = arith.mulf %253, %257 : vector<16x128xf32>
    %c0_117 = arith.constant 0 : index
    %c0_118 = arith.constant 0 : index
    %259 = vector.load %arg18[%c0_117, %c0_118] : memref<16x512xf32, #tpu.memory_space<vmem>>, vector<16x512xf32>
    %cst_119 = arith.constant 0.000000e+00 : f32
    %260 = vector.broadcast %cst_119 : f32 to vector<16x128xf32>
    %cst_120 = arith.constant 0.000000e+00 : f32
    %261 = vector.broadcast %cst_120 : f32 to vector<16x128xf32>
    %262 = arith.truncf %180 : vector<16x128xf32> to vector<16x128xbf16>
    %c0_121 = arith.constant 0 : index
    %c0_122 = arith.constant 0 : index
    %263 = vector.load %arg16[%c0_121, %c0_122] : memref<128x512xbf16, #tpu.memory_space<vmem>>, vector<128x512xbf16>
    %cst_123 = arith.constant dense<0.000000e+00> : vector<16x512xf32>
    %264 = tpu.matmul %262, %263, %cst_123 {dimension_numbers = #tpu.dot_dimension_numbers<[1], [0], [0], [1], [0, 0, 1, 1], [], []>} : vector<16x128xbf16>, vector<128x512xbf16>, vector<16x512xf32> -> vector<16x512xf32>
    %265 = arith.truncf %260 : vector<16x128xf32> to vector<16x128xbf16>
    %c0_124 = arith.constant 0 : index
    %c0_125 = arith.constant 0 : index
    %266 = vector.load %arg17[%c0_124, %c0_125] : memref<128x512xbf16, #tpu.memory_space<vmem>>, vector<128x512xbf16>
    %cst_126 = arith.constant dense<0.000000e+00> : vector<16x512xf32>
    %267 = tpu.matmul %265, %266, %cst_126 {dimension_numbers = #tpu.dot_dimension_numbers<[1], [0], [0], [1], [0, 0, 1, 1], [], []>} : vector<16x128xbf16>, vector<128x512xbf16>, vector<16x512xf32> -> vector<16x512xf32>
    %268 = arith.addf %264, %267 : vector<16x512xf32>
    %269 = arith.addf %268, %259 : vector<16x512xf32>
    %270 = vector.extract_strided_slice %269 {offsets = [0, 0], sizes = [16, 128], strides = [1, 1]} : vector<16x512xf32> to vector<16x128xf32>
    %cst_127 = arith.constant 0.000000e+00 : f32
    %271 = vector.broadcast %cst_127 : f32 to vector<16x128xf32>
    %272 = arith.subf %271, %270 : vector<16x128xf32>
    %273 = math.exp %272 : vector<16x128xf32>
    %cst_128 = arith.constant 1.000000e+00 : f32
    %274 = vector.broadcast %cst_128 : f32 to vector<16x128xf32>
    %275 = arith.addf %274, %273 : vector<16x128xf32>
    %cst_129 = arith.constant 1.000000e+00 : f32
    %276 = vector.broadcast %cst_129 : f32 to vector<16x128xf32>
    %277 = arith.divf %276, %275 : vector<16x128xf32>
    %278 = vector.extract_strided_slice %269 {offsets = [0, 128], sizes = [16, 128], strides = [1, 1]} : vector<16x512xf32> to vector<16x128xf32>
    %cst_130 = arith.constant 0.000000e+00 : f32
    %279 = vector.broadcast %cst_130 : f32 to vector<16x128xf32>
    %280 = arith.subf %279, %278 : vector<16x128xf32>
    %281 = math.exp %280 : vector<16x128xf32>
    %cst_131 = arith.constant 1.000000e+00 : f32
    %282 = vector.broadcast %cst_131 : f32 to vector<16x128xf32>
    %283 = arith.addf %282, %281 : vector<16x128xf32>
    %cst_132 = arith.constant 1.000000e+00 : f32
    %284 = vector.broadcast %cst_132 : f32 to vector<16x128xf32>
    %285 = arith.divf %284, %283 : vector<16x128xf32>
    %286 = vector.extract_strided_slice %269 {offsets = [0, 256], sizes = [16, 128], strides = [1, 1]} : vector<16x512xf32> to vector<16x128xf32>
    %287 = math.tanh %286 : vector<16x128xf32>
    %288 = vector.extract_strided_slice %269 {offsets = [0, 384], sizes = [16, 128], strides = [1, 1]} : vector<16x512xf32> to vector<16x128xf32>
    %cst_133 = arith.constant 0.000000e+00 : f32
    %289 = vector.broadcast %cst_133 : f32 to vector<16x128xf32>
    %290 = arith.subf %289, %288 : vector<16x128xf32>
    %291 = math.exp %290 : vector<16x128xf32>
    %cst_134 = arith.constant 1.000000e+00 : f32
    %292 = vector.broadcast %cst_134 : f32 to vector<16x128xf32>
    %293 = arith.addf %292, %291 : vector<16x128xf32>
    %cst_135 = arith.constant 1.000000e+00 : f32
    %294 = vector.broadcast %cst_135 : f32 to vector<16x128xf32>
    %295 = arith.divf %294, %293 : vector<16x128xf32>
    %296 = arith.mulf %285, %261 : vector<16x128xf32>
    %297 = arith.mulf %277, %287 : vector<16x128xf32>
    %298 = arith.addf %296, %297 : vector<16x128xf32>
    %299 = math.tanh %298 : vector<16x128xf32>
    %300 = arith.mulf %295, %299 : vector<16x128xf32>
    %301 = arith.truncf %219 : vector<16x128xf32> to vector<16x128xbf16>
    %c0_136 = arith.constant 0 : index
    %c0_137 = arith.constant 0 : index
    %302 = vector.load %arg16[%c0_136, %c0_137] : memref<128x512xbf16, #tpu.memory_space<vmem>>, vector<128x512xbf16>
    %cst_138 = arith.constant dense<0.000000e+00> : vector<16x512xf32>
    %303 = tpu.matmul %301, %302, %cst_138 {dimension_numbers = #tpu.dot_dimension_numbers<[1], [0], [0], [1], [0, 0, 1, 1], [], []>} : vector<16x128xbf16>, vector<128x512xbf16>, vector<16x512xf32> -> vector<16x512xf32>
    %304 = arith.truncf %300 : vector<16x128xf32> to vector<16x128xbf16>
    %c0_139 = arith.constant 0 : index
    %c0_140 = arith.constant 0 : index
    %305 = vector.load %arg17[%c0_139, %c0_140] : memref<128x512xbf16, #tpu.memory_space<vmem>>, vector<128x512xbf16>
    %cst_141 = arith.constant dense<0.000000e+00> : vector<16x512xf32>
    %306 = tpu.matmul %304, %305, %cst_141 {dimension_numbers = #tpu.dot_dimension_numbers<[1], [0], [0], [1], [0, 0, 1, 1], [], []>} : vector<16x128xbf16>, vector<128x512xbf16>, vector<16x512xf32> -> vector<16x512xf32>
    %307 = arith.addf %303, %306 : vector<16x512xf32>
    %308 = arith.addf %307, %259 : vector<16x512xf32>
    %309 = vector.extract_strided_slice %308 {offsets = [0, 0], sizes = [16, 128], strides = [1, 1]} : vector<16x512xf32> to vector<16x128xf32>
    %cst_142 = arith.constant 0.000000e+00 : f32
    %310 = vector.broadcast %cst_142 : f32 to vector<16x128xf32>
    %311 = arith.subf %310, %309 : vector<16x128xf32>
    %312 = math.exp %311 : vector<16x128xf32>
    %cst_143 = arith.constant 1.000000e+00 : f32
    %313 = vector.broadcast %cst_143 : f32 to vector<16x128xf32>
    %314 = arith.addf %313, %312 : vector<16x128xf32>
    %cst_144 = arith.constant 1.000000e+00 : f32
    %315 = vector.broadcast %cst_144 : f32 to vector<16x128xf32>
    %316 = arith.divf %315, %314 : vector<16x128xf32>
    %317 = vector.extract_strided_slice %308 {offsets = [0, 128], sizes = [16, 128], strides = [1, 1]} : vector<16x512xf32> to vector<16x128xf32>
    %cst_145 = arith.constant 0.000000e+00 : f32
    %318 = vector.broadcast %cst_145 : f32 to vector<16x128xf32>
    %319 = arith.subf %318, %317 : vector<16x128xf32>
    %320 = math.exp %319 : vector<16x128xf32>
    %cst_146 = arith.constant 1.000000e+00 : f32
    %321 = vector.broadcast %cst_146 : f32 to vector<16x128xf32>
    %322 = arith.addf %321, %320 : vector<16x128xf32>
    %cst_147 = arith.constant 1.000000e+00 : f32
    %323 = vector.broadcast %cst_147 : f32 to vector<16x128xf32>
    %324 = arith.divf %323, %322 : vector<16x128xf32>
    %325 = vector.extract_strided_slice %308 {offsets = [0, 256], sizes = [16, 128], strides = [1, 1]} : vector<16x512xf32> to vector<16x128xf32>
    %326 = math.tanh %325 : vector<16x128xf32>
    %327 = vector.extract_strided_slice %308 {offsets = [0, 384], sizes = [16, 128], strides = [1, 1]} : vector<16x512xf32> to vector<16x128xf32>
    %cst_148 = arith.constant 0.000000e+00 : f32
    %328 = vector.broadcast %cst_148 : f32 to vector<16x128xf32>
    %329 = arith.subf %328, %327 : vector<16x128xf32>
    %330 = math.exp %329 : vector<16x128xf32>
    %cst_149 = arith.constant 1.000000e+00 : f32
    %331 = vector.broadcast %cst_149 : f32 to vector<16x128xf32>
    %332 = arith.addf %331, %330 : vector<16x128xf32>
    %cst_150 = arith.constant 1.000000e+00 : f32
    %333 = vector.broadcast %cst_150 : f32 to vector<16x128xf32>
    %334 = arith.divf %333, %332 : vector<16x128xf32>
    %335 = arith.mulf %324, %298 : vector<16x128xf32>
    %336 = arith.mulf %316, %326 : vector<16x128xf32>
    %337 = arith.addf %335, %336 : vector<16x128xf32>
    %338 = math.tanh %337 : vector<16x128xf32>
    %339 = arith.mulf %334, %338 : vector<16x128xf32>
    %340 = arith.truncf %258 : vector<16x128xf32> to vector<16x128xbf16>
    %c0_151 = arith.constant 0 : index
    %c0_152 = arith.constant 0 : index
    %341 = vector.load %arg16[%c0_151, %c0_152] : memref<128x512xbf16, #tpu.memory_space<vmem>>, vector<128x512xbf16>
    %cst_153 = arith.constant dense<0.000000e+00> : vector<16x512xf32>
    %342 = tpu.matmul %340, %341, %cst_153 {dimension_numbers = #tpu.dot_dimension_numbers<[1], [0], [0], [1], [0, 0, 1, 1], [], []>} : vector<16x128xbf16>, vector<128x512xbf16>, vector<16x512xf32> -> vector<16x512xf32>
    %343 = arith.truncf %339 : vector<16x128xf32> to vector<16x128xbf16>
    %c0_154 = arith.constant 0 : index
    %c0_155 = arith.constant 0 : index
    %344 = vector.load %arg17[%c0_154, %c0_155] : memref<128x512xbf16, #tpu.memory_space<vmem>>, vector<128x512xbf16>
    %cst_156 = arith.constant dense<0.000000e+00> : vector<16x512xf32>
    %345 = tpu.matmul %343, %344, %cst_156 {dimension_numbers = #tpu.dot_dimension_numbers<[1], [0], [0], [1], [0, 0, 1, 1], [], []>} : vector<16x128xbf16>, vector<128x512xbf16>, vector<16x512xf32> -> vector<16x512xf32>
    %346 = arith.addf %342, %345 : vector<16x512xf32>
    %347 = arith.addf %346, %259 : vector<16x512xf32>
    %348 = vector.extract_strided_slice %347 {offsets = [0, 0], sizes = [16, 128], strides = [1, 1]} : vector<16x512xf32> to vector<16x128xf32>
    %cst_157 = arith.constant 0.000000e+00 : f32
    %349 = vector.broadcast %cst_157 : f32 to vector<16x128xf32>
    %350 = arith.subf %349, %348 : vector<16x128xf32>
    %351 = math.exp %350 : vector<16x128xf32>
    %cst_158 = arith.constant 1.000000e+00 : f32
    %352 = vector.broadcast %cst_158 : f32 to vector<16x128xf32>
    %353 = arith.addf %352, %351 : vector<16x128xf32>
    %cst_159 = arith.constant 1.000000e+00 : f32
    %354 = vector.broadcast %cst_159 : f32 to vector<16x128xf32>
    %355 = arith.divf %354, %353 : vector<16x128xf32>
    %356 = vector.extract_strided_slice %347 {offsets = [0, 128], sizes = [16, 128], strides = [1, 1]} : vector<16x512xf32> to vector<16x128xf32>
    %cst_160 = arith.constant 0.000000e+00 : f32
    %357 = vector.broadcast %cst_160 : f32 to vector<16x128xf32>
    %358 = arith.subf %357, %356 : vector<16x128xf32>
    %359 = math.exp %358 : vector<16x128xf32>
    %cst_161 = arith.constant 1.000000e+00 : f32
    %360 = vector.broadcast %cst_161 : f32 to vector<16x128xf32>
    %361 = arith.addf %360, %359 : vector<16x128xf32>
    %cst_162 = arith.constant 1.000000e+00 : f32
    %362 = vector.broadcast %cst_162 : f32 to vector<16x128xf32>
    %363 = arith.divf %362, %361 : vector<16x128xf32>
    %364 = vector.extract_strided_slice %347 {offsets = [0, 256], sizes = [16, 128], strides = [1, 1]} : vector<16x512xf32> to vector<16x128xf32>
    %365 = math.tanh %364 : vector<16x128xf32>
    %366 = vector.extract_strided_slice %347 {offsets = [0, 384], sizes = [16, 128], strides = [1, 1]} : vector<16x512xf32> to vector<16x128xf32>
    %cst_163 = arith.constant 0.000000e+00 : f32
    %367 = vector.broadcast %cst_163 : f32 to vector<16x128xf32>
    %368 = arith.subf %367, %366 : vector<16x128xf32>
    %369 = math.exp %368 : vector<16x128xf32>
    %cst_164 = arith.constant 1.000000e+00 : f32
    %370 = vector.broadcast %cst_164 : f32 to vector<16x128xf32>
    %371 = arith.addf %370, %369 : vector<16x128xf32>
    %cst_165 = arith.constant 1.000000e+00 : f32
    %372 = vector.broadcast %cst_165 : f32 to vector<16x128xf32>
    %373 = arith.divf %372, %371 : vector<16x128xf32>
    %374 = arith.mulf %363, %337 : vector<16x128xf32>
    %375 = arith.mulf %355, %365 : vector<16x128xf32>
    %376 = arith.addf %374, %375 : vector<16x128xf32>
    %377 = math.tanh %376 : vector<16x128xf32>
    %378 = arith.mulf %373, %377 : vector<16x128xf32>
    %379 = arith.maximumf %300, %339 : vector<16x128xf32>
    %380 = arith.maximumf %379, %378 : vector<16x128xf32>
    %381 = arith.subf %126, %129 : vector<16x128xf32>
    %382 = math.absf %381 : vector<16x128xf32>
    %383 = arith.mulf %126, %129 : vector<16x128xf32>
    %c0_166 = arith.constant 0 : index
    %c0_167 = arith.constant 0 : index
    %384 = vector.load %arg20[%c0_166, %c0_167] : memref<16x512xf32, #tpu.memory_space<vmem>>, vector<16x512xf32>
    %385 = arith.truncf %126 : vector<16x128xf32> to vector<16x128xbf16>
    %c0_168 = arith.constant 0 : index
    %c0_169 = arith.constant 0 : index
    %386 = vector.load %arg19[%c0_168, %c0_169] : memref<640x512xbf16, #tpu.memory_space<vmem>>, vector<128x512xbf16>
    %cst_170 = arith.constant dense<0.000000e+00> : vector<16x512xf32>
    %387 = tpu.matmul %385, %386, %cst_170 {dimension_numbers = #tpu.dot_dimension_numbers<[1], [0], [0], [1], [0, 0, 1, 1], [], []>} : vector<16x128xbf16>, vector<128x512xbf16>, vector<16x512xf32> -> vector<16x512xf32>
    %388 = arith.addf %384, %387 : vector<16x512xf32>
    %389 = arith.truncf %129 : vector<16x128xf32> to vector<16x128xbf16>
    %c128 = arith.constant 128 : index
    %c0_171 = arith.constant 0 : index
    %390 = vector.load %arg19[%c128, %c0_171] : memref<640x512xbf16, #tpu.memory_space<vmem>>, vector<128x512xbf16>
    %cst_172 = arith.constant dense<0.000000e+00> : vector<16x512xf32>
    %391 = tpu.matmul %389, %390, %cst_172 {dimension_numbers = #tpu.dot_dimension_numbers<[1], [0], [0], [1], [0, 0, 1, 1], [], []>} : vector<16x128xbf16>, vector<128x512xbf16>, vector<16x512xf32> -> vector<16x512xf32>
    %392 = arith.addf %388, %391 : vector<16x512xf32>
    %393 = arith.truncf %382 : vector<16x128xf32> to vector<16x128xbf16>
    %c256 = arith.constant 256 : index
    %c0_173 = arith.constant 0 : index
    %394 = vector.load %arg19[%c256, %c0_173] : memref<640x512xbf16, #tpu.memory_space<vmem>>, vector<128x512xbf16>
    %cst_174 = arith.constant dense<0.000000e+00> : vector<16x512xf32>
    %395 = tpu.matmul %393, %394, %cst_174 {dimension_numbers = #tpu.dot_dimension_numbers<[1], [0], [0], [1], [0, 0, 1, 1], [], []>} : vector<16x128xbf16>, vector<128x512xbf16>, vector<16x512xf32> -> vector<16x512xf32>
    %396 = arith.addf %392, %395 : vector<16x512xf32>
    %397 = arith.truncf %383 : vector<16x128xf32> to vector<16x128xbf16>
    %c384 = arith.constant 384 : index
    %c0_175 = arith.constant 0 : index
    %398 = vector.load %arg19[%c384, %c0_175] : memref<640x512xbf16, #tpu.memory_space<vmem>>, vector<128x512xbf16>
    %cst_176 = arith.constant dense<0.000000e+00> : vector<16x512xf32>
    %399 = tpu.matmul %397, %398, %cst_176 {dimension_numbers = #tpu.dot_dimension_numbers<[1], [0], [0], [1], [0, 0, 1, 1], [], []>} : vector<16x128xbf16>, vector<128x512xbf16>, vector<16x512xf32> -> vector<16x512xf32>
    %400 = arith.addf %396, %399 : vector<16x512xf32>
    %401 = arith.truncf %380 : vector<16x128xf32> to vector<16x128xbf16>
    %c512 = arith.constant 512 : index
    %c0_177 = arith.constant 0 : index
    %402 = vector.load %arg19[%c512, %c0_177] : memref<640x512xbf16, #tpu.memory_space<vmem>>, vector<128x512xbf16>
    %cst_178 = arith.constant dense<0.000000e+00> : vector<16x512xf32>
    %403 = tpu.matmul %401, %402, %cst_178 {dimension_numbers = #tpu.dot_dimension_numbers<[1], [0], [0], [1], [0, 0, 1, 1], [], []>} : vector<16x128xbf16>, vector<128x512xbf16>, vector<16x512xf32> -> vector<16x512xf32>
    %404 = arith.addf %400, %403 : vector<16x512xf32>
    %cst_179 = arith.constant 0.000000e+00 : f32
    %405 = vector.broadcast %cst_179 : f32 to vector<16x512xf32>
    %406 = arith.maximumf %404, %405 : vector<16x512xf32>
    %407 = arith.truncf %406 : vector<16x512xf32> to vector<16x512xbf16>
    %c0_180 = arith.constant 0 : index
    %c0_181 = arith.constant 0 : index
    %408 = vector.load %arg21[%c0_180, %c0_181] : memref<512x128xbf16, #tpu.memory_space<vmem>>, vector<512x128xbf16>
    %cst_182 = arith.constant dense<0.000000e+00> : vector<16x128xf32>
    %409 = tpu.matmul %407, %408, %cst_182 {dimension_numbers = #tpu.dot_dimension_numbers<[1], [0], [0], [1], [0, 0, 1, 1], [], []>} : vector<16x512xbf16>, vector<512x128xbf16>, vector<16x128xf32> -> vector<16x128xf32>
    %c0_183 = arith.constant 0 : index
    %c0_184 = arith.constant 0 : index
    %410 = vector.load %arg22[%c0_183, %c0_184] : memref<16x128xf32, #tpu.memory_space<vmem>>, vector<16x128xf32>
    %411 = arith.addf %409, %410 : vector<16x128xf32>
    %c0_185 = arith.constant 0 : index
    %c0_186 = arith.constant 0 : index
    %c0_187 = arith.constant 0 : index
    %412 = vector.load %arg23[%c0_185, %c0_186, %c0_187] : memref<1x16x128xf32, #tpu.memory_space<vmem>>, vector<1x16x128xf32>
    %413 = vector.shape_cast %412 : vector<1x16x128xf32> to vector<16x128xf32>
    %414 = vector.shape_cast %411 : vector<16x128xf32> to vector<1x16x128xf32>
    tpu.vector_store %arg23[%c0_185, %c0_186, %c0_187], %414 {strides = array<i32>} : memref<1x16x128xf32, #tpu.memory_space<vmem>>, vector<1x16x128xf32>,
    return
  }
  func.func @transform_0(%arg0: i32) -> (i32, i32, i32) {
    %c0_i32 = arith.constant 0 : i32
    %c0_i32_0 = arith.constant 0 : i32
    %c0_i32_1 = arith.constant 0 : i32
    return %arg0, %c0_i32, %c0_i32_0 : i32, i32, i32
  }
  func.func @transform_1(%arg0: i32) -> (i32, i32, i32) {
    %c0_i32 = arith.constant 0 : i32
    %c0_i32_0 = arith.constant 0 : i32
    %c0_i32_1 = arith.constant 0 : i32
    return %arg0, %c0_i32, %c0_i32_0 : i32, i32, i32
  }
  func.func @transform_2(%arg0: i32) -> (i32, i32, i32) {
    %c0_i32 = arith.constant 0 : i32
    %c0_i32_0 = arith.constant 0 : i32
    %c0_i32_1 = arith.constant 0 : i32
    return %arg0, %c0_i32, %c0_i32_0 : i32, i32, i32
  }
  func.func @transform_3(%arg0: i32) -> (i32, i32, i32) {
    %c0_i32 = arith.constant 0 : i32
    %c0_i32_0 = arith.constant 0 : i32
    %c0_i32_1 = arith.constant 0 : i32
    return %arg0, %c0_i32, %c0_i32_0 : i32, i32, i32
  }
  func.func @transform_4(%arg0: i32) -> (i32, i32, i32) {
    %c0_i32 = arith.constant 0 : i32
    %c0_i32_0 = arith.constant 0 : i32
    %c0_i32_1 = arith.constant 0 : i32
    return %arg0, %c0_i32, %c0_i32_0 : i32, i32, i32
  }
  func.func @transform_5(%arg0: i32) -> (i32, i32, i32, i32) {
    %c0_i32 = arith.constant 0 : i32
    %c0_i32_0 = arith.constant 0 : i32
    %c0_i32_1 = arith.constant 0 : i32
    %c0_i32_2 = arith.constant 0 : i32
    return %arg0, %c0_i32, %c0_i32_0, %c0_i32_1 : i32, i32, i32, i32
  }
  func.func @transform_6(%arg0: i32) -> (i32, i32) {
    %c0_i32 = arith.constant 0 : i32
    %c0_i32_0 = arith.constant 0 : i32
    %c0_i32_1 = arith.constant 0 : i32
    return %c0_i32, %c0_i32_0 : i32, i32
  }
  func.func @transform_7(%arg0: i32) -> (i32, i32) {
    %c0_i32 = arith.constant 0 : i32
    %c0_i32_0 = arith.constant 0 : i32
    %c0_i32_1 = arith.constant 0 : i32
    return %c0_i32, %c0_i32_0 : i32, i32
  }
  func.func @transform_8(%arg0: i32) -> (i32, i32) {
    %c0_i32 = arith.constant 0 : i32
    %c0_i32_0 = arith.constant 0 : i32
    %c0_i32_1 = arith.constant 0 : i32
    return %c0_i32, %c0_i32_0 : i32, i32
  }
  func.func @transform_9(%arg0: i32) -> (i32, i32) {
    %c0_i32 = arith.constant 0 : i32
    %c0_i32_0 = arith.constant 0 : i32
    %c0_i32_1 = arith.constant 0 : i32
    return %c0_i32, %c0_i32_0 : i32, i32
  }
  func.func @transform_10(%arg0: i32) -> (i32, i32) {
    %c0_i32 = arith.constant 0 : i32
    %c0_i32_0 = arith.constant 0 : i32
    %c0_i32_1 = arith.constant 0 : i32
    return %c0_i32, %c0_i32_0 : i32, i32
  }
  func.func @transform_11(%arg0: i32) -> (i32, i32) {
    %c0_i32 = arith.constant 0 : i32
    %c0_i32_0 = arith.constant 0 : i32
    %c0_i32_1 = arith.constant 0 : i32
    return %c0_i32, %c0_i32_0 : i32, i32
  }
  func.func @transform_12(%arg0: i32) -> (i32, i32) {
    %c0_i32 = arith.constant 0 : i32
    %c0_i32_0 = arith.constant 0 : i32
    %c0_i32_1 = arith.constant 0 : i32
    return %c0_i32, %c0_i32_0 : i32, i32
  }
  func.func @transform_13(%arg0: i32) -> (i32, i32) {
    %c0_i32 = arith.constant 0 : i32
    %c0_i32_0 = arith.constant 0 : i32
    %c0_i32_1 = arith.constant 0 : i32
    return %c0_i32, %c0_i32_0 : i32, i32
  }
  func.func @transform_14(%arg0: i32) -> (i32, i32) {
    %c0_i32 = arith.constant 0 : i32
    %c0_i32_0 = arith.constant 0 : i32
    %c0_i32_1 = arith.constant 0 : i32
    return %c0_i32, %c0_i32_0 : i32, i32
  }
  func.func @transform_15(%arg0: i32) -> (i32, i32) {
    %c0_i32 = arith.constant 0 : i32
    %c0_i32_0 = arith.constant 0 : i32
    %c0_i32_1 = arith.constant 0 : i32
    return %c0_i32, %c0_i32_0 : i32, i32
  }
  func.func @transform_16(%arg0: i32) -> (i32, i32) {
    %c0_i32 = arith.constant 0 : i32
    %c0_i32_0 = arith.constant 0 : i32
    %c0_i32_1 = arith.constant 0 : i32
    return %c0_i32, %c0_i32_0 : i32, i32
  }
  func.func @transform_17(%arg0: i32) -> (i32, i32) {
    %c0_i32 = arith.constant 0 : i32
    %c0_i32_0 = arith.constant 0 : i32
    %c0_i32_1 = arith.constant 0 : i32
    return %c0_i32, %c0_i32_0 : i32, i32
  }
  func.func @transform_18(%arg0: i32) -> (i32, i32) {
    %c0_i32 = arith.constant 0 : i32
    %c0_i32_0 = arith.constant 0 : i32
    %c0_i32_1 = arith.constant 0 : i32
    return %c0_i32, %c0_i32_0 : i32, i32
  }
  func.func @transform_19(%arg0: i32) -> (i32, i32) {
    %c0_i32 = arith.constant 0 : i32
    %c0_i32_0 = arith.constant 0 : i32
    %c0_i32_1 = arith.constant 0 : i32
    return %c0_i32, %c0_i32_0 : i32, i32
  }
  func.func @transform_20(%arg0: i32) -> (i32, i32) {
    %c0_i32 = arith.constant 0 : i32
    %c0_i32_0 = arith.constant 0 : i32
    %c0_i32_1 = arith.constant 0 : i32
    return %c0_i32, %c0_i32_0 : i32, i32
  }
  func.func @transform_21(%arg0: i32) -> (i32, i32) {
    %c0_i32 = arith.constant 0 : i32
    %c0_i32_0 = arith.constant 0 : i32
    %c0_i32_1 = arith.constant 0 : i32
    return %c0_i32, %c0_i32_0 : i32, i32
  }
  func.func @transform_22(%arg0: i32) -> (i32, i32, i32) {
    %c0_i32 = arith.constant 0 : i32
    %c0_i32_0 = arith.constant 0 : i32
    %c0_i32_1 = arith.constant 0 : i32
    return %arg0, %c0_i32, %c0_i32_0 : i32, i32, i32
  }
}

</mosaic_0001>

<bundles_post_ra>
// kernel: docre_forward.1
= control target key start
LH: loop header
LB: loop body
LE: loop exit
PB: predicated region body
PF: predicated region fallthrough
CT: control target
= control target key end

     0   :  { %s10523_s0 = inlined_call_operand.vmem [shape: bf16[2,16,16], index: 0, kind: input, shape index: {}]   ;;  %s10524_s1 = inlined_call_operand.vmem [shape: bf16[2,16,128], index: 1, kind: input, shape index: {}]   ;;  %s10525_s2 = inlined_call_operand.vmem [shape: bf16[2,16,16], index: 2, kind: input, shape index: {}]   ;;  %s10526_s3 = inlined_call_operand.vmem [shape: bf16[2,16,16], index: 3, kind: input, shape index: {}]   ;;  %s10527_s4 = inlined_call_operand.vmem [shape: bf16[2,16,16], index: 4, kind: input, shape index: {}]   ;;  %s10528_s5 = inlined_call_operand.vmem [shape: bf16[2,3,16,16], index: 5, kind: input, shape index: {}]   ;;  %s10529_s6 = inlined_call_operand.hbm [shape: bf16[128,128], index: 6, kind: input, shape index: {}]   ;;  %s10530_s7 = inlined_call_operand.hbm [shape: f32[16,128], index: 7, kind: input, shape index: {}]   ;;  %s10531_s8 = inlined_call_operand.hbm [shape: bf16[128,128], index: 8, kind: input, shape index: {}]   ;;  %s10532_s9 = inlined_call_operand.hbm [shape: f32[16,128], index: 9, kind: input, shape index: {}]   ;;  %s10533_s10 = inlined_call_operand.hbm [shape: bf16[128,128], index: 10, kind: input, shape index: {}]   ;;  %s10534_s11 = inlined_call_operand.hbm [shape: f32[16,128], index: 11, kind: input, shape index: {}]   ;;  %s10535_s12 = inlined_call_operand.vmem [shape: bf16[128,512], index: 12, kind: input, shape index: {}]   ;;  %s10536_s13 = inlined_call_operand.vmem [shape: bf16[128,512], index: 13, kind: input, shape index: {}]   ;;  %s10537_s14 = inlined_call_operand.hbm [shape: f32[16,512], index: 14, kind: input, shape index: {}]   ;;  %s10538_s15 = inlined_call_operand.hbm [shape: bf16[128,512], index: 15, kind: input, shape index: {}]   ;;  %s10539_s16 = inlined_call_operand.hbm [shape: bf16[128,512], index: 16, kind: input, shape index: {}]   ;;  %s10540_s17 = inlined_call_operand.hbm [shape: f32[16,512], index: 17, kind: input, shape index: {}]   ;;  %s10541_s18 = inlined_call_operand.hbm [shape: bf16[640,512], index: 18, kind: input, shape index: {}]   ;;  %s10542_s19 = inlined_call_operand.hbm [shape: f32[16,512], index: 19, kind: input, shape index: {}]   ;;  %s10543_s20 = inlined_call_operand.hbm [shape: bf16[512,128], index: 20, kind: input, shape index: {}]   ;;  %s10544_s21 = inlined_call_operand.hbm [shape: f32[16,128], index: 21, kind: input, shape index: {}]   ;;  %s10545_s22 = inlined_call_operand.vmem [shape: f32[2,16,128], index: 22, kind: output, shape index: {}]  }
   0x1   :  { %10667 = sst [smem:[#allocation69_spill]] %s10523_s0 }
   0x2   :  { %10668 = sst [smem:[#allocation70_spill]] %s10524_s1 }
   0x3   :  { %10669 = sst [smem:[#allocation71_spill]] %s10525_s2 }
   0x4   :  { %10670 = sst [smem:[#allocation72_spill]] %s10526_s3 }
   0x5   :  { %10671 = sst [smem:[#allocation73_spill]] %s10527_s4 }
   0x6   :  { %10672 = sst [smem:[#allocation74_spill]] %s10528_s5 }
   0x7   :  { %10673 = sst [smem:[#allocation75_spill]] %s10529_s6 }
   0x8   :  { %10674 = sst [smem:[#allocation76_spill]] %s10530_s7 }
   0x9   :  { %10675 = sst [smem:[#allocation77_spill]] %s10535_s12 }
   0xa   :  { %10676 = sst [smem:[#allocation78_spill]] %s10536_s13 }
   0xb   :  { %10677 = sst [smem:[#allocation79_spill]] %s10545_s22 }
   0xc   :  { %27 = vsyncpa [#allocation3], 0 }
   0xd   :  { %28 = vsyncpa [#allocation5], 0 }
   0xe   :  { %29 = vsyncpa [#allocation8], 0 }
   0xf   :  { %30 = vsyncpa [#allocation11], 0 }
  0x10   :  { %31 = vsyncpa [#allocation14], 0 }
  0x11   :  { %32 = vsyncpa [#allocation17], 0 }
  0x12   :  { %33 = vsyncpa [#allocation20], 0 }
  0x13   :  { %34 = vsyncpa [#allocation23], 0  ;;  %s8887_s3 = smov 0  }
  0x14 LB: > { %10678 = sst [smem:[#allocation32_spill]] %s8744_s3  ;;  %s8746_s28 = smov [#allocation4]   ;;  %s8744_s3 = sphi %s8887_s3, %s40_s3  }
  0x15   : > { %s588_s29 = sshll.u32 %s8746_s28, 4  ;;  %s8893_s30 = sadd.s32 4294967295, %s8744_s3   ;;  %s8898_s29 = int_to_ptr.vmem [resolvable:$true] %s588_s29 }
  0x16   : > { %10679 = sst [smem:[#allocation33_spill]] %s8893_s30  ;;  %p6652_p0 = scmp.ge.s32.totalorder %s8744_s3, 1 }
  0x17   : > { %p563_p1 = scmp.lt.s32.totalorder %s8744_s3, 3  ;;  %p10552_p2 = scmp.eq.s32.totalorder %s8893_s30, 0 }
  0x18   : > { %s8747_s0 = smov [#allocation7]   ;;  %s8748_s5 = smov [#allocation10]  }
  0x19   : > { %p8900_p3 = pnand %p6652_p0, %p563_p1  ;;  %s614_s23 = sshll.u32 %s8747_s0, 4  ;;  %s8906_s23 = int_to_ptr.vmem [resolvable:$true] %s614_s23 }
  0x1a   : > { %s640_s24 = sshll.u32 %s8748_s5, 4  ;;  %s8749_s6 = smov [#allocation13]   ;;  %s8914_s24 = int_to_ptr.vmem [resolvable:$true] %s640_s24 }
  0x1b   : > { %s10680_s4 = scalar_select %p8900_p3, 1, 0 }
  0x1c   : > { %p7497_p4 = pneg %p8900_p3  ;;  %s8916_s25 = sshll.u32 %s8749_s6, 4  ;;  %s673_s25 = int_to_ptr.vmem [resolvable:$true] %s8916_s25 }
  0x1d   : > { %s10682_s7 = sld [smem:[#allocation76_spill]] }
  0x1e   : > { %p8910_p5 = pnand %p10552_p2, %p7497_p4 }
  0x20   : > { %p8926_p7 = pneg %p8910_p5 }
  0x23   : > { %s8314_s27 = scalar_lea.hbm %s10682_s7, 256 }
  0x24   : > { %p8315_p6 = scmp.ne.s32.totalorder %s10682_s7, %s8314_s27  ;;  %p8321_p10 = scmp.lt.u32.totalorder %s8314_s27, %s10682_s7 }
  0x26   : > { %p8317_p8 = pnand %p8926_p7, %p8315_p6 }
  0x28   : > { %p8318_p9 = pneg %p8317_p8 }
  0x2a   : > { %p8323_p11 = pnand %p8321_p10, %p8318_p9 }
  0x2c   : > { %8326 = shalt.err (!%p8323_p11)
}
  0x2d   : > { %s8327_s26 = scalar_lea.vmem %s8898_s29, 256  ;;  %p8335_p1 = scmp.lt.s32.totalorder %s8898_s29, %s8898_s29 }
  0x2e   : > { %p8328_p12 = scmp.ne.s32.totalorder %s8898_s29, %s8327_s26  ;;  %p8336_p4 = scmp.lt.s32.totalorder %s8327_s26, %s8327_s26 }
  0x30   : > { %p8330_p13 = pnand %p8328_p12, %p8926_p7  ;;  %p8337_p6 = por %p8336_p4, %p8335_p1 }
  0x32   : > { %p8331_p0 = pneg %p8330_p13 }
  0x34   : > { %p8338_p8 = pnand %p8337_p6, %p8331_p0 }
  0x36   : > { %8341 = shalt.err (!%p8338_p8)
}
  0x37   : > { %s10554_s2 = smov 128   ;;  %s10555_s27 = smov 8  }
  0x38   : > { %7503 = dma.hbm_to_vmem [thread:$0]  (!%p8910_p5), %s10682_s7, 256, %s8898_s29, [#allocation5], %s10554_s2, %s10554_s2, %s10555_s27  }
  0x39   : > { %s8342_s26 = scalar_lea.hbm %s10532_s9, 256 }
  0x3a   : > { %p8343_p9 = scmp.ne.s32.totalorder %s10532_s9, %s8342_s26  ;;  %p8349_p12 = scmp.lt.u32.totalorder %s8342_s26, %s10532_s9 }
  0x3c   : > { %p8345_p10 = pnand %p8343_p9, %p8926_p7 }
  0x3e   : > { %p8346_p11 = pneg %p8345_p10 }
  0x40   : > { %p8351_p13 = pnand %p8349_p12, %p8346_p11 }
  0x42   : > { %8354 = shalt.err (!%p8351_p13)
}
  0x43   : > { %s8355_s29 = scalar_lea.vmem %s8906_s23, 256  ;;  %p8363_p6 = scmp.lt.s32.totalorder %s8906_s23, %s8906_s23 }
  0x44   : > { %p8356_p0 = scmp.ne.s32.totalorder %s8906_s23, %s8355_s29  ;;  %p8364_p8 = scmp.lt.s32.totalorder %s8355_s29, %s8355_s29 }
  0x46   : > { %p8358_p1 = pnand %p8356_p0, %p8926_p7  ;;  %p8365_p9 = por %p8364_p8, %p8363_p6 }
  0x48   : > { %p8359_p4 = pneg %p8358_p1 }
  0x4a   : > { %p8366_p10 = pnand %p8365_p9, %p8359_p4 }
  0x4c   : > { %8369 = shalt.err (!%p8366_p10)
}
  0x4d   : > { %7509 = dma.hbm_to_vmem [thread:$0]  (!%p8910_p5), %s10532_s9, 256, %s8906_s23, [#allocation8], %s10554_s2, %s10554_s2, %s10555_s27  }
  0x4e   : > { %s8370_s28 = scalar_lea.hbm %s10534_s11, 256 }
  0x4f   : > { %p8371_p11 = scmp.ne.s32.totalorder %s10534_s11, %s8370_s28  ;;  %p8377_p0 = scmp.lt.u32.totalorder %s8370_s28, %s10534_s11 }
  0x51   : > { %p8373_p12 = pnand %p8371_p11, %p8926_p7 }
  0x53   : > { %p8374_p13 = pneg %p8373_p12 }
  0x55   : > { %p8379_p1 = pnand %p8377_p0, %p8374_p13 }
  0x57   : > { %8382 = shalt.err (!%p8379_p1)
}
  0x58   : > { %s8383_s23 = scalar_lea.vmem %s8914_s24, 256  ;;  %p8391_p9 = scmp.lt.s32.totalorder %s8914_s24, %s8914_s24 }
  0x59   : > { %p8384_p4 = scmp.ne.s32.totalorder %s8914_s24, %s8383_s23  ;;  %p8392_p10 = scmp.lt.s32.totalorder %s8383_s23, %s8383_s23 }
  0x5b   : > { %p8386_p6 = pnand %p8384_p4, %p8926_p7  ;;  %p8393_p11 = por %p8392_p10, %p8391_p9 }
  0x5d   : > { %p8387_p8 = pneg %p8386_p6 }
  0x5f   : > { %p8394_p12 = pnand %p8393_p11, %p8387_p8 }
  0x61   : > { %8397 = shalt.err (!%p8394_p12)
}
  0x62   : > { %7515 = dma.hbm_to_vmem [thread:$0]  (!%p8910_p5), %s10534_s11, 256, %s8914_s24, [#allocation11], %s10554_s2, %s10554_s2, %s10555_s27  }
  0x63   : > { %s8398_s30 = scalar_lea.hbm %s10538_s15, 4096 }
  0x64   : > { %p8399_p13 = scmp.ne.s32.totalorder %s10538_s15, %s8398_s30  ;;  %p8405_p4 = scmp.lt.u32.totalorder %s8398_s30, %s10538_s15 }
  0x66   : > { %p8401_p0 = pnand %p8399_p13, %p8926_p7 }
  0x68   : > { %p8402_p1 = pneg %p8401_p0 }
  0x6a   : > { %p8407_p6 = pnand %p8405_p4, %p8402_p1 }
  0x6c   : > { %8410 = shalt.err (!%p8407_p6)
}
  0x6d   : > { %s8411_s26 = scalar_lea.vmem %s673_s25, 4096  ;;  %p8419_p11 = scmp.lt.s32.totalorder %s673_s25, %s673_s25 }
  0x6e   : > { %p8412_p8 = scmp.ne.s32.totalorder %s673_s25, %s8411_s26  ;;  %p8420_p12 = scmp.lt.s32.totalorder %s8411_s26, %s8411_s26 }
  0x70   : > { %p8414_p9 = pnand %p8412_p8, %p8926_p7  ;;  %p8421_p2 = por %p8420_p12, %p8419_p11 }
  0x72   : > { %p8415_p10 = pneg %p8414_p9 }
  0x74   : > { %p8422_p3 = pnand %p8421_p2, %p8415_p10 }
  0x76   : > { %8425 = shalt.err (!%p8422_p3)
}
  0x77   : > { %s10556_s24 = smov 256   ;;  %s10558_s23 = smov 16  }
  0x78   : > { %7521 = dma.hbm_to_vmem [thread:$0]  (!%p8910_p5), %s10538_s15, 4096, %s673_s25, [#allocation14], %s10556_s24, %s10556_s24, %s10558_s23  }
  0x79   : > { %s8754_s13 = smov [#allocation16]   ;;  %s8755_s30 = smov [#allocation19]  }
  0x7a   : > { %s698_s22 = sshll.u32 %s8754_s13, 4  ;;  %s724_s28 = sshll.u32 %s8755_s30, 4  ;;  %s699_s22 = int_to_ptr.vmem [resolvable:$true] %s698_s22  ;;  %s725_s28 = int_to_ptr.vmem [resolvable:$true] %s724_s28 }
  0x7b   : > { %s8426_s6 = scalar_lea.hbm %s10540_s17, 1024 }
  0x7c   : > { %p8427_p2 = scmp.ne.s32.totalorder %s10540_s17, %s8426_s6  ;;  %p8433_p0 = scmp.lt.u32.totalorder %s8426_s6, %s10540_s17 }
  0x7e   : > { %p8429_p3 = pnand %p8427_p2, %p8926_p7 }
  0x80   : > { %p8430_p13 = pneg %p8429_p3 }
  0x82   : > { %p8435_p1 = pnand %p8433_p0, %p8430_p13 }
  0x84   : > { %8438 = shalt.err (!%p8435_p1)
}
  0x85   : > { %s8439_s25 = scalar_lea.vmem %s699_s22, 1024  ;;  %p8447_p9 = scmp.lt.s32.totalorder %s699_s22, %s699_s22 }
  0x86   : > { %p8440_p4 = scmp.ne.s32.totalorder %s699_s22, %s8439_s25  ;;  %p8448_p10 = scmp.lt.s32.totalorder %s8439_s25, %s8439_s25 }
  0x88   : > { %p8442_p6 = pnand %p8440_p4, %p8926_p7  ;;  %p8449_p11 = por %p8448_p10, %p8447_p9 }
  0x8a   : > { %p8443_p8 = pneg %p8442_p6 }
  0x8c   : > { %p8450_p12 = pnand %p8449_p11, %p8443_p8 }
  0x8e   : > { %8453 = shalt.err (!%p8450_p12)
}
  0x8f   : > { %s10560_s2 = smov 512   ;;  %s8757_s29 = smov 32  }
  0x90   : > { %7527 = dma.hbm_to_vmem [thread:$0]  (!%p8910_p5), %s10540_s17, 1024, %s699_s22, [#allocation17], %s10560_s2, %s10560_s2, %s8757_s29  }
  0x91   : > { %s8454_s30 = scalar_lea.hbm %s10542_s19, 1024 }
  0x92   : > { %p8455_p2 = scmp.ne.s32.totalorder %s10542_s19, %s8454_s30  ;;  %p8461_p0 = scmp.lt.u32.totalorder %s8454_s30, %s10542_s19 }
  0x94   : > { %p8457_p3 = pnand %p8455_p2, %p8926_p7 }
  0x96   : > { %p8458_p13 = pneg %p8457_p3 }
  0x98   : > { %p8463_p1 = pnand %p8461_p0, %p8458_p13 }
  0x9a   : > { %8466 = shalt.err (!%p8463_p1)
}
  0x9b   : > { %s8467_s25 = scalar_lea.vmem %s725_s28, 1024  ;;  %p8475_p9 = scmp.lt.s32.totalorder %s725_s28, %s725_s28 }
  0x9c   : > { %p8468_p4 = scmp.ne.s32.totalorder %s725_s28, %s8467_s25  ;;  %p8476_p10 = scmp.lt.s32.totalorder %s8467_s25, %s8467_s25 }
  0x9e   : > { %p8470_p6 = pnand %p8468_p4, %p8926_p7  ;;  %p8477_p11 = por %p8476_p10, %p8475_p9 }
  0xa0   : > { %p8471_p8 = pneg %p8470_p6 }
  0xa2   : > { %p8478_p12 = pnand %p8477_p11, %p8471_p8 }
  0xa4   : > { %8481 = shalt.err (!%p8478_p12)
}
  0xa5   : > { %7533 = dma.hbm_to_vmem [thread:$0]  (!%p8910_p5), %s10542_s19, 1024, %s725_s28, [#allocation20], %s10560_s2, %s10560_s2, %s8757_s29  }
  0xa6   : > { %s8758_s27 = smov [#allocation2]   ;;  %s10684_s0 = sld [smem:[#allocation75_spill]] }
  0xa7   : > { %s575_s12 = sshll.u32 %s8758_s27, 4  ;;  %s576_s12 = int_to_ptr.vmem [resolvable:$true] %s575_s12 }
  0xac   : > { %s8482_s5 = scalar_lea.hbm %s10684_s0, 1024 }
  0xad   : > { %p8483_p2 = scmp.ne.s32.totalorder %s10684_s0, %s8482_s5  ;;  %p8489_p0 = scmp.lt.u32.totalorder %s8482_s5, %s10684_s0 }
  0xaf   : > { %p8485_p3 = pnand %p8483_p2, %p8926_p7 }
  0xb1   : > { %p8486_p13 = pneg %p8485_p3 }
  0xb3   : > { %p8491_p1 = pnand %p8489_p0, %p8486_p13 }
  0xb5   : > { %8494 = shalt.err (!%p8491_p1)
}
  0xb6   : > { %s8495_s28 = scalar_lea.vmem %s576_s12, 1024  ;;  %p8503_p9 = scmp.lt.s32.totalorder %s576_s12, %s576_s12 }
  0xb7   : > { %p8496_p4 = scmp.ne.s32.totalorder %s576_s12, %s8495_s28  ;;  %p8504_p10 = scmp.lt.s32.totalorder %s8495_s28, %s8495_s28 }
  0xb9   : > { %p8498_p6 = pnand %p8496_p4, %p8926_p7  ;;  %p8505_p11 = por %p8504_p10, %p8503_p9 }
  0xbb   : > { %p8499_p8 = pneg %p8498_p6 }
  0xbd   : > { %p8506_p12 = pnand %p8505_p11, %p8499_p8 }
  0xbf   : > { %8509 = shalt.err (!%p8506_p12)
}
  0xc0   : > { %s10561_s22 = smov 64   ;;  %s8760_s7 = smov 4  }
  0xc1   : > { %7500 = dma.hbm_to_vmem [thread:$0]  (!%p8910_p5), %s10684_s0, 1024, %s576_s12, [#allocation3], %s10561_s22, %s10561_s22, %s8760_s7  }
  0xc2   : > { %s8761_s13 = smov [#allocation6]   ;;  %s8762_s5 = smov [#allocation9]  }
  0xc3   : > { %s601_s30 = sshll.u32 %s8761_s13, 4  ;;  %s627_s6 = sshll.u32 %s8762_s5, 4  ;;  %s602_s30 = int_to_ptr.vmem [resolvable:$true] %s601_s30  ;;  %s9087_s6 = int_to_ptr.vmem [resolvable:$true] %s627_s6 }
  0xc4   : > { %s8510_s28 = scalar_lea.hbm %s10531_s8, 1024 }
  0xc5   : > { %p8511_p2 = scmp.ne.s32.totalorder %s10531_s8, %s8510_s28  ;;  %p8517_p0 = scmp.lt.u32.totalorder %s8510_s28, %s10531_s8 }
  0xc7   : > { %p8513_p3 = pnand %p8511_p2, %p8926_p7 }
  0xc9   : > { %p8514_p13 = pneg %p8513_p3 }
  0xcb   : > { %p8519_p1 = pnand %p8517_p0, %p8514_p13 }
  0xcd   : > { %8522 = shalt.err (!%p8519_p1)
}
  0xce   : > { %s8523_s27 = scalar_lea.vmem %s602_s30, 1024  ;;  %p8531_p9 = scmp.lt.s32.totalorder %s602_s30, %s602_s30 }
  0xcf   : > { %p8524_p4 = scmp.ne.s32.totalorder %s602_s30, %s8523_s27  ;;  %p8532_p10 = scmp.lt.s32.totalorder %s8523_s27, %s8523_s27 }
  0xd1   : > { %p8526_p6 = pnand %p8524_p4, %p8926_p7  ;;  %p8533_p11 = por %p8532_p10, %p8531_p9 }
  0xd3   : > { %p8527_p8 = pneg %p8526_p6 }
  0xd5   : > { %p8534_p12 = pnand %p8533_p11, %p8527_p8 }
  0xd7   : > { %8537 = shalt.err (!%p8534_p12)
}
  0xd8   : > { %7506 = dma.hbm_to_vmem [thread:$0]  (!%p8910_p5), %s10531_s8, 1024, %s602_s30, [#allocation5], %s10561_s22, %s10561_s22, %s8760_s7  }
  0xd9   : > { %s8538_s26 = scalar_lea.hbm %s10533_s10, 1024 }
  0xda   : > { %p8539_p2 = scmp.ne.s32.totalorder %s10533_s10, %s8538_s26  ;;  %p8545_p0 = scmp.lt.u32.totalorder %s8538_s26, %s10533_s10 }
  0xdc   : > { %p8541_p3 = pnand %p8539_p2, %p8926_p7 }
  0xde   : > { %p8542_p13 = pneg %p8541_p3 }
  0xe0   : > { %p8547_p1 = pnand %p8545_p0, %p8542_p13 }
  0xe2   : > { %8550 = shalt.err (!%p8547_p1)
}
  0xe3   : > { %s8551_s30 = scalar_lea.vmem %s9087_s6, 1024  ;;  %p8559_p9 = scmp.lt.s32.totalorder %s9087_s6, %s9087_s6 }
  0xe4   : > { %p8552_p4 = scmp.ne.s32.totalorder %s9087_s6, %s8551_s30  ;;  %p8560_p10 = scmp.lt.s32.totalorder %s8551_s30, %s8551_s30 }
  0xe6   : > { %p8554_p6 = pnand %p8552_p4, %p8926_p7  ;;  %p8561_p11 = por %p8560_p10, %p8559_p9 }
  0xe8   : > { %p8555_p8 = pneg %p8554_p6 }
  0xea   : > { %p8562_p12 = pnand %p8561_p11, %p8555_p8 }
  0xec   : > { %8565 = shalt.err (!%p8562_p12)
}
  0xed   : > { %7512 = dma.hbm_to_vmem [thread:$0]  (!%p8910_p5), %s10533_s10, 1024, %s9087_s6, [#allocation8], %s10561_s22, %s10561_s22, %s8760_s7  }
  0xee   : > { %s8763_s2 = smov [#allocation12]   ;;  %s8764_s5 = smov [#allocation15]  }
  0xef   : > { %s659_s13 = sshll.u32 %s8763_s2, 4  ;;  %s685_s26 = sshll.u32 %s8764_s5, 4  ;;  %s660_s13 = int_to_ptr.vmem [resolvable:$true] %s659_s13  ;;  %s9136_s26 = int_to_ptr.vmem [resolvable:$true] %s685_s26 }
  0xf0   : > { %s8566_s24 = scalar_lea.hbm %s10537_s14, 1024 }
  0xf1   : > { %p8567_p2 = scmp.ne.s32.totalorder %s10537_s14, %s8566_s24  ;;  %p8573_p0 = scmp.lt.u32.totalorder %s8566_s24, %s10537_s14 }
  0xf3   : > { %p8569_p3 = pnand %p8567_p2, %p8926_p7 }
  0xf5   : > { %p8570_p13 = pneg %p8569_p3 }
  0xf7   : > { %p8575_p1 = pnand %p8573_p0, %p8570_p13 }
  0xf9   : > { %8578 = shalt.err (!%p8575_p1)
}
  0xfa   : > { %s8579_s23 = scalar_lea.vmem %s660_s13, 1024  ;;  %p8587_p9 = scmp.lt.s32.totalorder %s660_s13, %s660_s13 }
  0xfb   : > { %p8580_p4 = scmp.ne.s32.totalorder %s660_s13, %s8579_s23  ;;  %p8588_p10 = scmp.lt.s32.totalorder %s8579_s23, %s8579_s23 }
  0xfd   : > { %p8582_p6 = pnand %p8580_p4, %p8926_p7  ;;  %p8589_p11 = por %p8588_p10, %p8587_p9 }
  0xff   : > { %p8583_p8 = pneg %p8582_p6 }
 0x101   : > { %p8590_p12 = pnand %p8589_p11, %p8583_p8 }
 0x103   : > { %8593 = shalt.err (!%p8590_p12)
}
 0x104   : > { %s10685_s2 = smov 512   ;;  %s8594_s12 = scalar_lea.hbm %s10539_s16, 4096 }
 0x105   : > { %7518 = dma.hbm_to_vmem [thread:$0]  (!%p8910_p5), %s10537_s14, 1024, %s660_s13, [#allocation11], %s10685_s2, %s10685_s2, %s8757_s29  }
 0x106   : > { %p8595_p2 = scmp.ne.s32.totalorder %s10539_s16, %s8594_s12  ;;  %p8601_p0 = scmp.lt.u32.totalorder %s8594_s12, %s10539_s16 }
 0x108   : > { %p8597_p3 = pnand %p8595_p2, %p8926_p7 }
 0x10a   : > { %p8598_p13 = pneg %p8597_p3 }
 0x10c   : > { %p8603_p1 = pnand %p8601_p0, %p8598_p13 }
 0x10e   : > { %8606 = shalt.err (!%p8603_p1)
}
 0x10f   : > { %s8607_s29 = scalar_lea.vmem %s9136_s26, 4096  ;;  %p8615_p9 = scmp.lt.s32.totalorder %s9136_s26, %s9136_s26 }
 0x110   : > { %p8608_p4 = scmp.ne.s32.totalorder %s9136_s26, %s8607_s29  ;;  %p8616_p10 = scmp.lt.s32.totalorder %s8607_s29, %s8607_s29 }
 0x112   : > { %p8610_p6 = pnand %p8608_p4, %p8926_p7  ;;  %p8617_p11 = por %p8616_p10, %p8615_p9 }
 0x114   : > { %p8611_p8 = pneg %p8610_p6 }
 0x116   : > { %p8618_p12 = pnand %p8617_p11, %p8611_p8 }
 0x118   : > { %8621 = shalt.err (!%p8618_p12)
}
 0x119   : > { %s10686_s13 = smov 16   ;;  %s10687_s2 = smov 256  }
 0x11a   : > { %7524 = dma.hbm_to_vmem [thread:$0]  (!%p8910_p5), %s10539_s16, 4096, %s9136_s26, [#allocation14], %s10687_s2, %s10687_s2, %s10686_s13  }
 0x11b   : > { %s8765_s28 = smov [#allocation18]   ;;  %s8766_s12 = smov [#allocation21]  }
 0x11c   : > { %s711_s24 = sshll.u32 %s8765_s28, 4  ;;  %s737_s30 = sshll.u32 %s8766_s12, 4  ;;  %s712_s24 = int_to_ptr.vmem [resolvable:$true] %s711_s24  ;;  %s9185_s30 = int_to_ptr.vmem [resolvable:$true] %s737_s30 }
 0x11d   : > { %s8622_s23 = scalar_lea.hbm %s10541_s18, 20480 }
 0x11e   : > { %p8623_p2 = scmp.ne.s32.totalorder %s10541_s18, %s8622_s23  ;;  %p8629_p0 = scmp.lt.u32.totalorder %s8622_s23, %s10541_s18 }
 0x120   : > { %p8625_p3 = pnand %p8623_p2, %p8926_p7 }
 0x122   : > { %p8626_p13 = pneg %p8625_p3 }
 0x124   : > { %p8631_p1 = pnand %p8629_p0, %p8626_p13 }
 0x126   : > { %8634 = shalt.err (!%p8631_p1)
}
 0x127   : > { %s8635_s25 = scalar_lea.vmem %s712_s24, 20480  ;;  %p8643_p9 = scmp.lt.s32.totalorder %s712_s24, %s712_s24 }
 0x128   : > { %p8636_p4 = scmp.ne.s32.totalorder %s712_s24, %s8635_s25  ;;  %p8644_p10 = scmp.lt.s32.totalorder %s8635_s25, %s8635_s25 }
 0x12a   : > { %p8638_p6 = pnand %p8636_p4, %p8926_p7  ;;  %p8645_p11 = por %p8644_p10, %p8643_p9 }
 0x12c   : > { %p8639_p8 = pneg %p8638_p6 }
 0x12e   : > { %p8646_p12 = pnand %p8645_p11, %p8639_p8 }
 0x130   : > { %8649 = shalt.err (!%p8646_p12)
}
 0x131   : > { %7530 = dma.hbm_to_vmem [thread:$0]  (!%p8910_p5), %s10541_s18, 20480, %s712_s24, [#allocation17], %s10687_s2, %s10687_s2, %s10686_s13  }
 0x132   : > { %s8650_s6 = scalar_lea.hbm %s10543_s20, 4096 }
 0x133   : > { %p8651_p2 = scmp.ne.s32.totalorder %s10543_s20, %s8650_s6  ;;  %p8657_p0 = scmp.lt.u32.totalorder %s8650_s6, %s10543_s20 }
 0x135   : > { %p8653_p3 = pnand %p8651_p2, %p8926_p7 }
 0x137   : > { %p8654_p13 = pneg %p8653_p3 }
 0x139   : > { %p8659_p1 = pnand %p8657_p0, %p8654_p13 }
 0x13b   : > { %8662 = shalt.err (!%p8659_p1)
}
 0x13c   : > { %s8663_s13 = scalar_lea.vmem %s9185_s30, 4096  ;;  %p8671_p9 = scmp.lt.s32.totalorder %s9185_s30, %s9185_s30 }
 0x13d   : > { %p8664_p4 = scmp.ne.s32.totalorder %s9185_s30, %s8663_s13  ;;  %p8672_p10 = scmp.lt.s32.totalorder %s8663_s13, %s8663_s13 }
 0x13f   : > { %p8666_p6 = pnand %p8664_p4, %p8926_p7  ;;  %p8673_p11 = por %p8672_p10, %p8671_p9 }
 0x141   : > { %p8667_p8 = pneg %p8666_p6 }
 0x143   : > { %p8674_p12 = pnand %p8673_p11, %p8667_p8 }
 0x145   : > { %8677 = shalt.err (!%p8674_p12)
}
 0x146   : > { %s10688_s2 = smov 64   ;;  %s8767_s22 = smov [#allocation22]  }
 0x147   : > { %7536 = dma.hbm_to_vmem [thread:$0]  (!%p8910_p5), %s10543_s20, 4096, %s9185_s30, [#allocation20], %s10688_s2, %s10688_s2, %s8760_s7  }
 0x148   : > { %s750_s28 = sshll.u32 %s8767_s22, 4  ;;  %s8678_s6 = scalar_lea.hbm %s10544_s21, 256  ;;  %s751_s28 = int_to_ptr.vmem [resolvable:$true] %s750_s28 }
 0x149   : > { %p8679_p2 = scmp.ne.s32.totalorder %s10544_s21, %s8678_s6  ;;  %p8685_p0 = scmp.lt.u32.totalorder %s8678_s6, %s10544_s21 }
 0x14b   : > { %p8681_p3 = pnand %p8679_p2, %p8926_p7 }
 0x14d   : > { %p8682_p13 = pneg %p8681_p3 }
 0x14f   : > { %p8687_p1 = pnand %p8685_p0, %p8682_p13 }
 0x151   : > { %8690 = shalt.err (!%p8687_p1)
}
 0x152   : > { %s8691_s7 = scalar_lea.vmem %s751_s28, 256  ;;  %p8699_p9 = scmp.lt.s32.totalorder %s751_s28, %s751_s28 }
 0x153   : > { %p8692_p4 = scmp.ne.s32.totalorder %s751_s28, %s8691_s7  ;;  %p8700_p10 = scmp.lt.s32.totalorder %s8691_s7, %s8691_s7 }
 0x155   : > { %p8694_p6 = pnand %p8692_p4, %p8926_p7  ;;  %p8701_p11 = por %p8700_p10, %p8699_p9 }
 0x157   : > { %p8695_p8 = pneg %p8694_p6 }
 0x159   : > { %p8702_p12 = pnand %p8701_p11, %p8695_p8 }
 0x15b   : > { %8705 = shalt.err (!%p8702_p12)
}
 0x15c   : > { %s10689_s30 = smov 8   ;;  %s10690_s13 = smov 128  }
 0x15d   : > { %7539 = dma.hbm_to_vmem [thread:$0]  (!%p8910_p5), %s10544_s21, 256, %s751_s28, [#allocation23], %s10690_s13, %s10690_s13, %s10689_s30  }
 0x15e   : > { %p10691_p2 = scmp.ne.s32.totalorder %s10680_s4, 0 }
 0x160   : > { %814 = sbr.rel (%p10691_p2) target bundleno = 5894 (0x1706), region = 108 }
 0x167   : > { %s10692_s3 = sld [smem:[#allocation33_spill]] }
 0x16d   : > { %p10693_p7 = scmp.eq.s32.totalorder %s10692_s3, 0 }
 0x16f   : > { %8711 = dma.done.wait (%p10693_p7), [#allocation3], 1024   ;;  %p10694_p3 = pmov %p10693_p7 }
 0x171   : > { %8713 = vsyncadd (%p10694_p3), [#allocation3], 4294966272  ;;  %p10695_p13 = pmov %p10694_p3 }
 0x172   : > { %p10696_p0 = pmov %p10694_p3 }
 0x173   : > { %8715 = dma.done.wait (%p10695_p13), [#allocation5], 1280  }
 0x174   : > { %8717 = vsyncadd (%p10696_p0), [#allocation5], 4294966016  ;;  %p10697_p1 = pmov %p10696_p0 }
 0x175   : > { %p10698_p5 = pmov %p10696_p0 }
 0x176   : > { %8719 = dma.done.wait (%p10697_p1), [#allocation8], 1280  }
 0x177   : > { %8721 = vsyncadd (%p10698_p5), [#allocation8], 4294966016  ;;  %p10699_p4 = pmov %p10696_p0 }
 0x178   : > { %p10700_p6 = pmov %p10696_p0 }
 0x179   : > { %8723 = dma.done.wait (%p10699_p4), [#allocation11], 1280  }
 0x17a   : > { %8725 = vsyncadd (%p10700_p6), [#allocation11], 4294966016  ;;  %p10701_p8 = pmov %p10696_p0 }
 0x17b   : > { %p10702_p9 = pmov %p10696_p0 }
 0x17c   : > { %8727 = dma.done.wait (%p10701_p8), [#allocation14], 8192  }
 0x17d   : > { %8729 = vsyncadd (%p10702_p9), [#allocation14], 4294959104  ;;  %p10703_p10 = pmov %p10696_p0 }
 0x17e   : > { %p10704_p11 = pmov %p10696_p0 }
 0x17f   : > { %8731 = dma.done.wait (%p10703_p10), [#allocation17], 21504  }
 0x180   : > { %8733 = vsyncadd (%p10704_p11), [#allocation17], 4294945792  ;;  %p10705_p12 = pmov %p10696_p0 }
 0x181   : > { %p10706_p2 = pmov %p10696_p0 }
 0x182   : > { %8735 = dma.done.wait (%p10705_p12), [#allocation20], 5120  }
 0x183   : > { %8737 = vsyncadd (%p10706_p2), [#allocation20], 4294962176  ;;  %p10707_p7 = pmov %p10696_p0 }
 0x184   : > { %p10708_p3 = pmov %p10696_p0 }
 0x185   : > { %8739 = dma.done.wait (%p10707_p7), [#allocation23], 256  }
 0x186   : > { %8741 = vsyncadd (%p10708_p3), [#allocation23], 4294967040  ;;  %p953_p13 = scmp.lt.s32.totalorder %s10692_s3, 1  ;;  %v8768_v0 = vmov 0.0   ;;  %vm8769_vm0 = vmmov 0   ;;  %s10709_s22 = sld [smem:[#allocation70_spill]]  ;;  %v1210_v22 = vlaneseq }
 0x187   : > { %7186 = vmatprep.subr.bf16.mxu0 %v8768_v0  ;;  %7188 = vmatprep.mubr.msk.bf16.mxu0 %vm8769_vm0, %v8768_v0  ;;  %s10710_s6 = sld [smem:[#allocation69_spill]]  ;;  %vm1006_vm1 = vcmask 130048   ;;  %v7604_v3 = vld [vmem:[#allocation2] sm:$0xff]   ;;  %v7605_v4 = vld [vmem:[#allocation2 + $0x8] sm:$0xff]   ;;  %v7606_v5 = vld [vmem:[#allocation2 + $0x10] sm:$0xff]   ;;  %s10711_s7 = sld [smem:[#allocation74_spill]] }
 0x188   : > { %s10856_s3 = smov (!%p953_p13, %s10692_s3), 1  ;;  %7192 = vmatprep.subr.bf16.mxu1 %v8768_v0  ;;  %7208 = vmatprep.mubr.msk.bf16.mxu1 %vm8769_vm0, %v8768_v0  ;;  %v7607_v6 = vld [vmem:[#allocation2 + $0x18] sm:$0xff]   ;;  %v7608_v7 = vld [vmem:[#allocation2 + $0x20] sm:$0xff]   ;;  %v7609_v8 = vld [vmem:[#allocation2 + $0x28] sm:$0xff]   ;;  %s10712_s24 = sld [smem:[#allocation71_spill]]  ;;  %v9347_v23 = vshrl.u32 %v1210_v22, 7 }
 0x189   : > { %s9300_s4 = sshll.u32 %s10856_s3, 3  ;;  %7193 = vmatpush3.bf16.msra.mxu1 %v7604_v3  ;;  %s7440_s29 = smul.u32 24, %s10856_s3  ;;  %v7610_v9 = vld [vmem:[#allocation2 + $0x30] sm:$0xff]   ;;  %v7611_v10 = vld [vmem:[#allocation2 + $0x38] sm:$0xff]   ;;  %v9353_v26 = vand.u32 127, %v1210_v22  ;;  %v1158_v29 = vld [vmem:[#allocation4] sm:$0xff] }
 0x18a   : > { %7194 = vmatprep.subr.bf16.mxu1 %v8768_v0  ;;  %v9350_v24 = vadd.s32 8, %v9347_v23  ;;  %v1215_v25 = vadd.s32 32, %v9347_v23  ;;  %v8770_v28 = vmov 1.0|1.0   ;;  %v1159_v31 = vld [vmem:[#allocation4 + $0x8] sm:$0xff]  ;;  %v7613_v37 = vld [vmem:[#allocation6] sm:$0xff]  }
 0x18b   : > { %v7614_v39 = vld [vmem:[#allocation6 + $0x8] sm:$0xff]   ;;  %v7615_v40 = vld [vmem:[#allocation6 + $0x10] sm:$0xff]   ;;  %v7616_v41 = vld [vmem:[#allocation6 + $0x18] sm:$0xff]   ;;  %vm1375_vm5 = vcmp.lt.s32.totalorder %v9353_v26, 10  ;;  %s10715_s26 = sld [smem:[#allocation78_spill]] }
 0x18c   : > { %s962_s28 = scalar_lea.vmem %s10709_s22, %s9300_s4  ;;  %v1229_v27 = vadd.s32 32, %v9350_v24  ;;  %vm1244_vm2 = vcmp.eq.s32.totalorder %v9353_v26, %v1215_v25  ;;  %v7617_v42 = vld [vmem:[#allocation6 + $0x20] sm:$0xff]   ;;  %v7618_v43 = vld [vmem:[#allocation6 + $0x28] sm:$0xff]   ;;  %v7619_v44 = vld [vmem:[#allocation6 + $0x30] sm:$0xff]   ;;  %s10853_s22 = sld [smem:[#allocation79_spill]] }
 0x18d   : > { %s957_s23 = scalar_lea.vmem %s10710_s6, %s9300_s4  ;;  %v7602_v1 = vld [vmem:[%s962_s28] sm:$0xff]   ;;  %7195 = vmatpush3.bf16.msra.mxu1 %v7605_v4  ;;  %s9322_s30 = scalar_lea.vmem %s10711_s7, %s7440_s29  ;;  %v7620_v45 = vld [vmem:[#allocation6 + $0x38] sm:$0xff]   ;;  %v1392_v51 = vld [vmem:[#allocation7] sm:$0xff] }
 0x18e   : > { %v7603_v2 = vld [vmem:[%s957_s23] sm:$0xff]   ;;  %7187 = vmatpush3.bf16.msra.mxu0 %v7602_v1  ;;  %7196 = vmatprep.subr.bf16.mxu1 %v8768_v0  ;;  %s967_s1 = scalar_lea.vmem %s10712_s24, %s9300_s4  ;;  %vm1245_vm3 = vcmp.eq.s32.totalorder %v9353_v26, %v1229_v27  ;;  %v1393_v53 = vld [vmem:[#allocation7 + $0x8] sm:$0xff]  ;;  %s10713_s28 = sld [smem:[#allocation72_spill]] }
 0x18f   : > { %7212 = vmatprep.subr.bf16.mxu0 %v8768_v0  ;;  %v9340_v21 = vld [vmem:[%s967_s1] sm:$0xff]   ;;  %vm6711_vm4 = vmpackc.low %vm1245_vm3, %vm1244_vm2  ;;  %s10714_s23 = sld [smem:[#allocation73_spill]]  ;;  %s10718_s6 = sld [smem:[#allocation77_spill]] }
 0x190   : > { %s7082_s24 = sshll.u32 %s10856_s3, 4 }
 0x191   : > { %7189 = vmatmul.mubr.msk.bf16.vlgmr.msra.gmra.mrb[0].mxu0 %vm1006_vm1, %v7603_v2  ;;  %7197 = vmatpush3.bf16.msra.mxu1 %v7606_v5 }
 0x192   : > { %7214 = vmatprep.mubr.msk.bf16.mxu0 %vm8769_vm0, %v8768_v0  ;;  %7198 = vmatprep.subr.bf16.mxu1 %v8768_v0 }
 0x194   : > { %s972_s12 = scalar_lea.vmem %s10713_s28, %s9300_s4  ;;  %s987_s28 = scalar_lea.vmem %s10853_s22, %s7082_s24 }
 0x195   : > { %7199 = vmatpush3.bf16.msra.mxu1 %v7607_v6  ;;  %s977_s29 = scalar_lea.vmem %s10714_s23, %s9300_s4 }
 0x196   : > { %7200 = vmatprep.subr.bf16.mxu1 %v8768_v0 }
 0x199   : > { %7201 = vmatpush3.bf16.msra.mxu1 %v7608_v7 }
 0x19a   : > { %7202 = vmatprep.subr.bf16.mxu1 %v8768_v0 }
 0x19d   : > { %7203 = vmatpush3.bf16.msra.mxu1 %v7609_v8 }
 0x19e   : > { %7204 = vmatprep.subr.bf16.mxu1 %v8768_v0 }
 0x1a1   : > { %7205 = vmatpush3.bf16.msra.mxu1 %v7610_v9 }
 0x1a2   : > { %7206 = vmatprep.subr.bf16.mxu1 %v8768_v0 }
 0x1a5   : > { %7207 = vmatpush3.bf16.msra.mxu1 %v7611_v10 }
 0x1a6   : > { %7244 = vmatprep.subr.bf16.mxu1 %v8768_v0 }
 0x264   : > { %v9328_v11 = vpop.f32.mrb[0].mxu0 }
 0x265   : > { %v7190_v12 = vpop.f32.mrb[1].mxu0 }
 0x266   : > { %v9330_v13 = vpop.f32.mrb[2].mxu0 }
 0x267   : > { %v1051_v14 = vpack.c.bf16 %v9330_v13, %v9328_v11  ;;  %v7191_v15 = vpop.f32.mrb[3].mxu0 }
 0x269   : > { %7209 = vmatmul.mubr.bf16.vlgmr.msra.gmra.mrb[0].mxu1 %v1051_v14 }
 0x26a   : > { %7246 = vmatprep.mubr.msk.bf16.mxu1 %vm8769_vm0, %v8768_v0 }
 0x33c   : > { %v1150_v16 = vpop.f32.mrb[0].mxu1 }
 0x33d   : > { %v7210_v17 = vpop.f32.mrb[1].mxu1 }
 0x33e   : > { %v1153_v18 = vpop.f32.mrb[2].mxu1 }
 0x33f   : > { %v1157_v19 = vpack.c.bf16 %v1153_v18, %v1150_v16  ;;  %v7211_v20 = vpop.f32.mrb[3].mxu1 }
 0x341   : > { %7213 = vmatpush3.bf16.msra.mxu0 %v1157_v19 }
 0x342   : > { %7218 = vmatprep.subr.bf16.mxu0 %v8768_v0 }
 0x344   : > { %7215 = vmatmul.mubr.msk.bf16.vlgmr.msra.gmra.mrb[4].mxu0 %vm1006_vm1, %v9340_v21 }
 0x345   : > { %7220 = vmatprep.mubr.msk.bf16.mxu0 %vm8769_vm0, %v8768_v0  ;;  %7219 = vmatpush3.bf16.msk.msra.mxu0 %vm6711_vm4, %v8770_v28 }
 0x346   : > { %7224 = vmatprep.subr.bf16.mxu0 %v8768_v0 }
 0x417   : > { %v1202_v30 = vpop.f32.mrb[4].mxu0 }
 0x418   : > { %v7216_v32 = vpop.f32.mrb[5].mxu0  ;;  %v1203_v34 = vadd.f32 %v1202_v30, %v1158_v29 }
 0x419   : > { %v1205_v33 = vpop.f32.mrb[6].mxu0  ;;  %v7621_v32 = vld [vmem:[#allocation9] sm:$0xff]  }
 0x41a   : > { %v1206_v35 = vadd.f32 %v1205_v33, %v1159_v31  ;;  %v7217_v36 = vpop.f32.mrb[7].mxu0 }
 0x41b   : > { %v7624_v36 = vld [vmem:[#allocation9 + $0x18] sm:$0xff]  }
 0x41c   : > { %v1209_v38 = vpack.c.bf16 %v1206_v35, %v1203_v34  ;;  %v7622_v34 = vld [vmem:[#allocation9 + $0x8] sm:$0xff]   ;;  %v7623_v35 = vld [vmem:[#allocation9 + $0x10] sm:$0xff]  }
 0x41e   : > { %7221 = vmatmul.mubr.bf16.vlgmr.msra.gmra.mrb[8].mxu0 %v1209_v38 }
 0x41f   : > { %7225 = vmatpush3.bf16.msra.mxu0 %v7613_v37  ;;  %7240 = vmatprep.mubr.msk.bf16.mxu0 %vm8769_vm0, %v8768_v0  ;;  %v7625_v37 = vld [vmem:[#allocation9 + $0x20] sm:$0xff]  }
 0x420   : > { %7226 = vmatprep.subr.bf16.mxu0 %v8768_v0 }
 0x423   : > { %7227 = vmatpush3.bf16.msra.mxu0 %v7614_v39  ;;  %v7627_v39 = vld [vmem:[#allocation9 + $0x30] sm:$0xff]  }
 0x424   : > { %7228 = vmatprep.subr.bf16.mxu0 %v8768_v0 }
 0x427   : > { %7229 = vmatpush3.bf16.msra.mxu0 %v7615_v40  ;;  %v1217_v40 = vadd.s32 48, %v9347_v23 }
 0x428   : > { %7230 = vmatprep.subr.bf16.mxu0 %v8768_v0 }
 0x429   : > { %vm1660_vm6 = vcmp.eq.s32.totalorder %v9353_v26, %v1217_v40 }
 0x42b   : > { %7231 = vmatpush3.bf16.msra.mxu0 %v7616_v41  ;;  %v1645_v41 = vadd.s32 48, %v9350_v24 }
 0x42c   : > { %7232 = vmatprep.subr.bf16.mxu0 %v8768_v0 }
 0x42d   : > { %vm1661_vm7 = vcmp.eq.s32.totalorder %v9353_v26, %v1645_v41 }
 0x42e   : > { %vm6725_vm8 = vmpackc.low %vm1661_vm7, %vm1660_vm6 }
 0x42f   : > { %7233 = vmatpush3.bf16.msra.mxu0 %v7617_v42  ;;  %v7628_v42 = vld [vmem:[#allocation9 + $0x38] sm:$0xff]  }
 0x430   : > { %7234 = vmatprep.subr.bf16.mxu0 %v8768_v0 }
 0x433   : > { %7235 = vmatpush3.bf16.msra.mxu0 %v7618_v43 }
 0x434   : > { %7236 = vmatprep.subr.bf16.mxu0 %v8768_v0 }
 0x437   : > { %7237 = vmatpush3.bf16.msra.mxu0 %v7619_v44 }
 0x438   : > { %7238 = vmatprep.subr.bf16.mxu0 %v8768_v0 }
 0x43b   : > { %7239 = vmatpush3.bf16.msra.mxu0 %v7620_v45 }
 0x43c   : > { %7262 = vmatprep.subr.bf16.mxu0 %v8768_v0 }
 0x43e   : > { %7241 = vmatmul.mubr.bf16.vlgmr.msra.gmra.mrb[12].mxu0 %v1209_v38 }
 0x43f   : > { %7264 = vmatprep.mubr.msk.bf16.mxu0 %vm8769_vm0, %v8768_v0  ;;  %7263 = vmatpush3.bf16.msk.msra.mxu0 %vm6725_vm8, %v8770_v28 }
 0x440   : > { %7288 = vmatprep.subr.bf16.mxu0 %v8768_v0 }
 0x511   : > { %v1476_v46 = vpop.f32.mrb[12].mxu0 }
 0x512   : > { %v7242_v47 = vpop.f32.mrb[13].mxu0 }
 0x513   : > { %v1479_v48 = vpop.f32.mrb[14].mxu0 }
 0x514   : > { %v1483_v49 = vpack.c.bf16 %v1479_v48, %v1476_v46  ;;  %v7243_v50 = vpop.f32.mrb[15].mxu0 }
 0x516   : > { %7245 = vmatpush3.bf16.msra.mxu1 %v1483_v49 }
 0x517   : > { %7250 = vmatprep.subr.bf16.mxu1 %v8768_v0 }
 0x519   : > { %7247 = vmatmul.mubr.msk.bf16.vlgmr.msra.gmra.mrb[4].mxu1 %vm1006_vm1, %v9340_v21 }
 0x51a   : > { %7252 = vmatprep.mubr.msk.bf16.mxu1 %vm8769_vm0, %v8768_v0 }
 0x5ec   : > { %v1518_v52 = vpop.f32.mrb[4].mxu1 }
 0x5ed   : > { %v9377_v54 = vadd.f32 %v1518_v52, %v1392_v51  ;;  %v7248_v55 = vpop.f32.mrb[5].mxu1 }
 0x5ee   : > { %v1521_v56 = vpop.f32.mrb[6].mxu1 }
 0x5ef   : > { %v9379_v57 = vadd.f32 %v1521_v56, %v1393_v53  ;;  %v7249_v58 = vpop.f32.mrb[7].mxu1  ;;  %v1525_v59 = vmax.f32 %v9377_v54, 0.0  ;;  %v1791_v54 = vld [vmem:[#allocation10] sm:$0xff] }
 0x5f1   : > { %v1526_v60 = vmax.f32 %v9379_v57, 0.0 }
 0x5f3   : > { %v1527_v61 = vpack.c.bf16 %v1526_v60, %v1525_v59 }
 0x5f5   : > { %7251 = vmatpush3.bf16.xpose.msra.mxu1 %v1527_v61 }
 0x5f6   : > { %7256 = vmatprep.subr.bf16.mxu1 %v8768_v0 }
 0x5fc   : > { %7253 = vmatmul.mubr.bf16.vlgmr.msra.gmra.mrb[8].mxu1 %v1209_v38  ;;  %v7626_v38 = vld [vmem:[#allocation9 + $0x28] sm:$0xff]  }
 0x5fd   : > { %7257 = vmatpush3.bf16.msra.mxu1 %v1527_v61  ;;  %7258 = vmatprep.mubr.msk.bf16.mxu1 %vm8769_vm0, %v8768_v0 }
 0x5fe   : > { %7268 = vmatprep.subr.bf16.mxu1 %v8768_v0 }
 0x6cf   : > { %v1562_v62 = vpop.f32.mrb[8].mxu1 }
 0x6d0   : > { %v1569_v63 = vmul.f32 0.25, %v1562_v62  ;;  %v7254_v1 = vpop.f32.mrb[9].mxu1 }
 0x6d1   : > { %v1565_v2 = vpop.f32.mrb[10].mxu1 }
 0x6d2   : > { %v1570_v3 = vmul.f32 0.25, %v1565_v2  ;;  %v7255_v4 = vpop.f32.mrb[11].mxu1  ;;  %v1571_v5 = vsel %vm1375_vm5, %v1569_v63, -1e+30 }
 0x6d3   : > { %v1573_v6 = vsel %vm1006_vm1, %v1571_v5, -inf }
 0x6d4   : > { %1574 = vmax.xlane.f32.xlu0 %v1573_v6  ;;  %v1572_v7 = vsel %vm1375_vm5, %v1570_v3, -1e+30 }
 0x6d5   : > { %v1576_v8 = vsel %vm1006_vm1, %v1572_v7, -inf }
 0x6d8   : > { %1577 = vmax.xlane.f32.xlu0 %v1576_v8 }
 0x761   : > { %v1575_v9 = vpop.xlane.xlu0 %1574 }
 0x762   : > { %v1579_v10 = vsub.f32 %v1571_v5, %v1575_v9 }
 0x764   : > { %v1581_v12 = vmul.f32 1.442695, %v1579_v10 }
 0x765   : > { %v1578_v14 = vpop.xlane.xlu0 %1577 }
 0x766   : > { %8098 = vpow2.f32 %v1581_v12  ;;  %v1580_v15 = vsub.f32 %v1572_v7, %v1578_v14 }
 0x768   : > { %v1583_v16 = vmul.f32 1.442695, %v1580_v15 }
 0x76a   : > { %8100 = vpow2.f32 %v1583_v16 }
 0x770   : > { %v8099_v17 = vpop.eup %8098 }
 0x771   : > { %v1585_v18 = vsel %vm1006_vm1, %v8099_v17, 0.0 }
 0x772   : > { %1586 = vadd.xlane.f32.xlu1 %v1585_v18 }
 0x774   : > { %v8101_v19 = vpop.eup %8100 }
 0x775   : > { %v1588_v20 = vsel %vm1006_vm1, %v8101_v19, 0.0 }
 0x776   : > { %1589 = vadd.xlane.f32.xlu1 %v1588_v20 }
 0x7ff   : > { %v1587_v22 = vpop.xlane.xlu1 %1586 }
 0x800   : > { %8102 = vrcp.f32 %v1587_v22 }
 0x803   : > { %v1590_v25 = vpop.xlane.xlu1 %1589 }
 0x804   : > { %8104 = vrcp.f32 %v1590_v25 }
 0x80a   : > { %v8103_v27 = vpop.eup %8102 }
 0x80b   : > { %v1593_v30 = vmul.f32 %v8103_v27, %v8099_v17 }
 0x80e   : > { %v8105_v29 = vpop.eup %8104 }
 0x80f   : > { %v1594_v31 = vmul.f32 %v8105_v29, %v8101_v19 }
 0x811   : > { %v1595_v33 = vpack.c.bf16 %v1594_v31, %v1593_v30 }
 0x813   : > { %7259 = vmatmul.mubr.msk.bf16.vlgmr.msra.gmra.mrb[12].mxu1 %vm1006_vm1, %v1595_v33 }
 0x814   : > { %7269 = vmatpush3.bf16.msra.mxu1 %v7621_v32  ;;  %7284 = vmatprep.mubr.msk.bf16.mxu1 %vm8769_vm0, %v8768_v0 }
 0x815   : > { %7270 = vmatprep.subr.bf16.mxu1 %v8768_v0 }
 0x818   : > { %7271 = vmatpush3.bf16.msra.mxu1 %v7622_v34 }
 0x819   : > { %7272 = vmatprep.subr.bf16.mxu1 %v8768_v0 }
 0x81c   : > { %7273 = vmatpush3.bf16.msra.mxu1 %v7623_v35 }
 0x81d   : > { %7274 = vmatprep.subr.bf16.mxu1 %v8768_v0 }
 0x820   : > { %7275 = vmatpush3.bf16.msra.mxu1 %v7624_v36 }
 0x821   : > { %7276 = vmatprep.subr.bf16.mxu1 %v8768_v0 }
 0x824   : > { %7277 = vmatpush3.bf16.msra.mxu1 %v7625_v37 }
 0x825   : > { %7278 = vmatprep.subr.bf16.mxu1 %v8768_v0 }
 0x828   : > { %7279 = vmatpush3.bf16.msra.mxu1 %v7626_v38  ;;  %v1219_v38 = vadd.s32 64, %v9347_v23 }
 0x829   : > { %7280 = vmatprep.subr.bf16.mxu1 %v8768_v0 }
 0x82a   : > { %vm2059_vm9 = vcmp.eq.s32.totalorder %v9353_v26, %v1219_v38  ;;  %v9730_v38 = vld [vmem:[%s10718_s6 + $0x40] ss:$16 sps:$4 sm:$0xff]  }
 0x82c   : > { %7281 = vmatpush3.bf16.msra.mxu1 %v7627_v39  ;;  %v2044_v39 = vadd.s32 64, %v9350_v24 }
 0x82d   : > { %7282 = vmatprep.subr.bf16.mxu1 %v8768_v0 }
 0x82e   : > { %vm2060_vm10 = vcmp.eq.s32.totalorder %v9353_v26, %v2044_v39  ;;  %v9736_v39 = vld [vmem:[%s10718_s6 + $0x64] ss:$16 sps:$4 sm:$0xff]  }
 0x82f   : > { %vm6739_vm11 = vmpackc.low %vm2060_vm10, %vm2059_vm9  ;;  %10722 = vst [vmem:[#allocation39_spill] sm:$0xff] %v9736_v39 }
 0x830   : > { %7283 = vmatpush3.bf16.msra.mxu1 %v7628_v42 }
 0x831   : > { %7312 = vmatprep.subr.bf16.mxu1 %v8768_v0 }
 0x8e6   : > { %v1633_v43 = vpop.f32.mrb[12].mxu1 }
 0x8e7   : > { %v1640_v44 = vmax.f32 %v1633_v43, 0.0  ;;  %v7260_v45 = vpop.f32.mrb[13].mxu1 }
 0x8e8   : > { %v1636_v46 = vpop.f32.mrb[14].mxu1 }
 0x8e9   : > { %v1641_v47 = vmax.f32 %v1636_v46, 0.0  ;;  %v7261_v48 = vpop.f32.mrb[15].mxu1  ;;  %v1642_v49 = vadd.f32 %v1640_v44, %v1525_v59  ;;  %v1792_v59 = vld [vmem:[#allocation10 + $0x8] sm:$0xff] }
 0x8eb   : > { %v1643_v50 = vadd.f32 %v1641_v47, %v1526_v60 }
 0x8ed   : > { %v1644_v51 = vpack.c.bf16 %v1643_v50, %v1642_v49 }
 0x8ef   : > { %7265 = vmatmul.mubr.bf16.vlgmr.msra.gmra.mrb[8].mxu0 %v1644_v51  ;;  %7285 = vmatmul.mubr.bf16.vlgmr.msra.gmra.mrb[16].mxu1 %v1644_v51 }
 0x8f0   : > { %7290 = vmatprep.mubr.msk.bf16.mxu0 %vm8769_vm0, %v8768_v0  ;;  %7314 = vmatprep.mubr.msk.bf16.mxu1 %vm8769_vm0, %v8768_v0 }
 0x9c2   : > { %v1875_v52 = vpop.f32.mrb[16].mxu1 }
 0x9c3   : > { %v7286_v53 = vpop.f32.mrb[17].mxu1 }
 0x9c4   : > { %v1878_v55 = vpop.f32.mrb[18].mxu1  ;;  %v7630_v53 = vld [vmem:[%s977_s29] sm:$0xff]  }
 0x9c5   : > { %v1882_v56 = vpack.c.bf16 %v1878_v55, %v1875_v52  ;;  %v7287_v58 = vpop.f32.mrb[19].mxu1  ;;  %v7629_v52 = vld [vmem:[%s972_s12] sm:$0xff]   ;;  %v7638_v55 = vld [vmem:[%s9322_s30 + $0x8] sm:$0xff]  }
 0x9c6   : > { %v9494_v58 = vld [vmem:[%s10715_s26 + $0xc] ss:$16 sps:$4 sm:$0xff]  }
 0x9c7   : > { %7289 = vmatpush3.bf16.msra.mxu0 %v1882_v56  ;;  %v9489_v56 = vld [vmem:[%s10715_s26] ss:$16 sps:$4 sm:$0xff]   ;;  %10717 = vst [vmem:[#allocation35_spill] sm:$0xff] %v9494_v58 }
 0x9c8   : > { %7294 = vmatprep.subr.bf16.mxu0 %v8768_v0 }
 0x9ca   : > { %7291 = vmatmul.mubr.msk.bf16.vlgmr.msra.gmra.mrb[16].mxu0 %vm1006_vm1, %v9340_v21 }
 0x9cb   : > { %7296 = vmatprep.mubr.msk.bf16.mxu0 %vm8769_vm0, %v8768_v0 }
 0xa9d   : > { %v1917_v57 = vpop.f32.mrb[16].mxu0 }
 0xa9e   : > { %v9430_v60 = vadd.f32 %v1917_v57, %v1791_v54  ;;  %v7292_v61 = vpop.f32.mrb[17].mxu0  ;;  %v9499_v54 = vld [vmem:[%s10715_s26 + $0x24] ss:$16 sps:$4 sm:$0xff]   ;;  %v9510_v57 = vld [vmem:[%s10715_s26 + $0x20] ss:$16 sps:$4 sm:$0xff]  }
 0xa9f   : > { %v1920_v62 = vpop.f32.mrb[18].mxu0  ;;  %v9523_v61 = vld [vmem:[%s10715_s26 + $0x8] ss:$16 sps:$4 sm:$0xff]  }
 0xaa0   : > { %v9432_v63 = vadd.f32 %v1920_v62, %v1792_v59  ;;  %v7293_v1 = vpop.f32.mrb[19].mxu0  ;;  %v1924_v2 = vmax.f32 %v9430_v60, 0.0  ;;  %v9516_v59 = vld [vmem:[%s10715_s26 + $0x44] ss:$16 sps:$4 sm:$0xff]   ;;  %v10562_v60 = vmov 0  }
 0xaa1   : > { %v9528_v62 = vld [vmem:[%s10715_s26 + $0x2c] ss:$16 sps:$4 sm:$0xff]   ;;  %v9540_v1 = vld [vmem:[%s10715_s26 + $0x64] ss:$16 sps:$4 sm:$0xff]  }
 0xaa2   : > { %v1925_v3 = vmax.f32 %v9432_v63, 0.0  ;;  %v9534_v63 = vld [vmem:[%s10715_s26 + $0x40] ss:$16 sps:$4 sm:$0xff]  }
 0xaa4   : > { %v1926_v4 = vpack.c.bf16 %v1925_v3, %v1924_v2 }
 0xaa6   : > { %7295 = vmatpush3.bf16.xpose.msra.mxu0 %v1926_v4 }
 0xaa7   : > { %7300 = vmatprep.subr.bf16.mxu0 %v8768_v0 }
 0xaad   : > { %7297 = vmatmul.mubr.bf16.vlgmr.msra.gmra.mrb[20].mxu0 %v1644_v51 }
 0xaae   : > { %7301 = vmatpush3.bf16.msra.mxu0 %v1926_v4  ;;  %7302 = vmatprep.mubr.msk.bf16.mxu0 %vm8769_vm0, %v8768_v0  ;;  %v9560_v4 = vld [vmem:[%s10715_s26 + $0x60] ss:$16 sps:$4 sm:$0xff]  }
 0xaaf   : > { %7306 = vmatprep.subr.bf16.mxu0 %v8768_v0 }
 0xb80   : > { %v1961_v21 = vpop.f32.mrb[20].mxu0 }
 0xb81   : > { %v1968_v5 = vmul.f32 0.25, %v1961_v21  ;;  %v7298_v6 = vpop.f32.mrb[21].mxu0  ;;  %v9566_v21 = vld [vmem:[%s10715_s26 + $0x84] ss:$16 sps:$4 sm:$0xff]  }
 0xb82   : > { %v1964_v7 = vpop.f32.mrb[22].mxu0  ;;  %v9578_v6 = vld [vmem:[%s10715_s26 + $0x6c] ss:$16 sps:$4 sm:$0xff]  }
 0xb83   : > { %v1969_v8 = vmul.f32 0.25, %v1964_v7  ;;  %v7299_v9 = vpop.f32.mrb[23].mxu0  ;;  %v1970_v10 = vsel %vm1375_vm5, %v1968_v5, -1e+30  ;;  %v9572_v5 = vld [vmem:[%s10715_s26 + $0x48] ss:$16 sps:$4 sm:$0xff]  }
 0xb84   : > { %v1972_v12 = vsel %vm1006_vm1, %v1970_v10, -inf  ;;  %v9584_v7 = vld [vmem:[%s10715_s26 + $0x80] ss:$16 sps:$4 sm:$0xff]   ;;  %v9596_v9 = vld [vmem:[%s10715_s26 + $0x68] ss:$16 sps:$4 sm:$0xff]  }
 0xb85   : > { %1973 = vmax.xlane.f32.xlu0 %v1972_v12  ;;  %v1971_v14 = vsel %vm1375_vm5, %v1969_v8, -1e+30  ;;  %v9590_v8 = vld [vmem:[%s10715_s26 + $0xa4] ss:$16 sps:$4 sm:$0xff]   ;;  %v9608_v12 = vld [vmem:[%s10715_s26 + $0xa0] ss:$16 sps:$4 sm:$0xff]  }
 0xb86   : > { %v1975_v15 = vsel %vm1006_vm1, %v1971_v14, -inf }
 0xb87   : > { %1976 = vmax.xlane.f32.xlu1 %v1975_v15  ;;  %v9620_v15 = vld [vmem:[%s10715_s26 + $0x88] ss:$16 sps:$4 sm:$0xff]  }
 0xc12   : > { %v1974_v16 = vpop.xlane.xlu0 %1973 }
 0xc13   : > { %v1978_v17 = vsub.f32 %v1970_v10, %v1974_v16  ;;  %v9602_v10 = vld [vmem:[%s10715_s26 + $0x8c] ss:$16 sps:$4 sm:$0xff]  }
 0xc14   : > { %v1977_v18 = vpop.xlane.xlu1 %1976  ;;  %v9626_v16 = vld [vmem:[%s10715_s26 + $0xac] ss:$16 sps:$4 sm:$0xff]  }
 0xc15   : > { %v1980_v19 = vmul.f32 1.442695, %v1978_v17  ;;  %v1979_v20 = vsub.f32 %v1971_v14, %v1977_v18  ;;  %v9614_v14 = vld [vmem:[%s10715_s26 + $0xc4] ss:$16 sps:$4 sm:$0xff]   ;;  %v9632_v17 = vld [vmem:[%s10715_s26 + $0xc0] ss:$16 sps:$4 sm:$0xff]  }
 0xc16   : > { %v9638_v18 = vld [vmem:[%s10715_s26 + $0xe4] ss:$16 sps:$4 sm:$0xff]  }
 0xc17   : > { %8106 = vpow2.f32 %v1980_v19  ;;  %v1982_v22 = vmul.f32 1.442695, %v1979_v20  ;;  %v9644_v19 = vld [vmem:[%s10715_s26 + $0xa8] ss:$16 sps:$4 sm:$0xff]   ;;  %v9650_v20 = vld [vmem:[%s10715_s26 + $0xcc] ss:$16 sps:$4 sm:$0xff]  }
 0xc19   : > { %8108 = vpow2.f32 %v1982_v22  ;;  %v9656_v22 = vld [vmem:[%s10715_s26 + $0xe0] ss:$16 sps:$4 sm:$0xff]  }
 0xc21   : > { %v8107_v25 = vpop.eup %8106 }
 0xc22   : > { %v1984_v27 = vsel %vm1006_vm1, %v8107_v25, 0.0 }
 0xc23   : > { %v8109_v29 = vpop.eup %8108  ;;  %1985 = vadd.xlane.f32.xlu0 %v1984_v27  ;;  %v9668_v27 = vld [vmem:[%s10715_s26 + $0xc8] ss:$16 sps:$4 sm:$0xff]  }
 0xc24   : > { %v1987_v30 = vsel %vm1006_vm1, %v8109_v29, 0.0 }
 0xc25   : > { %1988 = vadd.xlane.f32.xlu1 %v1987_v30  ;;  %v9680_v30 = vld [vmem:[%s10718_s6] ss:$16 sps:$4 sm:$0xff]  }
 0xcb0   : > { %v1986_v31 = vpop.xlane.xlu0 %1985 }
 0xcb1   : > { %8110 = vrcp.f32 %v1986_v31  ;;  %v9686_v31 = vld [vmem:[%s10718_s6 + $0x24] ss:$16 sps:$4 sm:$0xff]  }
 0xcb2   : > { %v1989_v32 = vpop.xlane.xlu1 %1988 }
 0xcb3   : > { %8112 = vrcp.f32 %v1989_v32  ;;  %v9692_v32 = vld [vmem:[%s10715_s26 + $0xe8] ss:$16 sps:$4 sm:$0xff]  }
 0xcb4   : > { %10720 = vst [vmem:[#allocation37_spill] sm:$0xff] %v9692_v32 }
 0xcbb   : > { %v8111_v33 = vpop.eup %8110 }
 0xcbc   : > { %v1992_v35 = vmul.f32 %v8111_v33, %v8107_v25  ;;  %v9662_v25 = vld [vmem:[%s10718_s6 + $0x4] ss:$16 sps:$4 sm:$0xff]   ;;  %v9699_v33 = vld [vmem:[%s10718_s6 + $0xc] ss:$16 sps:$4 sm:$0xff]  }
 0xcbd   : > { %v8113_v34 = vpop.eup %8112  ;;  %10719 = vst [vmem:[#allocation36_spill] sm:$0xff] %v9662_v25  ;;  %10721 = vst [vmem:[#allocation38_spill] sm:$0xff] %v9699_v33 }
 0xcbe   : > { %v1993_v36 = vmul.f32 %v8113_v34, %v8109_v29  ;;  %v9674_v29 = vld [vmem:[%s10715_s26 + $0xec] ss:$16 sps:$4 sm:$0xff]   ;;  %v9705_v34 = vld [vmem:[%s10718_s6 + $0x20] ss:$16 sps:$4 sm:$0xff]  }
 0xcc0   : > { %v1994_v37 = vpack.c.bf16 %v1993_v36, %v1992_v35  ;;  %v9711_v35 = vld [vmem:[%s10718_s6 + $0x44] ss:$16 sps:$4 sm:$0xff]   ;;  %v9718_v36 = vld [vmem:[%s10718_s6 + $0x8] ss:$16 sps:$4 sm:$0xff]  }
 0xcc2   : > { %7303 = vmatmul.mubr.msk.bf16.vlgmr.msra.gmra.mrb[24].mxu0 %vm1006_vm1, %v1994_v37  ;;  %v9724_v37 = vld [vmem:[%s10718_s6 + $0x2c] ss:$16 sps:$4 sm:$0xff]  }
 0xcc3   : > { %7308 = vmatprep.mubr.msk.bf16.mxu0 %vm8769_vm0, %v8768_v0  ;;  %7307 = vmatpush3.bf16.msk.msra.mxu0 %vm6739_vm11, %v8770_v28 }
 0xcc4   : > { %7318 = vmatprep.subr.bf16.mxu0 %v8768_v0 }
 0xd95   : > { %v2032_v40 = vpop.f32.mrb[24].mxu0 }
 0xd96   : > { %v2039_v41 = vmax.f32 %v2032_v40, 0.0  ;;  %v7304_v42 = vpop.f32.mrb[25].mxu0  ;;  %v9743_v40 = vld [vmem:[%s10718_s6 + $0x28] ss:$16 sps:$4 sm:$0xff]  }
 0xd97   : > { %v2035_v43 = vpop.f32.mrb[26].mxu0  ;;  %v9756_v42 = vld [vmem:[%s10718_s6 + $0x60] ss:$16 sps:$4 sm:$0xff]  }
 0xd98   : > { %v2040_v44 = vmax.f32 %v2035_v43, 0.0  ;;  %v7305_v45 = vpop.f32.mrb[27].mxu0  ;;  %v2041_v23 = vadd.f32 %v2039_v41, %v1924_v2  ;;  %v9547_v2 = vld [vmem:[%s10715_s26 + $0x28] ss:$16 sps:$4 sm:$0xff]   ;;  %v9750_v41 = vld [vmem:[%s10718_s6 + $0x4c] ss:$16 sps:$4 sm:$0xff]  }
 0xd99   : > { %10723 = vst [vmem:[#allocation40_spill] sm:$0xff] %v9756_v42  ;;  %v9762_v43 = vld [vmem:[%s10718_s6 + $0x84] ss:$16 sps:$4 sm:$0xff]   ;;  %v9774_v45 = vld [vmem:[%s10718_s6 + $0x6c] ss:$16 sps:$4 sm:$0xff]  }
 0xd9a   : > { %v2042_v46 = vadd.f32 %v2040_v44, %v1925_v3  ;;  %v9554_v3 = vld [vmem:[%s10715_s26 + $0x4c] ss:$16 sps:$4 sm:$0xff]   ;;  %10724 = vst [vmem:[#allocation41_spill] sm:$0xff] %v9762_v43  ;;  %v9768_v44 = vld [vmem:[%s10718_s6 + $0x48] ss:$16 sps:$4 sm:$0xff]   ;;  %10725 = vst [vmem:[#allocation42_spill] sm:$0xff] %v9774_v45 }
 0xd9c   : > { %v2043_v24 = vpack.c.bf16 %v2042_v46, %v2041_v23  ;;  %v9780_v23 = vld [vmem:[%s10718_s6 + $0x80] ss:$16 sps:$4 sm:$0xff]   ;;  %v9786_v46 = vld [vmem:[%s10718_s6 + $0xa4] ss:$16 sps:$4 sm:$0xff]  }
 0xd9d   : > { %10726 = vst [vmem:[#allocation43_spill] sm:$0xff] %v9780_v23  ;;  %10727 = vst [vmem:[#allocation44_spill] sm:$0xff] %v9786_v46 }
 0xd9e   : > { %7309 = vmatmul.mubr.bf16.vlgmr.msra.gmra.mrb[8].mxu0 %v2043_v24  ;;  %v9792_v24 = vld [vmem:[%s10718_s6 + $0x68] ss:$16 sps:$4 sm:$0xff]  }
 0xd9f   : > { %7320 = vmatprep.mubr.msk.bf16.mxu0 %vm8769_vm0, %v8768_v0  ;;  %10728 = vst [vmem:[#allocation45_spill] sm:$0xff] %v9792_v24 }
 0xe71   : > { %v2165_v26 = vpop.f32.mrb[8].mxu0 }
 0xe72   : > { %v7342_v28 = vadd.f32 %v2165_v26, %v9328_v11  ;;  %v7310_v47 = vpop.f32.mrb[9].mxu0  ;;  %v9474_v11 = vld [vmem:[%s10715_s26 + $0x4] ss:$16 sps:$4 sm:$0xff]   ;;  %v9798_v26 = vld [vmem:[%s10718_s6 + $0x8c] ss:$16 sps:$4 sm:$0xff]  }
 0xe73   : > { %v2168_v48 = vpop.f32.mrb[10].mxu0  ;;  %10716 = vst [vmem:[#allocation34_spill] sm:$0xff] %v9474_v11  ;;  %10729 = vst [vmem:[#allocation46_spill] sm:$0xff] %v9798_v26  ;;  %v9811_v47 = vld [vmem:[%s10718_s6 + $0x88] ss:$16 sps:$4 sm:$0xff]  }
 0xe74   : > { %v7343_v49 = vadd.f32 %v2168_v48, %v9330_v13  ;;  %v7311_v50 = vpop.f32.mrb[11].mxu0  ;;  %v7631_v13 = vld [vmem:[%s9322_s30] sm:$0xff]   ;;  %10731 = vst [vmem:[#allocation48_spill] sm:$0xff] %v9811_v47  ;;  %v9817_v48 = vld [vmem:[%s10718_s6 + $0xac] ss:$16 sps:$4 sm:$0xff]  }
 0xe75   : > { %10732 = vst [vmem:[#allocation49_spill] sm:$0xff] %v9817_v48  ;;  %v9831_v50 = vld [vmem:[%s10718_s6 + $0xc4] ss:$16 sps:$4 sm:$0xff]  }
 0xe76   : > { %v2174_v51 = vpack.c.bf16 %v7343_v49, %v7342_v28  ;;  %v9804_v28 = vld [vmem:[%s10718_s6 + $0xa0] ss:$16 sps:$4 sm:$0xff]   ;;  %v9824_v49 = vld [vmem:[%s10718_s6 + $0xa8] ss:$16 sps:$4 sm:$0xff]   ;;  %10734 = vst [vmem:[#allocation51_spill] sm:$0xff] %v9831_v50 }
 0xe77   : > { %10730 = vst [vmem:[#allocation47_spill] sm:$0xff] %v9804_v28  ;;  %10733 = vst [vmem:[#allocation50_spill] sm:$0xff] %v9824_v49 }
 0xe78   : > { %7313 = vmatpush3.bf16.msra.mxu1 %v2174_v51  ;;  %7319 = vmatpush3.bf16.msra.mxu0 %v2174_v51 }
 0xe79   : > { %7324 = vmatprep.subr.bf16.mxu1 %v8768_v0  ;;  %7330 = vmatprep.subr.bf16.mxu0 %v8768_v0 }
 0xe7b   : > { %7315 = vmatmul.mubr.msk.bf16.vlgmr.msra.gmra.mrb[20].mxu1 %vm1006_vm1, %v7629_v52  ;;  %7321 = vmatmul.mubr.msk.bf16.vlgmr.msra.gmra.mrb[28].mxu0 %vm1006_vm1, %v7630_v53  ;;  %v9841_v52 = vld [vmem:[%s10718_s6 + $0xc0] ss:$16 sps:$4 sm:$0xff]   ;;  %v9846_v53 = vld [vmem:[%s10718_s6 + $0xc8] ss:$16 sps:$4 sm:$0xff]  }
 0xe7c   : > { %7325 = vmatpush3.bf16.msra.mxu1 %v2174_v51  ;;  %7331 = vmatpush3.bf16.msra.mxu0 %v2174_v51  ;;  %10736 = vst [vmem:[#allocation53_spill] sm:$0xff] %v9841_v52  ;;  %10737 = vst [vmem:[#allocation54_spill] sm:$0xff] %v9846_v53 }
 0xe7d   : > { %7326 = vmatprep.mubr.msk.bf16.mxu1 %vm8769_vm0, %v8768_v0  ;;  %7336 = vmatprep.subr.bf16.mxu1 %v8768_v0 }
 0xe7e   : > { %7332 = vmatprep.mubr.msk.bf16.mxu0 %vm8769_vm0, %v8768_v0  ;;  %2665 = vmatprep.subr.bf16.mxu0 %v9474_v11 }
 0xe83   : > { %7327 = vmatmul.mubr.msk.bf16.vlgmr.msra.gmra.mrb[24].mxu1 %vm1006_vm1, %v7631_v13  ;;  %7333 = vmatmul.mubr.msk.bf16.vlgmr.msra.gmra.mrb[32].mxu0 %vm1006_vm1, %v7638_v55  ;;  %v9855_v13 = vld [vmem:[%s10718_s6 + $0xe4] ss:$16 sps:$4 sm:$0xff]   ;;  %v9860_v55 = vld [vmem:[%s10718_s6 + $0xec] ss:$16 sps:$4 sm:$0xff]  }
 0xe84   : > { %7337 = vmatpush3.bf16.msra.mxu1 %v2174_v51  ;;  %7338 = vmatprep.mubr.msk.bf16.mxu1 %vm8769_vm0, %v8768_v0  ;;  %v7639_v0 = vld [vmem:[%s9322_s30 + $0x10] sm:$0xff]   ;;  %v9836_v51 = vld [vmem:[%s10718_s6 + $0xcc] ss:$16 sps:$4 sm:$0xff]   ;;  %10738 = vst [vmem:[#allocation55_spill] sm:$0xff] %v9855_v13  ;;  %10739 = vst [vmem:[#allocation56_spill] sm:$0xff] %v9860_v55 }
 0xe85   : > { %2708 = vmatprep.subr.bf16.mxu1 %v9494_v58  ;;  %2666 = vmatpush1.bf16.msra.mxu0 %v9489_v56  ;;  %10735 = vst [vmem:[#allocation52_spill] sm:$0xff] %v9836_v51 }
 0xe86   : > { %2667 = vmatprep.subr.bf16.mxu0 %v9499_v54  ;;  %2697 = vmatprep.mubr.bf16.mxu0 %v10562_v60 }
 0xe89   : > { %2668 = vmatpush1.bf16.msra.mxu0 %v9510_v57 }
 0xe8a   : > { %2669 = vmatprep.subr.bf16.mxu0 %v9516_v59 }
 0xe8b   : > { %7339 = vmatmul.mubr.msk.bf16.vlgmr.msra.gmra.mrb[28].mxu1 %vm1006_vm1, %v7639_v0  ;;  %v9865_v0 = vld [vmem:[%s10718_s6 + $0xe0] ss:$16 sps:$4 sm:$0xff]  }
 0xe8c   : > { %2709 = vmatpush1.bf16.msra.mxu1 %v9523_v61  ;;  %2740 = vmatprep.mubr.bf16.mxu1 %v10562_v60  ;;  %10740 = vst [vmem:[#allocation57_spill] sm:$0xff] %v9865_v0 }
 0xe8d   : > { %2710 = vmatprep.subr.bf16.mxu1 %v9528_v62  ;;  %2670 = vmatpush1.bf16.msra.mxu0 %v9534_v63 }
 0xe8e   : > { %2671 = vmatprep.subr.bf16.mxu0 %v9540_v1 }
 0xe90   : > { %2711 = vmatpush1.bf16.msra.mxu1 %v9547_v2 }
 0xe91   : > { %2712 = vmatprep.subr.bf16.mxu1 %v9554_v3  ;;  %2672 = vmatpush1.bf16.msra.mxu0 %v9560_v4 }
 0xe92   : > { %2673 = vmatprep.subr.bf16.mxu0 %v9566_v21 }
 0xe94   : > { %2713 = vmatpush1.bf16.msra.mxu1 %v9572_v5 }
 0xe95   : > { %2714 = vmatprep.subr.bf16.mxu1 %v9578_v6  ;;  %2674 = vmatpush1.bf16.msra.mxu0 %v9584_v7 }
 0xe96   : > { %2675 = vmatprep.subr.bf16.mxu0 %v9590_v8 }
 0xe98   : > { %2715 = vmatpush1.bf16.msra.mxu1 %v9596_v9 }
 0xe99   : > { %2716 = vmatprep.subr.bf16.mxu1 %v9602_v10  ;;  %2676 = vmatpush1.bf16.msra.mxu0 %v9608_v12 }
 0xe9a   : > { %2677 = vmatprep.subr.bf16.mxu0 %v9614_v14 }
 0xe9c   : > { %2717 = vmatpush1.bf16.msra.mxu1 %v9620_v15 }
 0xe9d   : > { %2718 = vmatprep.subr.bf16.mxu1 %v9626_v16  ;;  %2678 = vmatpush1.bf16.msra.mxu0 %v9632_v17 }
 0xe9e   : > { %2679 = vmatprep.subr.bf16.mxu0 %v9638_v18 }
 0xea0   : > { %2719 = vmatpush1.bf16.msra.mxu1 %v9644_v19 }
 0xea1   : > { %2720 = vmatprep.subr.bf16.mxu1 %v9650_v20  ;;  %2680 = vmatpush1.bf16.msra.mxu0 %v9656_v22 }
 0xea2   : > { %2911 = vmatprep.subr.bf16.mxu0 %v9662_v25 }
 0xea4   : > { %2721 = vmatpush1.bf16.msra.mxu1 %v9668_v27  ;;  %2698 = vmatmul.mubr.bf16.vlgmr.msra.gmra.mrb[36].mxu0 %v10562_v60 }
 0xea5   : > { %2722 = vmatprep.subr.bf16.mxu1 %v9674_v29  ;;  %2912 = vmatpush1.bf16.msra.mxu0 %v9680_v30 }
 0xea6   : > { %2913 = vmatprep.subr.bf16.mxu0 %v9686_v31  ;;  %2943 = vmatprep.mubr.bf16.mxu0 %v10562_v60 }
 0xea8   : > { %2723 = vmatpush1.bf16.msra.mxu1 %v9692_v32 }
 0xea9   : > { %2954 = vmatprep.subr.bf16.mxu1 %v9699_v33  ;;  %2914 = vmatpush1.bf16.msra.mxu0 %v9705_v34 }
 0xeaa   : > { %2915 = vmatprep.subr.bf16.mxu0 %v9711_v35 }
 0xeab   : > { %2741 = vmatmul.mubr.bf16.vlgmr.msra.gmra.mrb[32].mxu1 %v10562_v60 }
 0xeac   : > { %2955 = vmatpush1.bf16.msra.mxu1 %v9718_v36  ;;  %2986 = vmatprep.mubr.bf16.mxu1 %v10562_v60  ;;  %v9870_v60 = vld [vmem:[%s10718_s6 + $0xe8] ss:$16 sps:$4 sm:$0xff]  }
 0xead   : > { %2956 = vmatprep.subr.bf16.mxu1 %v9724_v37  ;;  %2916 = vmatpush1.bf16.msra.mxu0 %v9730_v38  ;;  %10741 = vst [vmem:[#allocation58_spill] sm:$0xff] %v9870_v60 }
 0xeae   : > { %2917 = vmatprep.subr.bf16.mxu0 %v9736_v39 }
 0xeb0   : > { %2957 = vmatpush1.bf16.msra.mxu1 %v9743_v40 }
 0xeb1   : > { %2958 = vmatprep.subr.bf16.mxu1 %v9750_v41  ;;  %2918 = vmatpush1.bf16.msra.mxu0 %v9756_v42 }
 0xeb2   : > { %2919 = vmatprep.subr.bf16.mxu0 %v9762_v43 }
 0xeb4   : > { %2959 = vmatpush1.bf16.msra.mxu1 %v9768_v44 }
 0xeb5   : > { %2960 = vmatprep.subr.bf16.mxu1 %v9774_v45  ;;  %2920 = vmatpush1.bf16.msra.mxu0 %v9780_v23 }
 0xeb6   : > { %2921 = vmatprep.subr.bf16.mxu0 %v9786_v46 }
 0xeb8   : > { %2961 = vmatpush1.bf16.msra.mxu1 %v9792_v24 }
 0xeb9   : > { %2962 = vmatprep.subr.bf16.mxu1 %v9798_v26  ;;  %2922 = vmatpush1.bf16.msra.mxu0 %v9804_v28 }
 0xeba   : > { %2923 = vmatprep.subr.bf16.mxu0 %v9831_v50 }
 0xebc   : > { %2963 = vmatpush1.bf16.msra.mxu1 %v9811_v47 }
 0xebd   : > { %2964 = vmatprep.subr.bf16.mxu1 %v9817_v48  ;;  %2924 = vmatpush1.bf16.msra.mxu0 %v9841_v52 }
 0xebe   : > { %2925 = vmatprep.subr.bf16.mxu0 %v9855_v13 }
 0xec0   : > { %2965 = vmatpush1.bf16.msra.mxu1 %v9824_v49 }
 0xec1   : > { %2966 = vmatprep.subr.bf16.mxu1 %v9836_v51  ;;  %2926 = vmatpush1.bf16.msra.mxu0 %v9865_v0 }
 0xec2   : > { %3055 = vmatprep.subr.bf16.mxu0 %v9474_v11 }
 0xec4   : > { %2967 = vmatpush1.bf16.msra.mxu1 %v9846_v53 }
 0xec5   : > { %2968 = vmatprep.subr.bf16.mxu1 %v9860_v55 }
 0xec8   : > { %2969 = vmatpush1.bf16.msra.mxu1 %v9870_v60 }
 0xec9   : > { %3098 = vmatprep.subr.bf16.mxu1 %v9494_v58 }
 0xf4e   : > { %v2219_v53 = vpop.f32.mrb[20].mxu1  ;;  %v2270_v52 = vpop.f32.mrb[28].mxu0 }
 0xf4f   : > { %v7316_v51 = vpop.f32.mrb[21].mxu1  ;;  %v4596_v50 = vsub.f32 %v2219_v53, %v2270_v52  ;;  %v4600_v49 = vmul.f32 %v2270_v52, %v2219_v53  ;;  %v7322_v28 = vpop.f32.mrb[29].mxu0 }
 0xf50   : > { %v2222_v48 = vpop.f32.mrb[22].mxu1  ;;  %v2273_v46 = vpop.f32.mrb[30].mxu0 }
 0xf51   : > { %v9878_v47 = vpack.c.bf16 %v2222_v48, %v2219_v53  ;;  %v7317_v13 = vpop.f32.mrb[23].mxu1  ;;  %v4597_v55 = vsub.f32 %v2222_v48, %v2273_v46  ;;  %v4601_v23 = vmul.f32 %v2273_v46, %v2222_v48  ;;  %v7323_v0 = vpop.f32.mrb[31].mxu0  ;;  %v9880_v26 = vpack.c.bf16 %v2273_v46, %v2270_v52  ;;  %v9924_v46 = vld [vmem:[#allocation12] sm:$0xff] }
 0xf52   : > { %v4598_v60 = vand.u32 2147483647, %v4596_v50  ;;  %10748 = vst [vmem:[#allocation64_spill] sm:$0xff] %v9924_v46  ;;  %v9928_v50 = vld [vmem:[#allocation12 + $0x20] sm:$0xff] }
 0xf53   : > { %10742 = vst [vmem:[#allocation59_spill] sm:$0xff] %v9878_v47  ;;  %10743 = vst [vmem:[#allocation60_spill] sm:$0xff] %v9880_v26  ;;  %v4599_v11 = vand.u32 2147483647, %v4597_v55  ;;  %v9882_v43 = vpack.c.bf16 %v4601_v23, %v4600_v49 }
 0xf54   : > { %10750 = vst [vmem:[#allocation66_spill] sm:$0xff] %v9928_v50 }
 0xf55   : > { %10744 = vst [vmem:[#allocation61_spill] sm:$0xff] %v9882_v43  ;;  %v9884_v58 = vpack.c.bf16 %v4599_v11, %v4598_v60  ;;  %v10746_v60 = vmov 0  }
 0xf56   : > { %v2321_v51 = vpop.f32.mrb[24].mxu1  ;;  %v2373_v24 = vpop.f32.mrb[32].mxu0 }
 0xf57   : > { %10745 = vst [vmem:[#allocation62_spill] sm:$0xff] %v9884_v58  ;;  %v7328_v42 = vpop.f32.mrb[25].mxu1  ;;  %v7334_v28 = vpop.f32.mrb[33].mxu0 }
 0xf58   : > { %v2324_v45 = vpop.f32.mrb[26].mxu1  ;;  %v2376_v39 = vpop.f32.mrb[34].mxu0 }
 0xf59   : > { %v2440_v53 = vpack.c.bf16 %v2324_v45, %v2321_v51  ;;  %v7329_v47 = vpop.f32.mrb[27].mxu1  ;;  %v9886_v13 = vpack.c.bf16 %v2376_v39, %v2373_v24  ;;  %v7335_v48 = vpop.f32.mrb[35].mxu0  ;;  %v9926_v24 = vld [vmem:[#allocation12 + $0x8] sm:$0xff] }
 0xf5a   : > { %10749 = vst [vmem:[#allocation65_spill] sm:$0xff] %v9926_v24  ;;  %v9931_v51 = vld [vmem:[#allocation12 + $0x28] sm:$0xff] }
 0xf5b   : > { %2944 = vmatmul.mubr.bf16.vlgmr.msra.gmra.mrb[36].mxu0 %v2440_v53  ;;  %2987 = vmatmul.mubr.bf16.vlgmr.msra.gmra.mrb[32].mxu1 %v2440_v53 }
 0xf5c   : > { %3056 = vmatpush1.bf16.msra.mxu0 %v9489_v56  ;;  %3099 = vmatpush1.bf16.msra.mxu1 %v9523_v61 }
 0xf5d   : > { %3057 = vmatprep.subr.bf16.mxu0 %v9499_v54  ;;  %3100 = vmatprep.subr.bf16.mxu1 %v9528_v62 }
 0xf5e   : > { %v2425_v11 = vpop.f32.mrb[28].mxu1  ;;  %3087 = vmatprep.mubr.bf16.mxu0 %v10746_v60  ;;  %3130 = vmatprep.mubr.bf16.mxu1 %v10746_v60 }
 0xf5f   : > { %v7340_v42 = vpop.f32.mrb[29].mxu1 }
 0xf60   : > { %v2428_v45 = vpop.f32.mrb[30].mxu1  ;;  %3058 = vmatpush1.bf16.msra.mxu0 %v9510_v57  ;;  %3101 = vmatpush1.bf16.msra.mxu1 %v9547_v2  ;;  %v9934_v42 = vld [vmem:[#allocation12 + $0x18] sm:$0xff] }
 0xf61   : > { %v9896_v39 = vpack.c.bf16 %v2428_v45, %v2425_v11  ;;  %v7341_v23 = vpop.f32.mrb[31].mxu1  ;;  %3059 = vmatprep.subr.bf16.mxu0 %v9516_v59  ;;  %3102 = vmatprep.subr.bf16.mxu1 %v9554_v3 }
 0xf63   : > { %10747 = vst [vmem:[#allocation63_spill] sm:$0xff] %v9896_v39  ;;  %v9938_v39 = vld [vmem:[#allocation12 + $0x38] sm:$0xff] }
 0xf64   : > { %3060 = vmatpush1.bf16.msra.mxu0 %v9534_v63  ;;  %3103 = vmatpush1.bf16.msra.mxu1 %v9572_v5 }
 0xf65   : > { %3061 = vmatprep.subr.bf16.mxu0 %v9540_v1  ;;  %3104 = vmatprep.subr.bf16.mxu1 %v9578_v6 }
 0xf68   : > { %3062 = vmatpush1.bf16.msra.mxu0 %v9560_v4  ;;  %3105 = vmatpush1.bf16.msra.mxu1 %v9596_v9 }
 0xf69   : > { %3063 = vmatprep.subr.bf16.mxu0 %v9566_v21  ;;  %3106 = vmatprep.subr.bf16.mxu1 %v9602_v10 }
 0xf6c   : > { %3064 = vmatpush1.bf16.msra.mxu0 %v9584_v7  ;;  %3107 = vmatpush1.bf16.msra.mxu1 %v9620_v15 }
 0xf6d   : > { %3065 = vmatprep.subr.bf16.mxu0 %v9590_v8  ;;  %3108 = vmatprep.subr.bf16.mxu1 %v9626_v16 }
 0xf70   : > { %3066 = vmatpush1.bf16.msra.mxu0 %v9608_v12  ;;  %3109 = vmatpush1.bf16.msra.mxu1 %v9644_v19 }
 0xf71   : > { %3067 = vmatprep.subr.bf16.mxu0 %v9614_v14  ;;  %3110 = vmatprep.subr.bf16.mxu1 %v9650_v20 }
 0xf74   : > { %3068 = vmatpush1.bf16.msra.mxu0 %v9632_v17  ;;  %3111 = vmatpush1.bf16.msra.mxu1 %v9668_v27 }
 0xf75   : > { %3069 = vmatprep.subr.bf16.mxu0 %v9638_v18  ;;  %3112 = vmatprep.subr.bf16.mxu1 %v9674_v29 }
 0xf78   : > { %3070 = vmatpush1.bf16.msra.mxu0 %v9656_v22  ;;  %3113 = vmatpush1.bf16.msra.mxu1 %v9692_v32 }
 0xf79   : > { %3141 = vmatprep.subr.bf16.mxu0 %v9662_v25  ;;  %3184 = vmatprep.subr.bf16.mxu1 %v9699_v33 }
0x102e   : > { %v2945_v47 = vpop.f32.mrb[36].mxu0  ;;  %v2988_v49 = vpop.f32.mrb[32].mxu1 }
0x102f   : > { %v2997_v52 = vadd.f32 %v2945_v47, %v9924_v46  ;;  %v2947_v55 = vpop.f32.mrb[37].mxu0  ;;  %v2990_v0 = vpop.f32.mrb[33].mxu1 }
0x1030   : > { %v2998_v28 = vadd.f32 %v2947_v55, %v9926_v24  ;;  %v2949_v53 = vpop.f32.mrb[38].mxu0  ;;  %v2992_v48 = vpop.f32.mrb[34].mxu1  ;;  %v3000_v25 = vadd.f32 %v2990_v0, %v9934_v42 }
0x1031   : > { %v3005_v11 = vsub.f32 0.0, %v2997_v52  ;;  %v3001_v45 = vadd.f32 %v2949_v53, %v9928_v50  ;;  %v2951_v23 = vpop.f32.mrb[39].mxu0  ;;  %v2994_v43 = vpop.f32.mrb[35].mxu1  ;;  %v9942_v53 = vld [vmem:[#allocation12 + $0x10] sm:$0xff] }
0x1032   : > { %v3017_v58 = vsub.f32 0.0, %v2998_v28  ;;  %v3002_v26 = vadd.f32 %v2951_v23, %v9931_v51  ;;  %v3004_v52 = vadd.f32 %v2994_v43, %v9938_v39  ;;  %v3031_v50 = vsub.f32 0.0, %v3000_v25 }
0x1033   : > { %v3007_v47 = vmul.f32 1.442695, %v3005_v11  ;;  %v3006_v46 = vsub.f32 0.0, %v3001_v45  ;;  %v2999_v23 = vadd.f32 %v2988_v49, %v9942_v53  ;;  %v9945_v45 = vld [vmem:[#allocation12 + $0x30] sm:$0xff] }
0x1034   : > { %v3019_v33 = vmul.f32 1.442695, %v3017_v58  ;;  %v3018_v55 = vsub.f32 0.0, %v3002_v26  ;;  %v3032_v28 = vsub.f32 0.0, %v3004_v52  ;;  %v3033_v11 = vmul.f32 1.442695, %v3031_v50 }
0x1035   : > { %8114 = vpow2.f32 %v3007_v47  ;;  %v3009_v24 = vmul.f32 1.442695, %v3006_v46  ;;  %10751 = vst [vmem:[#allocation67_spill] sm:$0xff] %v9945_v45 }
0x1036   : > { %8116 = vpow2.f32 %v3019_v33  ;;  %v3021_v32 = vmul.f32 1.442695, %v3018_v55  ;;  %v3035_v58 = vmul.f32 1.442695, %v3032_v28  ;;  %v3003_v33 = vadd.f32 %v2992_v48, %v9945_v45 }
0x1037   : > { %8118 = vpow2.f32 %v3009_v24 }
0x1038   : > { %8120 = vpow2.f32 %v3021_v32 }
0x1039   : > { %8122 = vtanh.f32 %v2999_v23 }
0x103a   : > { %8124 = vpow2.f32 %v3033_v11 }
0x103b   : > { %8126 = vpow2.f32 %v3035_v58 }
0x103f   : > { %v8115_v0 = vpop.eup %8114 }
0x1040   : > { %v8117_v26 = vpop.eup %8116  ;;  %v3011_v46 = vadd.f32 1.0, %v8115_v0 }
0x1041   : > { %v3023_v43 = vadd.f32 1.0, %v8117_v26  ;;  %v8119_v47 = vpop.eup %8118 }
0x1042   : > { %8128 = vrcp.f32 %v3011_v46  ;;  %v8121_v25 = vpop.eup %8120  ;;  %v3012_v32 = vadd.f32 1.0, %v8119_v47 }
0x1043   : > { %8130 = vrcp.f32 %v3023_v43  ;;  %v3024_v24 = vadd.f32 1.0, %v8121_v25  ;;  %v8123_v49 = vpop.eup %8122 }
0x1044   : > { %8132 = vtanh.f32 %v3003_v33  ;;  %v8125_v50 = vpop.eup %8124 }
0x1045   : > { %8134 = vrcp.f32 %v3012_v32  ;;  %v8127_v55 = vpop.eup %8126  ;;  %v3037_v48 = vadd.f32 1.0, %v8125_v50 }
0x1046   : > { %8136 = vrcp.f32 %v3024_v24  ;;  %v3038_v43 = vadd.f32 1.0, %v8127_v55  ;;  %v10753_v55 = vld [vmem:[#allocation39_spill] sm:$0xff] }
0x1047   : > { %8138 = vrcp.f32 %v3037_v48  ;;  %v10757_v48 = vld [vmem:[#allocation41_spill] sm:$0xff] }
0x104c   : > { %v8129_v52 = vpop.eup %8128 }
0x104d   : > { %v8131_v28 = vpop.eup %8130  ;;  %v3045_v23 = vmul.f32 %v8129_v52, %v8123_v49 }
0x104e   : > { %v8133_v11 = vpop.eup %8132  ;;  %v3043_v0 = vmul.f32 0.0, %v8131_v28 }
0x104f   : > { %v8135_v26 = vpop.eup %8134 }
0x1050   : > { %v8137_v58 = vpop.eup %8136  ;;  %v9948_v45 = vadd.f32 %v3045_v23, %v3043_v0  ;;  %v3046_v46 = vmul.f32 %v8135_v26, %v8133_v11  ;;  %v10754_v23 = vld [vmem:[#allocation42_spill] sm:$0xff]  ;;  %v10755_v11 = vld [vmem:[#allocation40_spill] sm:$0xff]  ;;  %v10756_v0 = vld [vmem:[#allocation45_spill] sm:$0xff] }
0x1051   : > { %v3044_v47 = vmul.f32 0.0, %v8137_v58  ;;  %v8139_v25 = vpop.eup %8138  ;;  %v10758_v26 = vld [vmem:[#allocation46_spill] sm:$0xff]  ;;  %v10759_v58 = vld [vmem:[#allocation43_spill] sm:$0xff] }
0x1052   : > { %8140 = vtanh.f32 %v9948_v45 }
0x1053   : > { %v9951_v33 = vadd.f32 %v3046_v46, %v3044_v47  ;;  %8142 = vrcp.f32 %v3038_v43  ;;  %v10760_v46 = vld [vmem:[#allocation48_spill] sm:$0xff]  ;;  %v10762_v47 = vld [vmem:[#allocation49_spill] sm:$0xff] }
0x1054   : > { %v10761_v43 = vld [vmem:[#allocation44_spill] sm:$0xff] }
0x1055   : > { %8144 = vtanh.f32 %v9951_v33 }
0x105c   : > { %v8141_v32 = vpop.eup %8140 }
0x105d   : > { %v8143_v24 = vpop.eup %8142  ;;  %v3051_v50 = vmul.f32 %v8141_v32, %v8139_v25  ;;  %v10763_v25 = vld [vmem:[#allocation47_spill] sm:$0xff]  ;;  %v10764_v32 = vld [vmem:[#allocation50_spill] sm:$0xff] }
0x105f   : > { %v8145_v49 = vpop.eup %8144 }
0x1060   : > { %v3052_v52 = vmul.f32 %v8145_v49, %v8143_v24  ;;  %v10765_v24 = vld [vmem:[#allocation51_spill] sm:$0xff]  ;;  %v10766_v49 = vld [vmem:[#allocation52_spill] sm:$0xff] }
0x1062   : > { %v9954_v28 = vpack.c.bf16 %v3052_v52, %v3051_v50  ;;  %v10767_v50 = vld [vmem:[#allocation53_spill] sm:$0xff]  ;;  %v10768_v52 = vld [vmem:[#allocation54_spill] sm:$0xff] }
0x1064   : > { %10752 = vst [vmem:[#allocation68_spill] sm:$0xff] %v9954_v28  ;;  %3088 = vmatmul.mubr.bf16.vlgmr.msra.gmra.mrb[40].mxu0 %v9954_v28  ;;  %3131 = vmatmul.mubr.bf16.vlgmr.msra.gmra.mrb[36].mxu1 %v9954_v28  ;;  %v10769_v28 = vld [vmem:[#allocation55_spill] sm:$0xff] }
0x1065   : > { %3142 = vmatpush1.bf16.msra.mxu0 %v9680_v30  ;;  %3185 = vmatpush1.bf16.msra.mxu1 %v9718_v36 }
0x1066   : > { %3143 = vmatprep.subr.bf16.mxu0 %v9686_v31  ;;  %3186 = vmatprep.subr.bf16.mxu1 %v9724_v37 }
0x1067   : > { %3173 = vmatprep.mubr.bf16.mxu0 %v10746_v60  ;;  %3216 = vmatprep.mubr.bf16.mxu1 %v10746_v60 }
0x1069   : > { %3144 = vmatpush1.bf16.msra.mxu0 %v9705_v34  ;;  %3187 = vmatpush1.bf16.msra.mxu1 %v9743_v40 }
0x106a   : > { %3145 = vmatprep.subr.bf16.mxu0 %v9711_v35  ;;  %3188 = vmatprep.subr.bf16.mxu1 %v9750_v41 }
0x106d   : > { %3146 = vmatpush1.bf16.msra.mxu0 %v9730_v38  ;;  %3189 = vmatpush1.bf16.msra.mxu1 %v9768_v44 }
0x106e   : > { %3147 = vmatprep.subr.bf16.mxu0 %v10753_v55  ;;  %3190 = vmatprep.subr.bf16.mxu1 %v10754_v23 }
0x1071   : > { %3148 = vmatpush1.bf16.msra.mxu0 %v10755_v11  ;;  %3191 = vmatpush1.bf16.msra.mxu1 %v10756_v0 }
0x1072   : > { %3149 = vmatprep.subr.bf16.mxu0 %v10757_v48  ;;  %3192 = vmatprep.subr.bf16.mxu1 %v10758_v26 }
0x1075   : > { %3150 = vmatpush1.bf16.msra.mxu0 %v10759_v58  ;;  %3193 = vmatpush1.bf16.msra.mxu1 %v10760_v46  ;;  %v10770_v58 = vld [vmem:[#allocation56_spill] sm:$0xff]  ;;  %v10771_v46 = vld [vmem:[#allocation57_spill] sm:$0xff] }
0x1076   : > { %3151 = vmatprep.subr.bf16.mxu0 %v10761_v43  ;;  %3194 = vmatprep.subr.bf16.mxu1 %v10762_v47  ;;  %v10772_v43 = vld [vmem:[#allocation58_spill] sm:$0xff] }
0x1077   : > { %v10773_v47 = vld [vmem:[#allocation34_spill] sm:$0xff] }
0x1079   : > { %3152 = vmatpush1.bf16.msra.mxu0 %v10763_v25  ;;  %3195 = vmatpush1.bf16.msra.mxu1 %v10764_v32  ;;  %v10774_v25 = vld [vmem:[#allocation35_spill] sm:$0xff] }
0x107a   : > { %3153 = vmatprep.subr.bf16.mxu0 %v10765_v24  ;;  %3196 = vmatprep.subr.bf16.mxu1 %v10766_v49 }
0x107d   : > { %3154 = vmatpush1.bf16.msra.mxu0 %v10767_v50  ;;  %3197 = vmatpush1.bf16.msra.mxu1 %v10768_v52 }
0x107e   : > { %3155 = vmatprep.subr.bf16.mxu0 %v10769_v28  ;;  %3198 = vmatprep.subr.bf16.mxu1 %v10770_v58 }
0x1081   : > { %3156 = vmatpush1.bf16.msra.mxu0 %v10771_v46  ;;  %3199 = vmatpush1.bf16.msra.mxu1 %v10772_v43 }
0x1082   : > { %3285 = vmatprep.subr.bf16.mxu0 %v10773_v47  ;;  %3328 = vmatprep.subr.bf16.mxu1 %v10774_v25 }
0x1084   : > { %3174 = vmatmul.mubr.bf16.vlgmr.msra.gmra.mrb[40].mxu0 %v9886_v13  ;;  %3217 = vmatmul.mubr.bf16.vlgmr.msra.gmra.mrb[36].mxu1 %v9886_v13 }
0x1085   : > { %3286 = vmatpush1.bf16.msra.mxu0 %v9489_v56  ;;  %3329 = vmatpush1.bf16.msra.mxu1 %v9523_v61  ;;  %v10775_v56 = vld [vmem:[#allocation37_spill] sm:$0xff] }
0x1086   : > { %3287 = vmatprep.subr.bf16.mxu0 %v9499_v54  ;;  %3330 = vmatprep.subr.bf16.mxu1 %v9528_v62  ;;  %v10776_v54 = vld [vmem:[#allocation36_spill] sm:$0xff] }
0x1087   : > { %3317 = vmatprep.mubr.bf16.mxu0 %v10746_v60  ;;  %3360 = vmatprep.mubr.bf16.mxu1 %v10746_v60  ;;  %v10778_v62 = vld [vmem:[#allocation64_spill] sm:$0xff] }
0x1089   : > { %3288 = vmatpush1.bf16.msra.mxu0 %v9510_v57  ;;  %3331 = vmatpush1.bf16.msra.mxu1 %v9547_v2  ;;  %v10777_v57 = vld [vmem:[#allocation38_spill] sm:$0xff] }
0x108a   : > { %3289 = vmatprep.subr.bf16.mxu0 %v9516_v59  ;;  %3332 = vmatprep.subr.bf16.mxu1 %v9554_v3  ;;  %v10779_v3 = vld [vmem:[#allocation65_spill] sm:$0xff] }
0x108d   : > { %3290 = vmatpush1.bf16.msra.mxu0 %v9534_v63  ;;  %3333 = vmatpush1.bf16.msra.mxu1 %v9572_v5 }
0x108e   : > { %3291 = vmatprep.subr.bf16.mxu0 %v9540_v1  ;;  %3334 = vmatprep.subr.bf16.mxu1 %v9578_v6 }
0x1091   : > { %3292 = vmatpush1.bf16.msra.mxu0 %v9560_v4  ;;  %3335 = vmatpush1.bf16.msra.mxu1 %v9596_v9 }
0x1092   : > { %3293 = vmatprep.subr.bf16.mxu0 %v9566_v21  ;;  %3336 = vmatprep.subr.bf16.mxu1 %v9602_v10 }
0x1095   : > { %3294 = vmatpush1.bf16.msra.mxu0 %v9584_v7  ;;  %3337 = vmatpush1.bf16.msra.mxu1 %v9620_v15  ;;  %v10780_v7 = vld [vmem:[#allocation66_spill] sm:$0xff] }
0x1096   : > { %3295 = vmatprep.subr.bf16.mxu0 %v9590_v8  ;;  %3338 = vmatprep.subr.bf16.mxu1 %v9626_v16 }
0x1099   : > { %3296 = vmatpush1.bf16.msra.mxu0 %v9608_v12  ;;  %3339 = vmatpush1.bf16.msra.mxu1 %v9644_v19 }
0x109a   : > { %3297 = vmatprep.subr.bf16.mxu0 %v9614_v14  ;;  %3340 = vmatprep.subr.bf16.mxu1 %v9650_v20 }
0x109d   : > { %3298 = vmatpush1.bf16.msra.mxu0 %v9632_v17  ;;  %3341 = vmatpush1.bf16.msra.mxu1 %v9668_v27 }
0x109e   : > { %3299 = vmatprep.subr.bf16.mxu0 %v9638_v18  ;;  %3342 = vmatprep.subr.bf16.mxu1 %v9674_v29 }
0x10a1   : > { %3300 = vmatpush1.bf16.msra.mxu0 %v9656_v22  ;;  %3343 = vmatpush1.bf16.msra.mxu1 %v10775_v56 }
0x10a2   : > { %3371 = vmatprep.subr.bf16.mxu0 %v10776_v54  ;;  %3414 = vmatprep.subr.bf16.mxu1 %v10777_v57 }
0x1157   : > { %v3175_v59 = vpop.f32.mrb[40].mxu0  ;;  %v3218_v61 = vpop.f32.mrb[36].mxu1 }
0x1158   : > { %v3227_v63 = vadd.f32 %v3175_v59, %v10778_v62  ;;  %v3177_v1 = vpop.f32.mrb[41].mxu0  ;;  %v3220_v2 = vpop.f32.mrb[37].mxu1  ;;  %v3229_v47 = vadd.f32 %v3218_v61, %v9942_v53 }
0x1159   : > { %v3228_v4 = vadd.f32 %v3177_v1, %v10779_v3  ;;  %v3179_v21 = vpop.f32.mrb[42].mxu0  ;;  %v3222_v5 = vpop.f32.mrb[38].mxu1  ;;  %v3230_v18 = vadd.f32 %v3220_v2, %v9934_v42 }
0x115a   : > { %v3235_v6 = vsub.f32 0.0, %v3227_v63  ;;  %v3231_v8 = vadd.f32 %v3179_v21, %v10780_v7  ;;  %v3181_v9 = vpop.f32.mrb[43].mxu0  ;;  %v3224_v10 = vpop.f32.mrb[39].mxu1  ;;  %v10781_v63 = vld [vmem:[#allocation67_spill] sm:$0xff] }
0x115b   : > { %v3247_v12 = vsub.f32 0.0, %v3228_v4  ;;  %v3232_v14 = vadd.f32 %v3181_v9, %v9931_v51  ;;  %v3234_v22 = vadd.f32 %v3224_v10, %v9938_v39  ;;  %v3261_v29 = vsub.f32 0.0, %v3230_v18 }
0x115c   : > { %v3237_v15 = vmul.f32 1.442695, %v3235_v6  ;;  %v3236_v16 = vsub.f32 0.0, %v3231_v8  ;;  %v3233_v1 = vadd.f32 %v3222_v5, %v10781_v63 }
0x115d   : > { %v3249_v17 = vmul.f32 1.442695, %v3247_v12  ;;  %v3248_v19 = vsub.f32 0.0, %v3232_v14  ;;  %v3262_v13 = vsub.f32 0.0, %v3234_v22  ;;  %v3263_v25 = vmul.f32 1.442695, %v3261_v29 }
0x115e   : > { %8146 = vpow2.f32 %v3237_v15  ;;  %v3239_v20 = vmul.f32 1.442695, %v3236_v16 }
0x115f   : > { %8148 = vpow2.f32 %v3249_v17  ;;  %v3251_v27 = vmul.f32 1.442695, %v3248_v19  ;;  %v3265_v56 = vmul.f32 1.442695, %v3262_v13 }
0x1160   : > { %8150 = vpow2.f32 %v3239_v20 }
0x1161   : > { %8152 = vpow2.f32 %v3251_v27 }
0x1162   : > { %8154 = vtanh.f32 %v3229_v47 }
0x1163   : > { %8156 = vpow2.f32 %v3263_v25 }
0x1164   : > { %8158 = vpow2.f32 %v3265_v56 }
0x1168   : > { %v8147_v54 = vpop.eup %8146 }
0x1169   : > { %v8149_v57 = vpop.eup %8148  ;;  %v3241_v59 = vadd.f32 1.0, %v8147_v54 }
0x116a   : > { %v3253_v2 = vadd.f32 1.0, %v8149_v57  ;;  %v8151_v4 = vpop.eup %8150 }
0x116b   : > { %8160 = vrcp.f32 %v3241_v59  ;;  %v8153_v21 = vpop.eup %8152  ;;  %v3242_v6 = vadd.f32 1.0, %v8151_v4  ;;  %v10148_v4 = vld [vmem:[#allocation15 + $0xa0] ss:$16 sps:$4 sm:$0xff]  }
0x116c   : > { %8162 = vrcp.f32 %v3253_v2  ;;  %v3254_v8 = vadd.f32 1.0, %v8153_v21  ;;  %v8155_v61 = vpop.eup %8154  ;;  %v10144_v2 = vld [vmem:[#allocation15 + $0xac] ss:$16 sps:$4 sm:$0xff]   ;;  %10794 = vst [vmem:[#allocation50_spill] sm:$0xff] %v10148_v4  ;;  %v10150_v21 = vld [vmem:[#allocation15 + $0xa8] ss:$16 sps:$4 sm:$0xff]  }
0x116d   : > { %8164 = vtanh.f32 %v3233_v1  ;;  %v8157_v9 = vpop.eup %8156  ;;  %v10142_v1 = vld [vmem:[#allocation15 + $0xa4] ss:$16 sps:$4 sm:$0xff]   ;;  %10793 = vst [vmem:[#allocation46_spill] sm:$0xff] %v10144_v2  ;;  %10795 = vst [vmem:[#allocation51_spill] sm:$0xff] %v10150_v21 }
0x116e   : > { %8166 = vrcp.f32 %v3242_v6  ;;  %v8159_v10 = vpop.eup %8158  ;;  %v3267_v17 = vadd.f32 1.0, %v8157_v9  ;;  %10792 = vst [vmem:[#allocation41_spill] sm:$0xff] %v10142_v1  ;;  %v10154_v6 = vld [vmem:[#allocation15 + $0xc4] ss:$16 sps:$4 sm:$0xff]   ;;  %v10162_v9 = vld [vmem:[#allocation15 + $0xc8] ss:$16 sps:$4 sm:$0xff]  }
0x116f   : > { %8168 = vrcp.f32 %v3254_v8  ;;  %v3268_v27 = vadd.f32 1.0, %v8159_v10  ;;  %10796 = vst [vmem:[#allocation52_spill] sm:$0xff] %v10154_v6  ;;  %v10156_v8 = vld [vmem:[#allocation15 + $0xcc] ss:$16 sps:$4 sm:$0xff]   ;;  %10799 = vst [vmem:[#allocation55_spill] sm:$0xff] %v10162_v9 }
0x1170   : > { %8170 = vrcp.f32 %v3267_v17  ;;  %10797 = vst [vmem:[#allocation53_spill] sm:$0xff] %v10156_v8  ;;  %v10166_v10 = vld [vmem:[#allocation15 + $0xe4] ss:$16 sps:$4 sm:$0xff]   ;;  %v10184_v17 = vld [vmem:[#allocation13] ss:$16 sps:$4 sm:$0xff]  }
0x1171   : > { %10800 = vst [vmem:[#allocation56_spill] sm:$0xff] %v10166_v10 }
0x1175   : > { %v8161_v12 = vpop.eup %8160 }
0x1176   : > { %v8163_v14 = vpop.eup %8162  ;;  %v3275_v15 = vmul.f32 %v8161_v12, %v8155_v61  ;;  %v10160_v61 = vld [vmem:[#allocation15 + $0xc0] ss:$16 sps:$4 sm:$0xff]   ;;  %v10168_v12 = vld [vmem:[#allocation15 + $0xec] ss:$16 sps:$4 sm:$0xff]  }
0x1177   : > { %v8165_v16 = vpop.eup %8164  ;;  %v3273_v5 = vmul.f32 %v8163_v14, %v9948_v45  ;;  %10798 = vst [vmem:[#allocation54_spill] sm:$0xff] %v10160_v61  ;;  %10801 = vst [vmem:[#allocation57_spill] sm:$0xff] %v10168_v12  ;;  %v10172_v14 = vld [vmem:[#allocation15 + $0xe0] ss:$16 sps:$4 sm:$0xff]  }
0x1178   : > { %v8167_v18 = vpop.eup %8166  ;;  %10802 = vst [vmem:[#allocation58_spill] sm:$0xff] %v10172_v14 }
0x1179   : > { %v8169_v19 = vpop.eup %8168  ;;  %v10037_v20 = vadd.f32 %v3275_v15, %v3273_v5  ;;  %v3276_v22 = vmul.f32 %v8167_v18, %v8165_v16  ;;  %v10174_v15 = vld [vmem:[#allocation15 + $0xe8] ss:$16 sps:$4 sm:$0xff]   ;;  %v10178_v16 = vld [vmem:[#allocation13 + $0x4] ss:$16 sps:$4 sm:$0xff]   ;;  %v10180_v5 = vld [vmem:[#allocation13 + $0xc] ss:$16 sps:$4 sm:$0xff]  }
0x117a   : > { %v3274_v29 = vmul.f32 %v8169_v19, %v9951_v33  ;;  %v8171_v47 = vpop.eup %8170  ;;  %v10092_v33 = vld [vmem:[#allocation15 + $0x2c] ss:$16 sps:$4 sm:$0xff]   ;;  %10803 = vst [vmem:[#allocation34_spill] sm:$0xff] %v10174_v15  ;;  %10804 = vst [vmem:[#allocation35_spill] sm:$0xff] %v10178_v16  ;;  %v10186_v18 = vld [vmem:[#allocation13 + $0x8] ss:$16 sps:$4 sm:$0xff]  }
0x117b   : > { %8172 = vtanh.f32 %v10037_v20  ;;  %10805 = vst [vmem:[#allocation37_spill] sm:$0xff] %v10180_v5  ;;  %v10190_v19 = vld [vmem:[#allocation13 + $0x24] ss:$16 sps:$4 sm:$0xff]  }
0x117c   : > { %v10041_v13 = vadd.f32 %v3276_v22, %v3274_v29  ;;  %8174 = vrcp.f32 %v3268_v27  ;;  %v10192_v22 = vld [vmem:[#allocation13 + $0x2c] ss:$16 sps:$4 sm:$0xff]   ;;  %v10198_v27 = vld [vmem:[#allocation13 + $0x20] ss:$16 sps:$4 sm:$0xff]   ;;  %v10200_v29 = vld [vmem:[#allocation13 + $0x28] ss:$16 sps:$4 sm:$0xff]  }
0x117e   : > { %8176 = vtanh.f32 %v10041_v13 }
0x1185   : > { %v8173_v25 = vpop.eup %8172 }
0x1186   : > { %v8175_v45 = vpop.eup %8174  ;;  %v3281_v54 = vmul.f32 %v8173_v25, %v8171_v47  ;;  %v10204_v47 = vld [vmem:[#allocation13 + $0x44] ss:$16 sps:$4 sm:$0xff]   ;;  %v10206_v25 = vld [vmem:[#allocation13 + $0x4c] ss:$16 sps:$4 sm:$0xff]  }
0x1188   : > { %v8177_v56 = vpop.eup %8176 }
0x1189   : > { %v3282_v57 = vmul.f32 %v8177_v56, %v8175_v45  ;;  %v10212_v45 = vld [vmem:[#allocation13 + $0x40] ss:$16 sps:$4 sm:$0xff]   ;;  %v10214_v56 = vld [vmem:[#allocation13 + $0x48] ss:$16 sps:$4 sm:$0xff]  }
0x118b   : > { %v10044_v59 = vpack.c.bf16 %v3282_v57, %v3281_v54  ;;  %v10218_v54 = vld [vmem:[#allocation13 + $0x64] ss:$16 sps:$4 sm:$0xff]   ;;  %v10220_v57 = vld [vmem:[#allocation13 + $0x6c] ss:$16 sps:$4 sm:$0xff]  }
0x118c   : > { %10806 = vst [vmem:[#allocation36_spill] sm:$0xff] %v10218_v54  ;;  %10807 = vst [vmem:[#allocation38_spill] sm:$0xff] %v10220_v57 }
0x118d   : > { %10782 = vst [vmem:[#allocation39_spill] sm:$0xff] %v10044_v59  ;;  %3318 = vmatmul.mubr.bf16.vlgmr.msra.gmra.mrb[44].mxu0 %v10044_v59  ;;  %3361 = vmatmul.mubr.bf16.vlgmr.msra.gmra.mrb[40].mxu1 %v10044_v59  ;;  %v10242_v59 = vld [vmem:[#allocation13 + $0xa4] ss:$16 sps:$4 sm:$0xff]  }
0x118e   : > { %3372 = vmatpush1.bf16.msra.mxu0 %v9680_v30  ;;  %3415 = vmatpush1.bf16.msra.mxu1 %v9718_v36  ;;  %v10783_v30 = vld [vmem:[#allocation43_spill] sm:$0xff] }
0x118f   : > { %3373 = vmatprep.subr.bf16.mxu0 %v9686_v31  ;;  %3416 = vmatprep.subr.bf16.mxu1 %v9724_v37  ;;  %v10784_v31 = vld [vmem:[#allocation48_spill] sm:$0xff]  ;;  %v10787_v36 = vld [vmem:[#allocation47_spill] sm:$0xff] }
0x1190   : > { %3403 = vmatprep.mubr.bf16.mxu0 %v10746_v60  ;;  %3446 = vmatprep.mubr.bf16.mxu1 %v10746_v60  ;;  %v10078_v37 = vld [vmem:[#allocation15 + $0x4] ss:$16 sps:$4 sm:$0xff]  }
0x1192   : > { %3374 = vmatpush1.bf16.msra.mxu0 %v9705_v34  ;;  %3417 = vmatpush1.bf16.msra.mxu1 %v9743_v40  ;;  %v10785_v34 = vld [vmem:[#allocation44_spill] sm:$0xff] }
0x1193   : > { %3375 = vmatprep.subr.bf16.mxu0 %v9711_v35  ;;  %3418 = vmatprep.subr.bf16.mxu1 %v9750_v41  ;;  %v10786_v35 = vld [vmem:[#allocation49_spill] sm:$0xff]  ;;  %v10084_v40 = vld [vmem:[#allocation15] ss:$16 sps:$4 sm:$0xff]   ;;  %10814 = vst [vmem:[#allocation44_spill] sm:$0xff] %v10242_v59 }
0x1194   : > { %v10086_v41 = vld [vmem:[#allocation15 + $0x8] ss:$16 sps:$4 sm:$0xff]  }
0x1196   : > { %3376 = vmatpush1.bf16.msra.mxu0 %v9730_v38  ;;  %3419 = vmatpush1.bf16.msra.mxu1 %v9768_v44  ;;  %v10080_v38 = vld [vmem:[#allocation15 + $0xc] ss:$16 sps:$4 sm:$0xff]   ;;  %v10090_v44 = vld [vmem:[#allocation15 + $0x24] ss:$16 sps:$4 sm:$0xff]  }
0x1197   : > { %3377 = vmatprep.subr.bf16.mxu0 %v10753_v55  ;;  %3420 = vmatprep.subr.bf16.mxu1 %v10754_v23  ;;  %v10098_v55 = vld [vmem:[#allocation15 + $0x20] ss:$16 sps:$4 sm:$0xff]   ;;  %v10100_v23 = vld [vmem:[#allocation15 + $0x28] ss:$16 sps:$4 sm:$0xff]  }
0x119a   : > { %3378 = vmatpush1.bf16.msra.mxu0 %v10755_v11  ;;  %3421 = vmatpush1.bf16.msra.mxu1 %v10756_v0  ;;  %v10104_v11 = vld [vmem:[#allocation15 + $0x44] ss:$16 sps:$4 sm:$0xff]   ;;  %v10106_v0 = vld [vmem:[#allocation15 + $0x4c] ss:$16 sps:$4 sm:$0xff]  }
0x119b   : > { %3379 = vmatprep.subr.bf16.mxu0 %v10757_v48  ;;  %3422 = vmatprep.subr.bf16.mxu1 %v10758_v26  ;;  %v10112_v48 = vld [vmem:[#allocation15 + $0x40] ss:$16 sps:$4 sm:$0xff]   ;;  %v10114_v26 = vld [vmem:[#allocation15 + $0x48] ss:$16 sps:$4 sm:$0xff]  }
0x119e   : > { %3380 = vmatpush1.bf16.msra.mxu0 %v10783_v30  ;;  %3423 = vmatpush1.bf16.msra.mxu1 %v10784_v31  ;;  %v10224_v30 = vld [vmem:[#allocation13 + $0x60] ss:$16 sps:$4 sm:$0xff]   ;;  %v10226_v31 = vld [vmem:[#allocation13 + $0x68] ss:$16 sps:$4 sm:$0xff]  }
0x119f   : > { %3381 = vmatprep.subr.bf16.mxu0 %v10785_v34  ;;  %3424 = vmatprep.subr.bf16.mxu1 %v10786_v35  ;;  %10808 = vst [vmem:[#allocation64_spill] sm:$0xff] %v10224_v30  ;;  %10809 = vst [vmem:[#allocation65_spill] sm:$0xff] %v10226_v31  ;;  %v10230_v34 = vld [vmem:[#allocation13 + $0x84] ss:$16 sps:$4 sm:$0xff]   ;;  %v10232_v35 = vld [vmem:[#allocation13 + $0x8c] ss:$16 sps:$4 sm:$0xff]  }
0x11a0   : > { %10810 = vst [vmem:[#allocation66_spill] sm:$0xff] %v10230_v34  ;;  %10811 = vst [vmem:[#allocation67_spill] sm:$0xff] %v10232_v35 }
0x11a2   : > { %3382 = vmatpush1.bf16.msra.mxu0 %v10787_v36  ;;  %3425 = vmatpush1.bf16.msra.mxu1 %v10764_v32  ;;  %v10126_v32 = vld [vmem:[#allocation15 + $0x68] ss:$16 sps:$4 sm:$0xff]   ;;  %v10236_v36 = vld [vmem:[#allocation13 + $0x80] ss:$16 sps:$4 sm:$0xff]  }
0x11a3   : > { %3383 = vmatprep.subr.bf16.mxu0 %v10765_v24  ;;  %3426 = vmatprep.subr.bf16.mxu1 %v10766_v49  ;;  %v10130_v24 = vld [vmem:[#allocation15 + $0x84] ss:$16 sps:$4 sm:$0xff]   ;;  %v10132_v49 = vld [vmem:[#allocation15 + $0x8c] ss:$16 sps:$4 sm:$0xff]   ;;  %10812 = vst [vmem:[#allocation43_spill] sm:$0xff] %v10236_v36 }
0x11a4   : > { %10789 = vst [vmem:[#allocation42_spill] sm:$0xff] %v10132_v49 }
0x11a6   : > { %3384 = vmatpush1.bf16.msra.mxu0 %v10767_v50  ;;  %3427 = vmatpush1.bf16.msra.mxu1 %v10768_v52  ;;  %v10136_v50 = vld [vmem:[#allocation15 + $0x80] ss:$16 sps:$4 sm:$0xff]   ;;  %v10138_v52 = vld [vmem:[#allocation15 + $0x88] ss:$16 sps:$4 sm:$0xff]  }
0x11a7   : > { %3385 = vmatprep.subr.bf16.mxu0 %v10769_v28  ;;  %3428 = vmatprep.subr.bf16.mxu1 %v10770_v58  ;;  %v10788_v28 = vld [vmem:[#allocation63_spill] sm:$0xff]  ;;  %v10118_v58 = vld [vmem:[#allocation15 + $0x64] ss:$16 sps:$4 sm:$0xff]   ;;  %10790 = vst [vmem:[#allocation40_spill] sm:$0xff] %v10136_v50  ;;  %10791 = vst [vmem:[#allocation45_spill] sm:$0xff] %v10138_v52 }
0x11aa   : > { %3386 = vmatpush1.bf16.msra.mxu0 %v10771_v46  ;;  %3429 = vmatpush1.bf16.msra.mxu1 %v10772_v43  ;;  %v10120_v46 = vld [vmem:[#allocation15 + $0x6c] ss:$16 sps:$4 sm:$0xff]   ;;  %v10124_v43 = vld [vmem:[#allocation15 + $0x60] ss:$16 sps:$4 sm:$0xff]  }
0x11ab   : > { %3745 = vmatprep.subr.bf16.mxu0 %v10078_v37  ;;  %3788 = vmatprep.subr.bf16.mxu1 %v10080_v38 }
0x11ad   : > { %3404 = vmatmul.mubr.bf16.vlgmr.msra.gmra.mrb[44].mxu0 %v10788_v28  ;;  %3447 = vmatmul.mubr.bf16.vlgmr.msra.gmra.mrb[40].mxu1 %v10788_v28  ;;  %v10238_v28 = vld [vmem:[#allocation13 + $0x88] ss:$16 sps:$4 sm:$0xff]  }
0x11ae   : > { %3746 = vmatpush1.bf16.msra.mxu0 %v10084_v40  ;;  %3789 = vmatpush1.bf16.msra.mxu1 %v10086_v41  ;;  %10813 = vst [vmem:[#allocation48_spill] sm:$0xff] %v10238_v28 }
0x11af   : > { %3747 = vmatprep.subr.bf16.mxu0 %v10090_v44  ;;  %3790 = vmatprep.subr.bf16.mxu1 %v10092_v33 }
0x11b0   : > { %3777 = vmatprep.mubr.bf16.mxu0 %v10746_v60  ;;  %3820 = vmatprep.mubr.bf16.mxu1 %v10746_v60 }
0x11b2   : > { %3748 = vmatpush1.bf16.msra.mxu0 %v10098_v55  ;;  %3791 = vmatpush1.bf16.msra.mxu1 %v10100_v23 }
0x11b3   : > { %3749 = vmatprep.subr.bf16.mxu0 %v10104_v11  ;;  %3792 = vmatprep.subr.bf16.mxu1 %v10106_v0 }
0x11b6   : > { %3750 = vmatpush1.bf16.msra.mxu0 %v10112_v48  ;;  %3793 = vmatpush1.bf16.msra.mxu1 %v10114_v26 }
0x11b7   : > { %3751 = vmatprep.subr.bf16.mxu0 %v10118_v58  ;;  %3794 = vmatprep.subr.bf16.mxu1 %v10120_v46 }
0x11ba   : > { %3752 = vmatpush1.bf16.msra.mxu0 %v10124_v43  ;;  %3795 = vmatpush1.bf16.msra.mxu1 %v10126_v32 }
0x11bb   : > { %3753 = vmatprep.subr.bf16.mxu0 %v10130_v24  ;;  %3796 = vmatprep.subr.bf16.mxu1 %v10132_v49 }
0x11be   : > { %3754 = vmatpush1.bf16.msra.mxu0 %v10136_v50  ;;  %3797 = vmatpush1.bf16.msra.mxu1 %v10138_v52 }
0x11bf   : > { %3755 = vmatprep.subr.bf16.mxu0 %v10142_v1  ;;  %3798 = vmatprep.subr.bf16.mxu1 %v10144_v2 }
0x11c2   : > { %3756 = vmatpush1.bf16.msra.mxu0 %v10148_v4  ;;  %3799 = vmatpush1.bf16.msra.mxu1 %v10150_v21 }
0x11c3   : > { %3757 = vmatprep.subr.bf16.mxu0 %v10154_v6  ;;  %3800 = vmatprep.subr.bf16.mxu1 %v10156_v8 }
0x11c6   : > { %3758 = vmatpush1.bf16.msra.mxu0 %v10160_v61  ;;  %3801 = vmatpush1.bf16.msra.mxu1 %v10162_v9 }
0x11c7   : > { %3759 = vmatprep.subr.bf16.mxu0 %v10166_v10  ;;  %3802 = vmatprep.subr.bf16.mxu1 %v10168_v12 }
0x11ca   : > { %3760 = vmatpush1.bf16.msra.mxu0 %v10172_v14  ;;  %3803 = vmatpush1.bf16.msra.mxu1 %v10174_v15 }
0x11cb   : > { %3991 = vmatprep.subr.bf16.mxu0 %v10178_v16  ;;  %4034 = vmatprep.subr.bf16.mxu1 %v10180_v5 }
0x11cd   : > { %3778 = vmatmul.mubr.bf16.vlgmr.msra.gmra.mrb[48].mxu0 %v10746_v60  ;;  %3821 = vmatmul.mubr.bf16.vlgmr.msra.gmra.mrb[44].mxu1 %v10746_v60 }
0x11ce   : > { %3992 = vmatpush1.bf16.msra.mxu0 %v10184_v17  ;;  %4035 = vmatpush1.bf16.msra.mxu1 %v10186_v18 }
0x11cf   : > { %3993 = vmatprep.subr.bf16.mxu0 %v10190_v19  ;;  %4036 = vmatprep.subr.bf16.mxu1 %v10192_v22 }
0x11d0   : > { %4023 = vmatprep.mubr.bf16.mxu0 %v10746_v60  ;;  %4066 = vmatprep.mubr.bf16.mxu1 %v10746_v60 }
0x11d2   : > { %3994 = vmatpush1.bf16.msra.mxu0 %v10198_v27  ;;  %4037 = vmatpush1.bf16.msra.mxu1 %v10200_v29 }
0x11d3   : > { %3995 = vmatprep.subr.bf16.mxu0 %v10204_v47  ;;  %4038 = vmatprep.subr.bf16.mxu1 %v10206_v25 }
0x11d6   : > { %3996 = vmatpush1.bf16.msra.mxu0 %v10212_v45  ;;  %4039 = vmatpush1.bf16.msra.mxu1 %v10214_v56 }
0x11d7   : > { %3997 = vmatprep.subr.bf16.mxu0 %v10218_v54  ;;  %4040 = vmatprep.subr.bf16.mxu1 %v10220_v57  ;;  %v10244_v54 = vld [vmem:[#allocation13 + $0xac] ss:$16 sps:$4 sm:$0xff]   ;;  %v10248_v57 = vld [vmem:[#allocation13 + $0xa0] ss:$16 sps:$4 sm:$0xff]  }
0x11d8   : > { %10815 = vst [vmem:[#allocation49_spill] sm:$0xff] %v10244_v54  ;;  %10816 = vst [vmem:[#allocation47_spill] sm:$0xff] %v10248_v57 }
0x11da   : > { %3998 = vmatpush1.bf16.msra.mxu0 %v10224_v30  ;;  %4041 = vmatpush1.bf16.msra.mxu1 %v10226_v31  ;;  %v10250_v30 = vld [vmem:[#allocation13 + $0xa8] ss:$16 sps:$4 sm:$0xff]   ;;  %v10254_v31 = vld [vmem:[#allocation13 + $0xc4] ss:$16 sps:$4 sm:$0xff]  }
0x11db   : > { %3999 = vmatprep.subr.bf16.mxu0 %v10230_v34  ;;  %4042 = vmatprep.subr.bf16.mxu1 %v10232_v35  ;;  %v10256_v34 = vld [vmem:[#allocation13 + $0xcc] ss:$16 sps:$4 sm:$0xff]   ;;  %v10260_v35 = vld [vmem:[#allocation13 + $0xc0] ss:$16 sps:$4 sm:$0xff]  }
0x11dc   : > { %10817 = vst [vmem:[#allocation63_spill] sm:$0xff] %v10256_v34 }
0x11de   : > { %4000 = vmatpush1.bf16.msra.mxu0 %v10236_v36  ;;  %4043 = vmatpush1.bf16.msra.mxu1 %v10238_v28  ;;  %v10262_v36 = vld [vmem:[#allocation13 + $0xc8] ss:$16 sps:$4 sm:$0xff]   ;;  %v10266_v28 = vld [vmem:[#allocation13 + $0xe4] ss:$16 sps:$4 sm:$0xff]  }
0x11df   : > { %4001 = vmatprep.subr.bf16.mxu0 %v10242_v59  ;;  %4044 = vmatprep.subr.bf16.mxu1 %v10244_v54  ;;  %v10268_v59 = vld [vmem:[#allocation13 + $0xec] ss:$16 sps:$4 sm:$0xff]   ;;  %v10272_v54 = vld [vmem:[#allocation13 + $0xe0] ss:$16 sps:$4 sm:$0xff]  }
0x11e2   : > { %4002 = vmatpush1.bf16.msra.mxu0 %v10248_v57  ;;  %4045 = vmatpush1.bf16.msra.mxu1 %v10250_v30  ;;  %v10274_v57 = vld [vmem:[#allocation13 + $0xe8] ss:$16 sps:$4 sm:$0xff]  }
0x11e3   : > { %4003 = vmatprep.subr.bf16.mxu0 %v10254_v31  ;;  %4046 = vmatprep.subr.bf16.mxu1 %v10256_v34  ;;  %v10818_v34 = vld [vmem:[#allocation68_spill] sm:$0xff] }
0x11e6   : > { %4004 = vmatpush1.bf16.msra.mxu0 %v10260_v35  ;;  %4047 = vmatpush1.bf16.msra.mxu1 %v10262_v36 }
0x11e7   : > { %4005 = vmatprep.subr.bf16.mxu0 %v10266_v28  ;;  %4048 = vmatprep.subr.bf16.mxu1 %v10268_v59 }
0x11ea   : > { %4006 = vmatpush1.bf16.msra.mxu0 %v10272_v54  ;;  %4049 = vmatpush1.bf16.msra.mxu1 %v10274_v57 }
0x11eb   : > { %4134 = vmatprep.subr.bf16.mxu0 %v10078_v37  ;;  %4177 = vmatprep.subr.bf16.mxu1 %v10080_v38 }
0x11ed   : > { %4024 = vmatmul.mubr.bf16.vlgmr.msra.gmra.mrb[48].mxu0 %v10818_v34  ;;  %4067 = vmatmul.mubr.bf16.vlgmr.msra.gmra.mrb[44].mxu1 %v10818_v34 }
0x11ee   : > { %4135 = vmatpush1.bf16.msra.mxu0 %v10084_v40  ;;  %4178 = vmatpush1.bf16.msra.mxu1 %v10086_v41 }
0x11ef   : > { %4136 = vmatprep.subr.bf16.mxu0 %v10090_v44  ;;  %4179 = vmatprep.subr.bf16.mxu1 %v10092_v33 }
0x11f0   : > { %4166 = vmatprep.mubr.bf16.mxu0 %v10746_v60  ;;  %4209 = vmatprep.mubr.bf16.mxu1 %v10746_v60 }
0x11f2   : > { %4137 = vmatpush1.bf16.msra.mxu0 %v10098_v55  ;;  %4180 = vmatpush1.bf16.msra.mxu1 %v10100_v23 }
0x11f3   : > { %4138 = vmatprep.subr.bf16.mxu0 %v10104_v11  ;;  %4181 = vmatprep.subr.bf16.mxu1 %v10106_v0 }
0x11f6   : > { %4139 = vmatpush1.bf16.msra.mxu0 %v10112_v48  ;;  %4182 = vmatpush1.bf16.msra.mxu1 %v10114_v26 }
0x11f7   : > { %4140 = vmatprep.subr.bf16.mxu0 %v10118_v58  ;;  %4183 = vmatprep.subr.bf16.mxu1 %v10120_v46 }
0x11fa   : > { %4141 = vmatpush1.bf16.msra.mxu0 %v10124_v43  ;;  %4184 = vmatpush1.bf16.msra.mxu1 %v10126_v32 }
0x11fb   : > { %4142 = vmatprep.subr.bf16.mxu0 %v10130_v24  ;;  %4185 = vmatprep.subr.bf16.mxu1 %v10132_v49 }
0x11fe   : > { %4143 = vmatpush1.bf16.msra.mxu0 %v10136_v50  ;;  %4186 = vmatpush1.bf16.msra.mxu1 %v10138_v52 }
0x11ff   : > { %4144 = vmatprep.subr.bf16.mxu0 %v10142_v1  ;;  %4187 = vmatprep.subr.bf16.mxu1 %v10144_v2 }
0x1202   : > { %4145 = vmatpush1.bf16.msra.mxu0 %v10148_v4  ;;  %4188 = vmatpush1.bf16.msra.mxu1 %v10150_v21 }
0x1203   : > { %4146 = vmatprep.subr.bf16.mxu0 %v10154_v6  ;;  %4189 = vmatprep.subr.bf16.mxu1 %v10156_v8 }
0x1206   : > { %4147 = vmatpush1.bf16.msra.mxu0 %v10160_v61  ;;  %4190 = vmatpush1.bf16.msra.mxu1 %v10162_v9 }
0x1207   : > { %4148 = vmatprep.subr.bf16.mxu0 %v10166_v10  ;;  %4191 = vmatprep.subr.bf16.mxu1 %v10168_v12 }
0x120a   : > { %4149 = vmatpush1.bf16.msra.mxu0 %v10172_v14  ;;  %4192 = vmatpush1.bf16.msra.mxu1 %v10174_v15 }
0x120b   : > { %4220 = vmatprep.subr.bf16.mxu0 %v10178_v16  ;;  %4263 = vmatprep.subr.bf16.mxu1 %v10180_v5 }
0x1280   : > { %v3405_v34 = vpop.f32.mrb[44].mxu0  ;;  %v3448_v6 = vpop.f32.mrb[40].mxu1 }
0x1281   : > { %v3457_v8 = vadd.f32 %v3405_v34, %v10778_v62  ;;  %v3407_v21 = vpop.f32.mrb[45].mxu0  ;;  %v3450_v61 = vpop.f32.mrb[41].mxu1 }
0x1282   : > { %v3458_v9 = vadd.f32 %v3407_v21, %v10779_v3  ;;  %v3409_v4 = vpop.f32.mrb[46].mxu0  ;;  %v3452_v10 = vpop.f32.mrb[42].mxu1  ;;  %v3460_v49 = vadd.f32 %v3450_v61, %v9934_v42 }
0x1283   : > { %v3465_v2 = vsub.f32 0.0, %v3457_v8  ;;  %v3461_v12 = vadd.f32 %v3409_v4, %v10780_v7  ;;  %v3411_v14 = vpop.f32.mrb[47].mxu0  ;;  %v3454_v1 = vpop.f32.mrb[43].mxu1  ;;  %v3459_v4 = vadd.f32 %v3448_v6, %v9942_v53  ;;  %v3463_v42 = vadd.f32 %v3452_v10, %v10781_v63 }
0x1284   : > { %v3477_v15 = vsub.f32 0.0, %v3458_v9  ;;  %v3462_v16 = vadd.f32 %v3411_v14, %v9931_v51  ;;  %v3464_v3 = vadd.f32 %v3454_v1, %v9938_v39  ;;  %v3491_v8 = vsub.f32 0.0, %v3460_v49 }
0x1285   : > { %v3467_v52 = vmul.f32 1.442695, %v3465_v2  ;;  %v3466_v5 = vsub.f32 0.0, %v3461_v12 }
0x1286   : > { %v3479_v50 = vmul.f32 1.442695, %v3477_v15  ;;  %v3478_v62 = vsub.f32 0.0, %v3462_v16  ;;  %v3492_v7 = vsub.f32 0.0, %v3464_v3  ;;  %v3493_v9 = vmul.f32 1.442695, %v3491_v8 }
0x1287   : > { %8178 = vpow2.f32 %v3467_v52  ;;  %v3469_v34 = vmul.f32 1.442695, %v3466_v5 }
0x1288   : > { %8180 = vpow2.f32 %v3479_v50  ;;  %v3481_v21 = vmul.f32 1.442695, %v3478_v62  ;;  %v3495_v51 = vmul.f32 1.442695, %v3492_v7 }
0x1289   : > { %8182 = vpow2.f32 %v3469_v34 }
0x128a   : > { %8184 = vpow2.f32 %v3481_v21 }
0x128b   : > { %8186 = vtanh.f32 %v3459_v4 }
0x128c   : > { %8188 = vpow2.f32 %v3493_v9 }
0x128d   : > { %8190 = vpow2.f32 %v3495_v51 }
0x1291   : > { %v8179_v2 = vpop.eup %8178 }
0x1292   : > { %v8181_v12 = vpop.eup %8180  ;;  %v3471_v14 = vadd.f32 1.0, %v8179_v2 }
0x1293   : > { %v3483_v52 = vadd.f32 1.0, %v8181_v12  ;;  %v8183_v39 = vpop.eup %8182 }
0x1294   : > { %8192 = vrcp.f32 %v3471_v14  ;;  %v8185_v50 = vpop.eup %8184  ;;  %v3472_v49 = vadd.f32 1.0, %v8183_v39 }
0x1295   : > { %8194 = vrcp.f32 %v3483_v52  ;;  %v3484_v1 = vadd.f32 1.0, %v8185_v50  ;;  %v8187_v53 = vpop.eup %8186  ;;  %v10332_v50 = vld [vmem:[#allocation16 + $0x8] sm:$0xff] }
0x1296   : > { %8196 = vtanh.f32 %v3463_v42  ;;  %v8189_v6 = vpop.eup %8188 }
0x1297   : > { %8198 = vrcp.f32 %v3472_v49  ;;  %v8191_v61 = vpop.eup %8190  ;;  %v3497_v62 = vadd.f32 1.0, %v8189_v6 }
0x1298   : > { %8200 = vrcp.f32 %v3484_v1  ;;  %v3498_v7 = vadd.f32 1.0, %v8191_v61 }
0x1299   : > { %8202 = vrcp.f32 %v3497_v62 }
0x129e   : > { %v8193_v15 = vpop.eup %8192 }
0x129f   : > { %v8195_v16 = vpop.eup %8194  ;;  %v3505_v5 = vmul.f32 %v8193_v15, %v8187_v53  ;;  %v10334_v53 = vld [vmem:[#allocation16 + $0x20] sm:$0xff]  ;;  %v10337_v15 = vld [vmem:[#allocation16 + $0x28] sm:$0xff] }
0x12a0   : > { %v8197_v34 = vpop.eup %8196  ;;  %v3503_v63 = vmul.f32 %v8195_v16, %v10037_v20  ;;  %v10330_v20 = vld [vmem:[#allocation16] sm:$0xff] }
0x12a1   : > { %v8199_v10 = vpop.eup %8198 }
0x12a2   : > { %v8201_v3 = vpop.eup %8200  ;;  %v3507_v21 = vadd.f32 %v3505_v5, %v3503_v63  ;;  %v3506_v8 = vmul.f32 %v8199_v10, %v8197_v34  ;;  %v10340_v63 = vld [vmem:[#allocation16 + $0x18] sm:$0xff] }
0x12a3   : > { %v3504_v4 = vmul.f32 %v8201_v3, %v10041_v13  ;;  %v8203_v51 = vpop.eup %8202 }
0x12a4   : > { %8204 = vtanh.f32 %v3507_v21 }
0x12a5   : > { %v3508_v9 = vadd.f32 %v3506_v8, %v3504_v4  ;;  %8206 = vrcp.f32 %v3498_v7  ;;  %v10344_v4 = vld [vmem:[#allocation16 + $0x38] sm:$0xff] }
0x12a7   : > { %8208 = vtanh.f32 %v3508_v9 }
0x12ae   : > { %v8205_v2 = vpop.eup %8204 }
0x12af   : > { %v3511_v12 = vmul.f32 %v8205_v2, %v8203_v51  ;;  %v8207_v14 = vpop.eup %8206 }
0x12b1   : > { %v8209_v42 = vpop.eup %8208 }
0x12b2   : > { %v3512_v52 = vmul.f32 %v8209_v42, %v8207_v14 }
0x12b4   : > { %v10328_v39 = vpack.c.bf16 %v3512_v52, %v3511_v12 }
0x12c0   : > { %v4025_v49 = vpop.f32.mrb[48].mxu0  ;;  %v4068_v1 = vpop.f32.mrb[44].mxu1 }
0x12c1   : > { %v4077_v13 = vadd.f32 %v4025_v49, %v10330_v20  ;;  %v4027_v6 = vpop.f32.mrb[49].mxu0  ;;  %v4070_v61 = vpop.f32.mrb[45].mxu1 }
0x12c2   : > { %v4078_v16 = vadd.f32 %v4027_v6, %v10332_v50  ;;  %v4029_v5 = vpop.f32.mrb[50].mxu0  ;;  %v4072_v62 = vpop.f32.mrb[46].mxu1  ;;  %v4080_v12 = vadd.f32 %v4070_v61, %v10340_v63 }
0x12c3   : > { %v4085_v34 = vsub.f32 0.0, %v4077_v13  ;;  %v4081_v10 = vadd.f32 %v4029_v5, %v10334_v53  ;;  %v4031_v3 = vpop.f32.mrb[51].mxu0  ;;  %v4074_v21 = vpop.f32.mrb[47].mxu1  ;;  %v10348_v13 = vld [vmem:[#allocation16 + $0x10] sm:$0xff] }
0x12c4   : > { %v4097_v8 = vsub.f32 0.0, %v4078_v16  ;;  %v4082_v7 = vadd.f32 %v4031_v3, %v10337_v15  ;;  %v4084_v52 = vadd.f32 %v4074_v21, %v10344_v4  ;;  %v4111_v6 = vsub.f32 0.0, %v4080_v12 }
0x12c5   : > { %v4087_v9 = vmul.f32 1.442695, %v4085_v34  ;;  %v4086_v51 = vsub.f32 0.0, %v4081_v10  ;;  %v4079_v5 = vadd.f32 %v4068_v1, %v10348_v13  ;;  %v10351_v10 = vld [vmem:[#allocation16 + $0x30] sm:$0xff] }
0x12c6   : > { %v4099_v2 = vmul.f32 1.442695, %v4097_v8  ;;  %v4098_v14 = vsub.f32 0.0, %v4082_v7  ;;  %v4112_v16 = vsub.f32 0.0, %v4084_v52  ;;  %v4113_v34 = vmul.f32 1.442695, %v4111_v6 }
0x12c7   : > { %8210 = vpow2.f32 %v4087_v9  ;;  %v4089_v42 = vmul.f32 1.442695, %v4086_v51  ;;  %v4083_v21 = vadd.f32 %v4072_v62, %v10351_v10 }
0x12c8   : > { %8212 = vpow2.f32 %v4099_v2  ;;  %v4101_v49 = vmul.f32 1.442695, %v4098_v14  ;;  %v4115_v3 = vmul.f32 1.442695, %v4112_v16 }
0x12c9   : > { %8214 = vpow2.f32 %v4089_v42 }
0x12ca   : > { %8216 = vpow2.f32 %v4101_v49 }
0x12cb   : > { %8218 = vtanh.f32 %v4079_v5 }
0x12cc   : > { %8220 = vpow2.f32 %v4113_v34 }
0x12cd   : > { %8222 = vpow2.f32 %v4115_v3 }
0x12d1   : > { %v8211_v61 = vpop.eup %8210 }
0x12d2   : > { %v8213_v8 = vpop.eup %8212  ;;  %v4091_v7 = vadd.f32 1.0, %v8211_v61 }
0x12d3   : > { %v4103_v9 = vadd.f32 1.0, %v8213_v8  ;;  %v8215_v51 = vpop.eup %8214 }
0x12d4   : > { %8224 = vrcp.f32 %v4091_v7  ;;  %v8217_v2 = vpop.eup %8216  ;;  %v4092_v12 = vadd.f32 1.0, %v8215_v51 }
0x12d5   : > { %8226 = vrcp.f32 %v4103_v9  ;;  %v4104_v1 = vadd.f32 1.0, %v8217_v2  ;;  %v8219_v14 = vpop.eup %8218 }
0x12d6   : > { %8228 = vtanh.f32 %v4083_v21  ;;  %v8221_v42 = vpop.eup %8220 }
0x12d7   : > { %8230 = vrcp.f32 %v4092_v12  ;;  %v8223_v52 = vpop.eup %8222  ;;  %v4117_v62 = vadd.f32 1.0, %v8221_v42 }
0x12d8   : > { %8232 = vrcp.f32 %v4104_v1  ;;  %v4118_v9 = vadd.f32 1.0, %v8223_v52 }
0x12d9   : > { %8234 = vrcp.f32 %v4117_v62  ;;  %v10823_v62 = vld [vmem:[#allocation66_spill] sm:$0xff] }
0x12de   : > { %v8225_v49 = vpop.eup %8224 }
0x12df   : > { %v8227_v6 = vpop.eup %8226  ;;  %v4125_v16 = vmul.f32 %v8225_v49, %v8219_v14 }
0x12e0   : > { %v8229_v5 = vpop.eup %8228  ;;  %v4123_v34 = vmul.f32 0.0, %v8227_v6  ;;  %v10819_v6 = vld [vmem:[#allocation36_spill] sm:$0xff] }
0x12e1   : > { %v8231_v61 = vpop.eup %8230 }
0x12e2   : > { %v8233_v3 = vpop.eup %8232  ;;  %v10354_v8 = vadd.f32 %v4125_v16, %v4123_v34  ;;  %v4126_v7 = vmul.f32 %v8231_v61, %v8229_v5  ;;  %v10820_v16 = vld [vmem:[#allocation38_spill] sm:$0xff]  ;;  %v10821_v5 = vld [vmem:[#allocation64_spill] sm:$0xff]  ;;  %v10822_v34 = vld [vmem:[#allocation65_spill] sm:$0xff] }
0x12e3   : > { %v4124_v51 = vmul.f32 0.0, %v8233_v3  ;;  %v8235_v2 = vpop.eup %8234  ;;  %v10824_v61 = vld [vmem:[#allocation67_spill] sm:$0xff] }
0x12e4   : > { %8236 = vtanh.f32 %v10354_v8  ;;  %v10825_v3 = vld [vmem:[#allocation43_spill] sm:$0xff] }
0x12e5   : > { %v10357_v21 = vadd.f32 %v4126_v7, %v4124_v51  ;;  %8238 = vrcp.f32 %v4118_v9  ;;  %v10826_v7 = vld [vmem:[#allocation48_spill] sm:$0xff]  ;;  %v10828_v51 = vld [vmem:[#allocation49_spill] sm:$0xff] }
0x12e6   : > { %v10827_v9 = vld [vmem:[#allocation44_spill] sm:$0xff] }
0x12e7   : > { %8240 = vtanh.f32 %v10357_v21 }
0x12ee   : > { %v8237_v12 = vpop.eup %8236 }
0x12ef   : > { %v8239_v1 = vpop.eup %8238  ;;  %v10360_v42 = vmul.f32 %v8237_v12, %v8235_v2  ;;  %v10829_v2 = vld [vmem:[#allocation47_spill] sm:$0xff] }
0x12f0   : > { %v10830_v12 = vld [vmem:[#allocation63_spill] sm:$0xff] }
0x12f1   : > { %v8241_v14 = vpop.eup %8240 }
0x12f2   : > { %v10362_v49 = vmul.f32 %v8241_v14, %v8239_v1  ;;  %v10831_v1 = vld [vmem:[#allocation39_spill] sm:$0xff] }
0x12f4   : > { %v4133_v52 = vpack.c.bf16 %v10362_v49, %v10360_v42 }
0x12f6   : > { %4167 = vmatmul.mubr.bf16.vlgmr.msra.gmra.mrb[52].mxu0 %v4133_v52  ;;  %4210 = vmatmul.mubr.bf16.vlgmr.msra.gmra.mrb[48].mxu1 %v4133_v52 }
0x12f7   : > { %4221 = vmatpush1.bf16.msra.mxu0 %v10184_v17  ;;  %4264 = vmatpush1.bf16.msra.mxu1 %v10186_v18 }
0x12f8   : > { %4222 = vmatprep.subr.bf16.mxu0 %v10190_v19  ;;  %4265 = vmatprep.subr.bf16.mxu1 %v10192_v22 }
0x12f9   : > { %4252 = vmatprep.mubr.bf16.mxu0 %v10746_v60  ;;  %4295 = vmatprep.mubr.bf16.mxu1 %v10746_v60 }
0x12fb   : > { %4223 = vmatpush1.bf16.msra.mxu0 %v10198_v27  ;;  %4266 = vmatpush1.bf16.msra.mxu1 %v10200_v29 }
0x12fc   : > { %4224 = vmatprep.subr.bf16.mxu0 %v10204_v47  ;;  %4267 = vmatprep.subr.bf16.mxu1 %v10206_v25 }
0x12ff   : > { %4225 = vmatpush1.bf16.msra.mxu0 %v10212_v45  ;;  %4268 = vmatpush1.bf16.msra.mxu1 %v10214_v56 }
0x1300   : > { %4226 = vmatprep.subr.bf16.mxu0 %v10819_v6  ;;  %4269 = vmatprep.subr.bf16.mxu1 %v10820_v16 }
0x1303   : > { %4227 = vmatpush1.bf16.msra.mxu0 %v10821_v5  ;;  %4270 = vmatpush1.bf16.msra.mxu1 %v10822_v34 }
0x1304   : > { %4228 = vmatprep.subr.bf16.mxu0 %v10823_v62  ;;  %4271 = vmatprep.subr.bf16.mxu1 %v10824_v61 }
0x1307   : > { %4229 = vmatpush1.bf16.msra.mxu0 %v10825_v3  ;;  %4272 = vmatpush1.bf16.msra.mxu1 %v10826_v7 }
0x1308   : > { %4230 = vmatprep.subr.bf16.mxu0 %v10827_v9  ;;  %4273 = vmatprep.subr.bf16.mxu1 %v10828_v51 }
0x130b   : > { %4231 = vmatpush1.bf16.msra.mxu0 %v10829_v2  ;;  %4274 = vmatpush1.bf16.msra.mxu1 %v10250_v30 }
0x130c   : > { %4232 = vmatprep.subr.bf16.mxu0 %v10254_v31  ;;  %4275 = vmatprep.subr.bf16.mxu1 %v10830_v12 }
0x130f   : > { %4233 = vmatpush1.bf16.msra.mxu0 %v10260_v35  ;;  %4276 = vmatpush1.bf16.msra.mxu1 %v10262_v36 }
0x1310   : > { %4234 = vmatprep.subr.bf16.mxu0 %v10266_v28  ;;  %4277 = vmatprep.subr.bf16.mxu1 %v10268_v59 }
0x1313   : > { %4235 = vmatpush1.bf16.msra.mxu0 %v10272_v54  ;;  %4278 = vmatpush1.bf16.msra.mxu1 %v10274_v57 }
0x1314   : > { %4364 = vmatprep.subr.bf16.mxu0 %v10078_v37  ;;  %4407 = vmatprep.subr.bf16.mxu1 %v10080_v38  ;;  %v10832_v37 = vld [vmem:[#allocation42_spill] sm:$0xff]  ;;  %v10833_v38 = vld [vmem:[#allocation40_spill] sm:$0xff] }
0x1316   : > { %4253 = vmatmul.mubr.bf16.vlgmr.msra.gmra.mrb[52].mxu0 %v10831_v1  ;;  %4296 = vmatmul.mubr.bf16.vlgmr.msra.gmra.mrb[48].mxu1 %v10831_v1 }
0x1317   : > { %4365 = vmatpush1.bf16.msra.mxu0 %v10084_v40  ;;  %4408 = vmatpush1.bf16.msra.mxu1 %v10086_v41  ;;  %v10834_v40 = vld [vmem:[#allocation45_spill] sm:$0xff] }
0x1318   : > { %4366 = vmatprep.subr.bf16.mxu0 %v10090_v44  ;;  %4409 = vmatprep.subr.bf16.mxu1 %v10092_v33  ;;  %v10835_v41 = vld [vmem:[#allocation41_spill] sm:$0xff]  ;;  %v10836_v44 = vld [vmem:[#allocation46_spill] sm:$0xff] }
0x1319   : > { %4396 = vmatprep.mubr.bf16.mxu0 %v10746_v60  ;;  %4439 = vmatprep.mubr.bf16.mxu1 %v10746_v60  ;;  %v10837_v33 = vld [vmem:[#allocation50_spill] sm:$0xff] }
0x131b   : > { %4367 = vmatpush1.bf16.msra.mxu0 %v10098_v55  ;;  %4410 = vmatpush1.bf16.msra.mxu1 %v10100_v23  ;;  %v10838_v55 = vld [vmem:[#allocation51_spill] sm:$0xff]  ;;  %v10839_v23 = vld [vmem:[#allocation52_spill] sm:$0xff] }
0x131c   : > { %4368 = vmatprep.subr.bf16.mxu0 %v10104_v11  ;;  %4411 = vmatprep.subr.bf16.mxu1 %v10106_v0  ;;  %v10840_v11 = vld [vmem:[#allocation53_spill] sm:$0xff]  ;;  %v10841_v0 = vld [vmem:[#allocation54_spill] sm:$0xff] }
0x131f   : > { %4369 = vmatpush1.bf16.msra.mxu0 %v10112_v48  ;;  %4412 = vmatpush1.bf16.msra.mxu1 %v10114_v26  ;;  %v10842_v48 = vld [vmem:[#allocation55_spill] sm:$0xff]  ;;  %v10843_v26 = vld [vmem:[#allocation56_spill] sm:$0xff] }
0x1320   : > { %4370 = vmatprep.subr.bf16.mxu0 %v10118_v58  ;;  %4413 = vmatprep.subr.bf16.mxu1 %v10120_v46  ;;  %v10844_v58 = vld [vmem:[#allocation57_spill] sm:$0xff]  ;;  %v10845_v46 = vld [vmem:[#allocation58_spill] sm:$0xff] }
0x1323   : > { %4371 = vmatpush1.bf16.msra.mxu0 %v10124_v43  ;;  %4414 = vmatpush1.bf16.msra.mxu1 %v10126_v32  ;;  %v10846_v43 = vld [vmem:[#allocation34_spill] sm:$0xff]  ;;  %v10847_v32 = vld [vmem:[#allocation35_spill] sm:$0xff] }
0x1324   : > { %4372 = vmatprep.subr.bf16.mxu0 %v10130_v24  ;;  %4415 = vmatprep.subr.bf16.mxu1 %v10832_v37  ;;  %v10848_v24 = vld [vmem:[#allocation37_spill] sm:$0xff] }
0x1327   : > { %4373 = vmatpush1.bf16.msra.mxu0 %v10833_v38  ;;  %4416 = vmatpush1.bf16.msra.mxu1 %v10834_v40 }
0x1328   : > { %4374 = vmatprep.subr.bf16.mxu0 %v10835_v41  ;;  %4417 = vmatprep.subr.bf16.mxu1 %v10836_v44 }
0x132b   : > { %4375 = vmatpush1.bf16.msra.mxu0 %v10837_v33  ;;  %4418 = vmatpush1.bf16.msra.mxu1 %v10838_v55 }
0x132c   : > { %4376 = vmatprep.subr.bf16.mxu0 %v10839_v23  ;;  %4419 = vmatprep.subr.bf16.mxu1 %v10840_v11 }
0x132f   : > { %4377 = vmatpush1.bf16.msra.mxu0 %v10841_v0  ;;  %4420 = vmatpush1.bf16.msra.mxu1 %v10842_v48 }
0x1330   : > { %4378 = vmatprep.subr.bf16.mxu0 %v10843_v26  ;;  %4421 = vmatprep.subr.bf16.mxu1 %v10844_v58 }
0x1333   : > { %4379 = vmatpush1.bf16.msra.mxu0 %v10845_v46  ;;  %4422 = vmatpush1.bf16.msra.mxu1 %v10846_v43 }
0x1334   : > { %4450 = vmatprep.subr.bf16.mxu0 %v10847_v32  ;;  %4493 = vmatprep.subr.bf16.mxu1 %v10848_v24 }
0x13e9   : > { %v4254_v14 = vpop.f32.mrb[52].mxu0  ;;  %v4297_v52 = vpop.f32.mrb[48].mxu1 }
0x13ea   : > { %v4306_v1 = vadd.f32 %v4254_v14, %v10330_v20  ;;  %v4256_v37 = vpop.f32.mrb[53].mxu0  ;;  %v4299_v38 = vpop.f32.mrb[49].mxu1 }
0x13eb   : > { %v4307_v40 = vadd.f32 %v4256_v37, %v10332_v50  ;;  %v4258_v41 = vpop.f32.mrb[54].mxu0  ;;  %v4301_v44 = vpop.f32.mrb[50].mxu1  ;;  %v4309_v43 = vadd.f32 %v4299_v38, %v10340_v63 }
0x13ec   : > { %v4314_v33 = vsub.f32 0.0, %v4306_v1  ;;  %v4310_v55 = vadd.f32 %v4258_v41, %v10334_v53  ;;  %v4260_v23 = vpop.f32.mrb[55].mxu0  ;;  %v4303_v11 = vpop.f32.mrb[51].mxu1  ;;  %v4308_v1 = vadd.f32 %v4297_v52, %v10348_v13  ;;  %v4312_v63 = vadd.f32 %v4301_v44, %v10351_v10 }
0x13ed   : > { %v4326_v0 = vsub.f32 0.0, %v4307_v40  ;;  %v4311_v48 = vadd.f32 %v4260_v23, %v10337_v15  ;;  %v4313_v50 = vadd.f32 %v4303_v11, %v10344_v4  ;;  %v4340_v14 = vsub.f32 0.0, %v4309_v43 }
0x13ee   : > { %v4316_v26 = vmul.f32 1.442695, %v4314_v33  ;;  %v4315_v58 = vsub.f32 0.0, %v4310_v55 }
0x13ef   : > { %v4328_v46 = vmul.f32 1.442695, %v4326_v0  ;;  %v4327_v20 = vsub.f32 0.0, %v4311_v48  ;;  %v4341_v53 = vsub.f32 0.0, %v4313_v50  ;;  %v4342_v37 = vmul.f32 1.442695, %v4340_v14 }
0x13f0   : > { %8242 = vpow2.f32 %v4316_v26  ;;  %v4318_v32 = vmul.f32 1.442695, %v4315_v58 }
0x13f1   : > { %8244 = vpow2.f32 %v4328_v46  ;;  %v4330_v24 = vmul.f32 1.442695, %v4327_v20  ;;  %v4344_v15 = vmul.f32 1.442695, %v4341_v53 }
0x13f2   : > { %8246 = vpow2.f32 %v4318_v32 }
0x13f3   : > { %8248 = vpow2.f32 %v4330_v24 }
0x13f4   : > { %8250 = vtanh.f32 %v4308_v1 }
0x13f5   : > { %8252 = vpow2.f32 %v4342_v37 }
0x13f6   : > { %8254 = vpow2.f32 %v4344_v15 }
0x13fa   : > { %v8243_v40 = vpop.eup %8242 }
0x13fb   : > { %v8245_v41 = vpop.eup %8244  ;;  %v4320_v33 = vadd.f32 1.0, %v8243_v40 }
0x13fc   : > { %v4332_v38 = vadd.f32 1.0, %v8245_v41  ;;  %v8247_v4 = vpop.eup %8246 }
0x13fd   : > { %8256 = vrcp.f32 %v4320_v33  ;;  %v8249_v55 = vpop.eup %8248  ;;  %v4321_v23 = vadd.f32 1.0, %v8247_v4  ;;  %v7874_v4 = vld [vmem:[#allocation18 + $0x100] ss:$16 sps:$4 sm:$0xff]  }
0x13fe   : > { %8258 = vrcp.f32 %v4332_v38  ;;  %v4333_v11 = vadd.f32 1.0, %v8249_v55  ;;  %v8251_v13 = vpop.eup %8250  ;;  %v7879_v38 = vld [vmem:[#allocation18 + $0x10c] ss:$16 sps:$4 sm:$0xff]   ;;  %v7877_v55 = vld [vmem:[#allocation18 + $0x108] ss:$16 sps:$4 sm:$0xff]  }
0x13ff   : > { %8260 = vtanh.f32 %v4312_v63  ;;  %v8253_v52 = vpop.eup %8252  ;;  %v7876_v63 = vld [vmem:[#allocation18 + $0x104] ss:$16 sps:$4 sm:$0xff]  }
0x1400   : > { %8262 = vrcp.f32 %v4321_v23  ;;  %v8255_v0 = vpop.eup %8254  ;;  %v4346_v44 = vadd.f32 1.0, %v8253_v52  ;;  %v7882_v23 = vld [vmem:[#allocation18 + $0x124] ss:$16 sps:$4 sm:$0xff]   ;;  %v7880_v52 = vld [vmem:[#allocation18 + $0x120] ss:$16 sps:$4 sm:$0xff]  }
0x1401   : > { %8264 = vrcp.f32 %v4333_v11  ;;  %v4347_v24 = vadd.f32 1.0, %v8255_v0  ;;  %v7885_v11 = vld [vmem:[#allocation18 + $0x12c] ss:$16 sps:$4 sm:$0xff]   ;;  %v7883_v0 = vld [vmem:[#allocation18 + $0x128] ss:$16 sps:$4 sm:$0xff]  }
0x1402   : > { %8266 = vrcp.f32 %v4346_v44  ;;  %v7897_v44 = vld [vmem:[#allocation18 + $0x16c] ss:$16 sps:$4 sm:$0xff]  }
0x1407   : > { %v8257_v48 = vpop.eup %8256 }
0x1408   : > { %v8259_v26 = vpop.eup %8258  ;;  %v4354_v58 = vmul.f32 %v8257_v48, %v8251_v13  ;;  %v10849_v13 = vld [vmem:[#allocation59_spill] sm:$0xff]  ;;  %v7888_v48 = vld [vmem:[#allocation18 + $0x144] ss:$16 sps:$4 sm:$0xff]  }
0x1409   : > { %v8261_v46 = vpop.eup %8260  ;;  %v4352_v10 = vmul.f32 %v8259_v26, %v10354_v8  ;;  %v7891_v26 = vld [vmem:[#allocation18 + $0x14c] ss:$16 sps:$4 sm:$0xff]  }
0x140a   : > { %v8263_v43 = vpop.eup %8262 }
0x140b   : > { %v8265_v20 = vpop.eup %8264  ;;  %v10445_v32 = vadd.f32 %v4354_v58, %v4352_v10  ;;  %v4355_v50 = vmul.f32 %v8263_v43, %v8261_v46  ;;  %v7886_v58 = vld [vmem:[#allocation18 + $0x140] ss:$16 sps:$4 sm:$0xff]   ;;  %v7889_v46 = vld [vmem:[#allocation18 + $0x148] ss:$16 sps:$4 sm:$0xff]   ;;  %v7894_v10 = vld [vmem:[#allocation18 + $0x164] ss:$16 sps:$4 sm:$0xff]  }
0x140c   : > { %v4353_v14 = vmul.f32 %v8265_v20, %v10357_v21  ;;  %v8267_v1 = vpop.eup %8266  ;;  %v7853_v21 = vld [vmem:[#allocation18 + $0x88] ss:$16 sps:$4 sm:$0xff]   ;;  %v7892_v43 = vld [vmem:[#allocation18 + $0x160] ss:$16 sps:$4 sm:$0xff]  }
0x140d   : > { %8268 = vtanh.f32 %v10445_v32  ;;  %v7895_v20 = vld [vmem:[#allocation18 + $0x168] ss:$16 sps:$4 sm:$0xff]  }
0x140e   : > { %v10449_v53 = vadd.f32 %v4355_v50, %v4353_v14  ;;  %8270 = vrcp.f32 %v4347_v24  ;;  %v7900_v50 = vld [vmem:[#allocation18 + $0x184] ss:$16 sps:$4 sm:$0xff]   ;;  %v7903_v24 = vld [vmem:[#allocation18 + $0x18c] ss:$16 sps:$4 sm:$0xff]   ;;  %v7898_v14 = vld [vmem:[#allocation18 + $0x180] ss:$16 sps:$4 sm:$0xff]  }
0x1410   : > { %8272 = vtanh.f32 %v10449_v53 }
0x1417   : > { %v8269_v37 = vpop.eup %8268 }
0x1418   : > { %v8271_v8 = vpop.eup %8270  ;;  %v10452_v40 = vmul.f32 %v8269_v37, %v8267_v1  ;;  %v7901_v1 = vld [vmem:[#allocation18 + $0x188] ss:$16 sps:$4 sm:$0xff]   ;;  %v7906_v37 = vld [vmem:[#allocation18 + $0x1a4] ss:$16 sps:$4 sm:$0xff]  }
0x141a   : > { %v8273_v15 = vpop.eup %8272 }
0x141b   : > { %v10454_v41 = vmul.f32 %v8273_v15, %v8271_v8  ;;  %v7909_v8 = vld [vmem:[#allocation18 + $0x1ac] ss:$16 sps:$4 sm:$0xff]   ;;  %v7904_v15 = vld [vmem:[#allocation18 + $0x1a0] ss:$16 sps:$4 sm:$0xff]  }
0x141d   : > { %v4363_v33 = vpack.c.bf16 %v10454_v41, %v10452_v40 }
0x141f   : > { %4397 = vmatmul.mubr.bf16.vlgmr.msra.gmra.mrb[56].mxu0 %v4363_v33  ;;  %4440 = vmatmul.mubr.bf16.vlgmr.msra.gmra.mrb[52].mxu1 %v4363_v33  ;;  %v7907_v33 = vld [vmem:[#allocation18 + $0x1a8] ss:$16 sps:$4 sm:$0xff]  }
0x1420   : > { %4451 = vmatpush1.bf16.msra.mxu0 %v10184_v17  ;;  %4494 = vmatpush1.bf16.msra.mxu1 %v10186_v18  ;;  %v7828_v17 = vld [vmem:[#allocation18 + $0x4] ss:$16 sps:$4 sm:$0xff]   ;;  %v7831_v18 = vld [vmem:[#allocation18 + $0xc] ss:$16 sps:$4 sm:$0xff]  }
0x1421   : > { %4452 = vmatprep.subr.bf16.mxu0 %v10190_v19  ;;  %4495 = vmatprep.subr.bf16.mxu1 %v10192_v22  ;;  %v7826_v19 = vld [vmem:[#allocation18] ss:$16 sps:$4 sm:$0xff]   ;;  %v7829_v22 = vld [vmem:[#allocation18 + $0x8] ss:$16 sps:$4 sm:$0xff]  }
0x1422   : > { %4482 = vmatprep.mubr.bf16.mxu0 %v10746_v60  ;;  %4525 = vmatprep.mubr.bf16.mxu1 %v10746_v60 }
0x1424   : > { %4453 = vmatpush1.bf16.msra.mxu0 %v10198_v27  ;;  %4496 = vmatpush1.bf16.msra.mxu1 %v10200_v29  ;;  %v7834_v27 = vld [vmem:[#allocation18 + $0x24] ss:$16 sps:$4 sm:$0xff]   ;;  %v7837_v29 = vld [vmem:[#allocation18 + $0x2c] ss:$16 sps:$4 sm:$0xff]  }
0x1425   : > { %4454 = vmatprep.subr.bf16.mxu0 %v10204_v47  ;;  %4497 = vmatprep.subr.bf16.mxu1 %v10206_v25  ;;  %v7832_v47 = vld [vmem:[#allocation18 + $0x20] ss:$16 sps:$4 sm:$0xff]   ;;  %v7840_v25 = vld [vmem:[#allocation18 + $0x44] ss:$16 sps:$4 sm:$0xff]  }
0x1428   : > { %4455 = vmatpush1.bf16.msra.mxu0 %v10212_v45  ;;  %4498 = vmatpush1.bf16.msra.mxu1 %v10214_v56  ;;  %v7843_v45 = vld [vmem:[#allocation18 + $0x4c] ss:$16 sps:$4 sm:$0xff]   ;;  %v7838_v56 = vld [vmem:[#allocation18 + $0x40] ss:$16 sps:$4 sm:$0xff]  }
0x1429   : > { %4456 = vmatprep.subr.bf16.mxu0 %v10819_v6  ;;  %4499 = vmatprep.subr.bf16.mxu1 %v10820_v16  ;;  %v7858_v6 = vld [vmem:[#allocation18 + $0xa4] ss:$16 sps:$4 sm:$0xff]   ;;  %v7861_v16 = vld [vmem:[#allocation18 + $0xac] ss:$16 sps:$4 sm:$0xff]  }
0x142c   : > { %4457 = vmatpush1.bf16.msra.mxu0 %v10821_v5  ;;  %4500 = vmatpush1.bf16.msra.mxu1 %v10822_v34  ;;  %v7856_v5 = vld [vmem:[#allocation18 + $0xa0] ss:$16 sps:$4 sm:$0xff]   ;;  %v7859_v34 = vld [vmem:[#allocation18 + $0xa8] ss:$16 sps:$4 sm:$0xff]  }
0x142d   : > { %4458 = vmatprep.subr.bf16.mxu0 %v10823_v62  ;;  %4501 = vmatprep.subr.bf16.mxu1 %v10824_v61  ;;  %v7864_v62 = vld [vmem:[#allocation18 + $0xc4] ss:$16 sps:$4 sm:$0xff]   ;;  %v7867_v61 = vld [vmem:[#allocation18 + $0xcc] ss:$16 sps:$4 sm:$0xff]  }
0x1430   : > { %4459 = vmatpush1.bf16.msra.mxu0 %v10825_v3  ;;  %4502 = vmatpush1.bf16.msra.mxu1 %v10826_v7  ;;  %v7862_v3 = vld [vmem:[#allocation18 + $0xc0] ss:$16 sps:$4 sm:$0xff]   ;;  %v7865_v7 = vld [vmem:[#allocation18 + $0xc8] ss:$16 sps:$4 sm:$0xff]  }
0x1431   : > { %4460 = vmatprep.subr.bf16.mxu0 %v10827_v9  ;;  %4503 = vmatprep.subr.bf16.mxu1 %v10828_v51  ;;  %v7870_v9 = vld [vmem:[#allocation18 + $0xe4] ss:$16 sps:$4 sm:$0xff]   ;;  %v7873_v51 = vld [vmem:[#allocation18 + $0xec] ss:$16 sps:$4 sm:$0xff]  }
0x1434   : > { %4461 = vmatpush1.bf16.msra.mxu0 %v10829_v2  ;;  %4504 = vmatpush1.bf16.msra.mxu1 %v10250_v30  ;;  %v7849_v30 = vld [vmem:[#allocation18 + $0x6c] ss:$16 sps:$4 sm:$0xff]   ;;  %v7868_v2 = vld [vmem:[#allocation18 + $0xe0] ss:$16 sps:$4 sm:$0xff]  }
0x1435   : > { %4462 = vmatprep.subr.bf16.mxu0 %v10254_v31  ;;  %4505 = vmatprep.subr.bf16.mxu1 %v10830_v12  ;;  %v7844_v31 = vld [vmem:[#allocation18 + $0x60] ss:$16 sps:$4 sm:$0xff]   ;;  %v7871_v12 = vld [vmem:[#allocation18 + $0xe8] ss:$16 sps:$4 sm:$0xff]  }
0x1438   : > { %4463 = vmatpush1.bf16.msra.mxu0 %v10260_v35  ;;  %4506 = vmatpush1.bf16.msra.mxu1 %v10262_v36  ;;  %v7847_v35 = vld [vmem:[#allocation18 + $0x68] ss:$16 sps:$4 sm:$0xff]   ;;  %v7852_v36 = vld [vmem:[#allocation18 + $0x84] ss:$16 sps:$4 sm:$0xff]  }
0x1439   : > { %4464 = vmatprep.subr.bf16.mxu0 %v10266_v28  ;;  %4507 = vmatprep.subr.bf16.mxu1 %v10268_v59  ;;  %v7835_v59 = vld [vmem:[#allocation18 + $0x28] ss:$16 sps:$4 sm:$0xff]   ;;  %v7855_v28 = vld [vmem:[#allocation18 + $0x8c] ss:$16 sps:$4 sm:$0xff]  }
0x143c   : > { %4465 = vmatpush1.bf16.msra.mxu0 %v10272_v54  ;;  %4508 = vmatpush1.bf16.msra.mxu1 %v10274_v57  ;;  %v7841_v54 = vld [vmem:[#allocation18 + $0x48] ss:$16 sps:$4 sm:$0xff]   ;;  %v7846_v57 = vld [vmem:[#allocation18 + $0x64] ss:$16 sps:$4 sm:$0xff]  }
0x143d   : > { %4803 = vmatprep.subr.bf16.mxu0 %v7828_v17  ;;  %4846 = vmatprep.subr.bf16.mxu1 %v7831_v18  ;;  %v7912_v17 = vld [vmem:[#allocation18 + $0x1c4] ss:$16 sps:$4 sm:$0xff]   ;;  %v7915_v18 = vld [vmem:[#allocation18 + $0x1cc] ss:$16 sps:$4 sm:$0xff]  }
0x143f   : > { %4483 = vmatmul.mubr.bf16.vlgmr.msra.gmra.mrb[56].mxu0 %v10328_v39  ;;  %4526 = vmatmul.mubr.bf16.vlgmr.msra.gmra.mrb[52].mxu1 %v10328_v39  ;;  %v7850_v39 = vld [vmem:[#allocation18 + $0x80] ss:$16 sps:$4 sm:$0xff]  }
0x1440   : > { %4804 = vmatpush1.bf16.msra.mxu0 %v7826_v19  ;;  %4847 = vmatpush1.bf16.msra.mxu1 %v7829_v22  ;;  %v7910_v19 = vld [vmem:[#allocation18 + $0x1c0] ss:$16 sps:$4 sm:$0xff]   ;;  %v7913_v22 = vld [vmem:[#allocation18 + $0x1c8] ss:$16 sps:$4 sm:$0xff]  }
0x1441   : > { %4805 = vmatprep.subr.bf16.mxu0 %v7834_v27  ;;  %4848 = vmatprep.subr.bf16.mxu1 %v7837_v29  ;;  %v7918_v27 = vld [vmem:[#allocation18 + $0x1e4] ss:$16 sps:$4 sm:$0xff]   ;;  %v7921_v29 = vld [vmem:[#allocation18 + $0x1ec] ss:$16 sps:$4 sm:$0xff]  }
0x1442   : > { %4835 = vmatprep.mubr.bf16.mxu0 %v10746_v60  ;;  %4878 = vmatprep.mubr.bf16.mxu1 %v10746_v60 }
0x1444   : > { %4806 = vmatpush1.bf16.msra.mxu0 %v7832_v47  ;;  %4849 = vmatpush1.bf16.msra.mxu1 %v7835_v59  ;;  %v7916_v47 = vld [vmem:[#allocation18 + $0x1e0] ss:$16 sps:$4 sm:$0xff]   ;;  %v7919_v59 = vld [vmem:[#allocation18 + $0x1e8] ss:$16 sps:$4 sm:$0xff]  }
0x1445   : > { %4807 = vmatprep.subr.bf16.mxu0 %v7840_v25  ;;  %4850 = vmatprep.subr.bf16.mxu1 %v7843_v45  ;;  %v7924_v25 = vld [vmem:[#allocation18 + $0x204] ss:$16 sps:$4 sm:$0xff]   ;;  %v7927_v45 = vld [vmem:[#allocation18 + $0x20c] ss:$16 sps:$4 sm:$0xff]  }
0x1448   : > { %4808 = vmatpush1.bf16.msra.mxu0 %v7838_v56  ;;  %4851 = vmatpush1.bf16.msra.mxu1 %v7841_v54  ;;  %v7922_v56 = vld [vmem:[#allocation18 + $0x200] ss:$16 sps:$4 sm:$0xff]   ;;  %v7925_v54 = vld [vmem:[#allocation18 + $0x208] ss:$16 sps:$4 sm:$0xff]  }
0x1449   : > { %4809 = vmatprep.subr.bf16.mxu0 %v7846_v57  ;;  %4852 = vmatprep.subr.bf16.mxu1 %v7849_v30  ;;  %v7930_v57 = vld [vmem:[#allocation18 + $0x224] ss:$16 sps:$4 sm:$0xff]   ;;  %v7933_v30 = vld [vmem:[#allocation18 + $0x22c] ss:$16 sps:$4 sm:$0xff]  }
0x144c   : > { %4810 = vmatpush1.bf16.msra.mxu0 %v7844_v31  ;;  %4853 = vmatpush1.bf16.msra.mxu1 %v7847_v35  ;;  %v10850_v31 = vld [vmem:[#allocation60_spill] sm:$0xff] }
0x144d   : > { %4811 = vmatprep.subr.bf16.mxu0 %v7852_v36  ;;  %4854 = vmatprep.subr.bf16.mxu1 %v7855_v28  ;;  %v7928_v35 = vld [vmem:[#allocation18 + $0x220] ss:$16 sps:$4 sm:$0xff]   ;;  %v7931_v36 = vld [vmem:[#allocation18 + $0x228] ss:$16 sps:$4 sm:$0xff]   ;;  %v7936_v28 = vld [vmem:[#allocation18 + $0x244] ss:$16 sps:$4 sm:$0xff]  }
0x1450   : > { %4812 = vmatpush1.bf16.msra.mxu0 %v7850_v39  ;;  %4855 = vmatpush1.bf16.msra.mxu1 %v7853_v21  ;;  %v7939_v39 = vld [vmem:[#allocation18 + $0x24c] ss:$16 sps:$4 sm:$0xff]   ;;  %v7934_v21 = vld [vmem:[#allocation18 + $0x240] ss:$16 sps:$4 sm:$0xff]  }
0x1451   : > { %4813 = vmatprep.subr.bf16.mxu0 %v7858_v6  ;;  %4856 = vmatprep.subr.bf16.mxu1 %v7861_v16  ;;  %v7937_v6 = vld [vmem:[#allocation18 + $0x248] ss:$16 sps:$4 sm:$0xff]   ;;  %v7942_v16 = vld [vmem:[#allocation18 + $0x264] ss:$16 sps:$4 sm:$0xff]  }
0x1454   : > { %4814 = vmatpush1.bf16.msra.mxu0 %v7856_v5  ;;  %4857 = vmatpush1.bf16.msra.mxu1 %v7859_v34  ;;  %v7945_v5 = vld [vmem:[#allocation18 + $0x26c] ss:$16 sps:$4 sm:$0xff]   ;;  %v7940_v34 = vld [vmem:[#allocation18 + $0x260] ss:$16 sps:$4 sm:$0xff]  }
0x1455   : > { %4815 = vmatprep.subr.bf16.mxu0 %v7864_v62  ;;  %4858 = vmatprep.subr.bf16.mxu1 %v7867_v61  ;;  %v7943_v62 = vld [vmem:[#allocation18 + $0x268] ss:$16 sps:$4 sm:$0xff]   ;;  %v7948_v61 = vld [vmem:[#allocation18 + $0x284] ss:$16 sps:$4 sm:$0xff]  }
0x1458   : > { %4816 = vmatpush1.bf16.msra.mxu0 %v7862_v3  ;;  %4859 = vmatpush1.bf16.msra.mxu1 %v7865_v7  ;;  %v7951_v3 = vld [vmem:[#allocation18 + $0x28c] ss:$16 sps:$4 sm:$0xff]   ;;  %v7946_v7 = vld [vmem:[#allocation18 + $0x280] ss:$16 sps:$4 sm:$0xff]  }
0x1459   : > { %4817 = vmatprep.subr.bf16.mxu0 %v7870_v9  ;;  %4860 = vmatprep.subr.bf16.mxu1 %v7873_v51  ;;  %v7949_v9 = vld [vmem:[#allocation18 + $0x288] ss:$16 sps:$4 sm:$0xff]   ;;  %v7954_v51 = vld [vmem:[#allocation18 + $0x2a4] ss:$16 sps:$4 sm:$0xff]  }
0x145c   : > { %4818 = vmatpush1.bf16.msra.mxu0 %v7868_v2  ;;  %4861 = vmatpush1.bf16.msra.mxu1 %v7871_v12  ;;  %v7957_v2 = vld [vmem:[#allocation18 + $0x2ac] ss:$16 sps:$4 sm:$0xff]   ;;  %v7952_v12 = vld [vmem:[#allocation18 + $0x2a0] ss:$16 sps:$4 sm:$0xff]  }
0x145d   : > { %5090 = vmatprep.subr.bf16.mxu0 %v7876_v63  ;;  %5133 = vmatprep.subr.bf16.mxu1 %v7879_v38  ;;  %v7955_v63 = vld [vmem:[#allocation18 + $0x2a8] ss:$16 sps:$4 sm:$0xff]   ;;  %v7960_v38 = vld [vmem:[#allocation18 + $0x2c4] ss:$16 sps:$4 sm:$0xff]  }
0x145f   : > { %4836 = vmatmul.mubr.bf16.vlgmr.msra.gmra.mrb[60].mxu0 %v10849_v13  ;;  %4879 = vmatmul.mubr.bf16.vlgmr.msra.gmra.mrb[56].mxu1 %v10849_v13  ;;  %v7969_v13 = vld [vmem:[#allocation18 + $0x2ec] ss:$16 sps:$4 sm:$0xff]  }
0x1460   : > { %5091 = vmatpush1.bf16.msra.mxu0 %v7874_v4  ;;  %5134 = vmatpush1.bf16.msra.mxu1 %v7877_v55  ;;  %v7963_v4 = vld [vmem:[#allocation18 + $0x2cc] ss:$16 sps:$4 sm:$0xff]   ;;  %v7958_v55 = vld [vmem:[#allocation18 + $0x2c0] ss:$16 sps:$4 sm:$0xff]  }
0x1461   : > { %5092 = vmatprep.subr.bf16.mxu0 %v7882_v23  ;;  %5135 = vmatprep.subr.bf16.mxu1 %v7885_v11  ;;  %v7961_v23 = vld [vmem:[#allocation18 + $0x2c8] ss:$16 sps:$4 sm:$0xff]   ;;  %v7966_v11 = vld [vmem:[#allocation18 + $0x2e4] ss:$16 sps:$4 sm:$0xff]  }
0x1462   : > { %5122 = vmatprep.mubr.bf16.mxu0 %v10746_v60  ;;  %5165 = vmatprep.mubr.bf16.mxu1 %v10746_v60 }
0x1464   : > { %5093 = vmatpush1.bf16.msra.mxu0 %v7880_v52  ;;  %5136 = vmatpush1.bf16.msra.mxu1 %v7883_v0  ;;  %v7964_v52 = vld [vmem:[#allocation18 + $0x2e0] ss:$16 sps:$4 sm:$0xff]   ;;  %v7967_v0 = vld [vmem:[#allocation18 + $0x2e8] ss:$16 sps:$4 sm:$0xff]  }
0x1465   : > { %5094 = vmatprep.subr.bf16.mxu0 %v7888_v48  ;;  %5137 = vmatprep.subr.bf16.mxu1 %v7891_v26  ;;  %v7972_v48 = vld [vmem:[#allocation18 + $0x304] ss:$16 sps:$4 sm:$0xff]   ;;  %v7975_v26 = vld [vmem:[#allocation18 + $0x30c] ss:$16 sps:$4 sm:$0xff]  }
0x1468   : > { %5095 = vmatpush1.bf16.msra.mxu0 %v7886_v58  ;;  %5138 = vmatpush1.bf16.msra.mxu1 %v7889_v46  ;;  %v7970_v58 = vld [vmem:[#allocation18 + $0x300] ss:$16 sps:$4 sm:$0xff]   ;;  %v7973_v46 = vld [vmem:[#allocation18 + $0x308] ss:$16 sps:$4 sm:$0xff]  }
0x1469   : > { %5096 = vmatprep.subr.bf16.mxu0 %v7894_v10  ;;  %5139 = vmatprep.subr.bf16.mxu1 %v7897_v44  ;;  %v7978_v10 = vld [vmem:[#allocation18 + $0x324] ss:$16 sps:$4 sm:$0xff]   ;;  %v7981_v44 = vld [vmem:[#allocation18 + $0x32c] ss:$16 sps:$4 sm:$0xff]  }
0x146c   : > { %5097 = vmatpush1.bf16.msra.mxu0 %v7892_v43  ;;  %5140 = vmatpush1.bf16.msra.mxu1 %v7895_v20  ;;  %v10851_v43 = vld [vmem:[#allocation62_spill] sm:$0xff] }
0x146d   : > { %5098 = vmatprep.subr.bf16.mxu0 %v7900_v50  ;;  %5141 = vmatprep.subr.bf16.mxu1 %v7903_v24  ;;  %v7976_v20 = vld [vmem:[#allocation18 + $0x320] ss:$16 sps:$4 sm:$0xff]   ;;  %v7979_v50 = vld [vmem:[#allocation18 + $0x328] ss:$16 sps:$4 sm:$0xff]   ;;  %v7984_v24 = vld [vmem:[#allocation18 + $0x344] ss:$16 sps:$4 sm:$0xff]  }
0x1470   : > { %5099 = vmatpush1.bf16.msra.mxu0 %v7898_v14  ;;  %5142 = vmatpush1.bf16.msra.mxu1 %v7901_v1  ;;  %v7987_v14 = vld [vmem:[#allocation18 + $0x34c] ss:$16 sps:$4 sm:$0xff]   ;;  %v7982_v1 = vld [vmem:[#allocation18 + $0x340] ss:$16 sps:$4 sm:$0xff]  }
0x1471   : > { %5100 = vmatprep.subr.bf16.mxu0 %v7906_v37  ;;  %5143 = vmatprep.subr.bf16.mxu1 %v7909_v8  ;;  %v7985_v37 = vld [vmem:[#allocation18 + $0x348] ss:$16 sps:$4 sm:$0xff]   ;;  %v7990_v8 = vld [vmem:[#allocation18 + $0x364] ss:$16 sps:$4 sm:$0xff]  }
0x1474   : > { %5101 = vmatpush1.bf16.msra.mxu0 %v7904_v15  ;;  %5144 = vmatpush1.bf16.msra.mxu1 %v7907_v33  ;;  %v7993_v15 = vld [vmem:[#allocation18 + $0x36c] ss:$16 sps:$4 sm:$0xff]   ;;  %v7988_v33 = vld [vmem:[#allocation18 + $0x360] ss:$16 sps:$4 sm:$0xff]  }
0x1475   : > { %5102 = vmatprep.subr.bf16.mxu0 %v7912_v17  ;;  %5145 = vmatprep.subr.bf16.mxu1 %v7915_v18  ;;  %v7991_v17 = vld [vmem:[#allocation18 + $0x368] ss:$16 sps:$4 sm:$0xff]   ;;  %v7996_v18 = vld [vmem:[#allocation18 + $0x384] ss:$16 sps:$4 sm:$0xff]  }
0x1478   : > { %5103 = vmatpush1.bf16.msra.mxu0 %v7910_v19  ;;  %5146 = vmatpush1.bf16.msra.mxu1 %v7913_v22  ;;  %v7999_v19 = vld [vmem:[#allocation18 + $0x38c] ss:$16 sps:$4 sm:$0xff]   ;;  %v7994_v22 = vld [vmem:[#allocation18 + $0x380] ss:$16 sps:$4 sm:$0xff]  }
0x1479   : > { %5104 = vmatprep.subr.bf16.mxu0 %v7918_v27  ;;  %5147 = vmatprep.subr.bf16.mxu1 %v7921_v29  ;;  %v7997_v27 = vld [vmem:[#allocation18 + $0x388] ss:$16 sps:$4 sm:$0xff]   ;;  %v8002_v29 = vld [vmem:[#allocation18 + $0x3a4] ss:$16 sps:$4 sm:$0xff]  }
0x147c   : > { %5105 = vmatpush1.bf16.msra.mxu0 %v7916_v47  ;;  %5148 = vmatpush1.bf16.msra.mxu1 %v7919_v59  ;;  %v8005_v47 = vld [vmem:[#allocation18 + $0x3ac] ss:$16 sps:$4 sm:$0xff]   ;;  %v8000_v59 = vld [vmem:[#allocation18 + $0x3a0] ss:$16 sps:$4 sm:$0xff]  }
0x147d   : > { %5377 = vmatprep.subr.bf16.mxu0 %v7924_v25  ;;  %5420 = vmatprep.subr.bf16.mxu1 %v7927_v45  ;;  %v8003_v25 = vld [vmem:[#allocation18 + $0x3a8] ss:$16 sps:$4 sm:$0xff]   ;;  %v8008_v45 = vld [vmem:[#allocation18 + $0x3c4] ss:$16 sps:$4 sm:$0xff]  }
0x147f   : > { %5123 = vmatmul.mubr.bf16.vlgmr.msra.gmra.mrb[60].mxu0 %v10850_v31  ;;  %5166 = vmatmul.mubr.bf16.vlgmr.msra.gmra.mrb[56].mxu1 %v10850_v31  ;;  %v8017_v31 = vld [vmem:[#allocation18 + $0x3ec] ss:$16 sps:$4 sm:$0xff]  }
0x1480   : > { %5378 = vmatpush1.bf16.msra.mxu0 %v7922_v56  ;;  %5421 = vmatpush1.bf16.msra.mxu1 %v7925_v54  ;;  %v8011_v56 = vld [vmem:[#allocation18 + $0x3cc] ss:$16 sps:$4 sm:$0xff]   ;;  %v8006_v54 = vld [vmem:[#allocation18 + $0x3c0] ss:$16 sps:$4 sm:$0xff]  }
0x1481   : > { %5379 = vmatprep.subr.bf16.mxu0 %v7930_v57  ;;  %5422 = vmatprep.subr.bf16.mxu1 %v7933_v30  ;;  %v8009_v57 = vld [vmem:[#allocation18 + $0x3c8] ss:$16 sps:$4 sm:$0xff]   ;;  %v8014_v30 = vld [vmem:[#allocation18 + $0x3e4] ss:$16 sps:$4 sm:$0xff]  }
0x1482   : > { %5409 = vmatprep.mubr.bf16.mxu0 %v10746_v60  ;;  %5452 = vmatprep.mubr.bf16.mxu1 %v10746_v60 }
0x1484   : > { %5380 = vmatpush1.bf16.msra.mxu0 %v7928_v35  ;;  %5423 = vmatpush1.bf16.msra.mxu1 %v7931_v36  ;;  %v8012_v35 = vld [vmem:[#allocation18 + $0x3e0] ss:$16 sps:$4 sm:$0xff]   ;;  %v8015_v36 = vld [vmem:[#allocation18 + $0x3e8] ss:$16 sps:$4 sm:$0xff]  }
0x1485   : > { %5381 = vmatprep.subr.bf16.mxu0 %v7936_v28  ;;  %5424 = vmatprep.subr.bf16.mxu1 %v7939_v39  ;;  %v8020_v28 = vld [vmem:[#allocation18 + $0x404] ss:$16 sps:$4 sm:$0xff]   ;;  %v8023_v39 = vld [vmem:[#allocation18 + $0x40c] ss:$16 sps:$4 sm:$0xff]  }
0x1488   : > { %5382 = vmatpush1.bf16.msra.mxu0 %v7934_v21  ;;  %5425 = vmatpush1.bf16.msra.mxu1 %v7937_v6  ;;  %v8018_v21 = vld [vmem:[#allocation18 + $0x400] ss:$16 sps:$4 sm:$0xff]   ;;  %v8021_v6 = vld [vmem:[#allocation18 + $0x408] ss:$16 sps:$4 sm:$0xff]  }
0x1489   : > { %5383 = vmatprep.subr.bf16.mxu0 %v7942_v16  ;;  %5426 = vmatprep.subr.bf16.mxu1 %v7945_v5  ;;  %v8026_v16 = vld [vmem:[#allocation18 + $0x424] ss:$16 sps:$4 sm:$0xff]   ;;  %v8029_v5 = vld [vmem:[#allocation18 + $0x42c] ss:$16 sps:$4 sm:$0xff]  }
0x148c   : > { %5384 = vmatpush1.bf16.msra.mxu0 %v7940_v34  ;;  %5427 = vmatpush1.bf16.msra.mxu1 %v7943_v62  ;;  %v10852_v34 = vld [vmem:[#allocation61_spill] sm:$0xff]  ;;  %v8024_v62 = vld [vmem:[#allocation18 + $0x420] ss:$16 sps:$4 sm:$0xff]  }
0x148d   : > { %5385 = vmatprep.subr.bf16.mxu0 %v7948_v61  ;;  %5428 = vmatprep.subr.bf16.mxu1 %v7951_v3  ;;  %v8027_v61 = vld [vmem:[#allocation18 + $0x428] ss:$16 sps:$4 sm:$0xff]   ;;  %v8032_v3 = vld [vmem:[#allocation18 + $0x444] ss:$16 sps:$4 sm:$0xff]  }
0x1490   : > { %5386 = vmatpush1.bf16.msra.mxu0 %v7946_v7  ;;  %5429 = vmatpush1.bf16.msra.mxu1 %v7949_v9  ;;  %v8035_v7 = vld [vmem:[#allocation18 + $0x44c] ss:$16 sps:$4 sm:$0xff]   ;;  %v8030_v9 = vld [vmem:[#allocation18 + $0x440] ss:$16 sps:$4 sm:$0xff]  }
0x1491   : > { %5387 = vmatprep.subr.bf16.mxu0 %v7954_v51  ;;  %5430 = vmatprep.subr.bf16.mxu1 %v7957_v2  ;;  %v8033_v51 = vld [vmem:[#allocation18 + $0x448] ss:$16 sps:$4 sm:$0xff]   ;;  %v8038_v2 = vld [vmem:[#allocation18 + $0x464] ss:$16 sps:$4 sm:$0xff]  }
0x1494   : > { %5388 = vmatpush1.bf16.msra.mxu0 %v7952_v12  ;;  %5431 = vmatpush1.bf16.msra.mxu1 %v7955_v63  ;;  %v8041_v12 = vld [vmem:[#allocation18 + $0x46c] ss:$16 sps:$4 sm:$0xff]   ;;  %v8036_v63 = vld [vmem:[#allocation18 + $0x460] ss:$16 sps:$4 sm:$0xff]  }
0x1495   : > { %5389 = vmatprep.subr.bf16.mxu0 %v7960_v38  ;;  %5432 = vmatprep.subr.bf16.mxu1 %v7963_v4  ;;  %v8039_v38 = vld [vmem:[#allocation18 + $0x468] ss:$16 sps:$4 sm:$0xff]   ;;  %v8044_v4 = vld [vmem:[#allocation18 + $0x484] ss:$16 sps:$4 sm:$0xff]  }
0x1498   : > { %5390 = vmatpush1.bf16.msra.mxu0 %v7958_v55  ;;  %5433 = vmatpush1.bf16.msra.mxu1 %v7961_v23  ;;  %v8047_v55 = vld [vmem:[#allocation18 + $0x48c] ss:$16 sps:$4 sm:$0xff]   ;;  %v8042_v23 = vld [vmem:[#allocation18 + $0x480] ss:$16 sps:$4 sm:$0xff]  }
0x1499   : > { %5391 = vmatprep.subr.bf16.mxu0 %v7966_v11  ;;  %5434 = vmatprep.subr.bf16.mxu1 %v7969_v13  ;;  %v8050_v11 = vld [vmem:[#allocation18 + $0x4a4] ss:$16 sps:$4 sm:$0xff]   ;;  %v8053_v13 = vld [vmem:[#allocation18 + $0x4ac] ss:$16 sps:$4 sm:$0xff]  }
0x149c   : > { %5392 = vmatpush1.bf16.msra.mxu0 %v7964_v52  ;;  %5435 = vmatpush1.bf16.msra.mxu1 %v7967_v0  ;;  %v8048_v52 = vld [vmem:[#allocation18 + $0x4a0] ss:$16 sps:$4 sm:$0xff]   ;;  %v8051_v0 = vld [vmem:[#allocation18 + $0x4a8] ss:$16 sps:$4 sm:$0xff]  }
0x149d   : > { %5664 = vmatprep.subr.bf16.mxu0 %v7972_v48  ;;  %5707 = vmatprep.subr.bf16.mxu1 %v7975_v26  ;;  %v8056_v48 = vld [vmem:[#allocation18 + $0x4c4] ss:$16 sps:$4 sm:$0xff]   ;;  %v8059_v26 = vld [vmem:[#allocation18 + $0x4cc] ss:$16 sps:$4 sm:$0xff]  }
0x149f   : > { %5410 = vmatmul.mubr.bf16.vlgmr.msra.gmra.mrb[60].mxu0 %v10851_v43  ;;  %5453 = vmatmul.mubr.bf16.vlgmr.msra.gmra.mrb[56].mxu1 %v10851_v43  ;;  %v8060_v43 = vld [vmem:[#allocation18 + $0x4e0] ss:$16 sps:$4 sm:$0xff]  }
0x14a0   : > { %5665 = vmatpush1.bf16.msra.mxu0 %v7970_v58  ;;  %5708 = vmatpush1.bf16.msra.mxu1 %v7973_v46  ;;  %v8054_v58 = vld [vmem:[#allocation18 + $0x4c0] ss:$16 sps:$4 sm:$0xff]   ;;  %v8057_v46 = vld [vmem:[#allocation18 + $0x4c8] ss:$16 sps:$4 sm:$0xff]  }
0x14a1   : > { %5666 = vmatprep.subr.bf16.mxu0 %v7978_v10  ;;  %5709 = vmatprep.subr.bf16.mxu1 %v7981_v44  ;;  %v8062_v10 = vld [vmem:[#allocation18 + $0x4e4] ss:$16 sps:$4 sm:$0xff]   ;;  %v8065_v44 = vld [vmem:[#allocation18 + $0x4ec] ss:$16 sps:$4 sm:$0xff]  }
0x14a2   : > { %5696 = vmatprep.mubr.bf16.mxu0 %v10746_v60  ;;  %5739 = vmatprep.mubr.bf16.mxu1 %v10746_v60 }
0x14a4   : > { %5667 = vmatpush1.bf16.msra.mxu0 %v7976_v20  ;;  %5710 = vmatpush1.bf16.msra.mxu1 %v7979_v50  ;;  %v8063_v20 = vld [vmem:[#allocation18 + $0x4e8] ss:$16 sps:$4 sm:$0xff]   ;;  %v8066_v50 = vld [vmem:[#allocation21 + $0x40] sm:$0xff]  }
0x14a5   : > { %5668 = vmatprep.subr.bf16.mxu0 %v7984_v24  ;;  %5711 = vmatprep.subr.bf16.mxu1 %v7987_v14  ;;  %v8067_v24 = vld [vmem:[#allocation21 + $0xc0] sm:$0xff]  }
0x14a8   : > { %5669 = vmatpush1.bf16.msra.mxu0 %v7982_v1  ;;  %5712 = vmatpush1.bf16.msra.mxu1 %v7985_v37  ;;  %v8306_v37 = vld [vmem:[#allocation16] sm:$0xff] }
0x14a9   : > { %5670 = vmatprep.subr.bf16.mxu0 %v7990_v8  ;;  %5713 = vmatprep.subr.bf16.mxu1 %v7993_v15 }
0x14ac   : > { %5671 = vmatpush1.bf16.msra.mxu0 %v7988_v33  ;;  %5714 = vmatpush1.bf16.msra.mxu1 %v7991_v17  ;;  %v8307_v17 = vld [vmem:[#allocation16 + $0x8] sm:$0xff] }
0x14ad   : > { %5672 = vmatprep.subr.bf16.mxu0 %v7996_v18  ;;  %5715 = vmatprep.subr.bf16.mxu1 %v7999_v19 }
0x14b0   : > { %5673 = vmatpush1.bf16.msra.mxu0 %v7994_v22  ;;  %5716 = vmatpush1.bf16.msra.mxu1 %v7997_v27 }
0x14b1   : > { %5674 = vmatprep.subr.bf16.mxu0 %v8002_v29  ;;  %5717 = vmatprep.subr.bf16.mxu1 %v8005_v47  ;;  %v8308_v29 = vld [vmem:[#allocation16 + $0x20] sm:$0xff] }
0x14b4   : > { %5675 = vmatpush1.bf16.msra.mxu0 %v8000_v59  ;;  %5718 = vmatpush1.bf16.msra.mxu1 %v8003_v25 }
0x14b5   : > { %5676 = vmatprep.subr.bf16.mxu0 %v8008_v45  ;;  %5719 = vmatprep.subr.bf16.mxu1 %v8011_v56  ;;  %v8309_v56 = vld [vmem:[#allocation16 + $0x28] sm:$0xff] }
0x14b8   : > { %5677 = vmatpush1.bf16.msra.mxu0 %v8006_v54  ;;  %5720 = vmatpush1.bf16.msra.mxu1 %v8009_v57 }
0x14b9   : > { %5678 = vmatprep.subr.bf16.mxu0 %v8014_v30  ;;  %5721 = vmatprep.subr.bf16.mxu1 %v8017_v31 }
0x14bc   : > { %5679 = vmatpush1.bf16.msra.mxu0 %v8012_v35  ;;  %5722 = vmatpush1.bf16.msra.mxu1 %v8015_v36  ;;  %v8310_v35 = vld [vmem:[#allocation16 + $0x18] sm:$0xff] }
0x14bd   : > { %5951 = vmatprep.subr.bf16.mxu0 %v8020_v28  ;;  %5994 = vmatprep.subr.bf16.mxu1 %v8023_v39 }
0x14bf   : > { %5697 = vmatmul.mubr.bf16.vlgmr.msra.gmra.mrb[60].mxu0 %v10852_v34  ;;  %5740 = vmatmul.mubr.bf16.vlgmr.msra.gmra.mrb[56].mxu1 %v10852_v34 }
0x14c0   : > { %5952 = vmatpush1.bf16.msra.mxu0 %v8018_v21  ;;  %5995 = vmatpush1.bf16.msra.mxu1 %v8021_v6  ;;  %v8311_v21 = vld [vmem:[#allocation16 + $0x38] sm:$0xff] }
0x14c1   : > { %5953 = vmatprep.subr.bf16.mxu0 %v8026_v16  ;;  %5996 = vmatprep.subr.bf16.mxu1 %v8029_v5 }
0x14c2   : > { %5983 = vmatprep.mubr.bf16.mxu0 %v10746_v60  ;;  %6026 = vmatprep.mubr.bf16.mxu1 %v10746_v60  ;;  %v8045_v60 = vld [vmem:[#allocation18 + $0x488] ss:$16 sps:$4 sm:$0xff]  }
0x14c4   : > { %5954 = vmatpush1.bf16.msra.mxu0 %v8024_v62  ;;  %5997 = vmatpush1.bf16.msra.mxu1 %v8027_v61  ;;  %v8312_v62 = vld [vmem:[#allocation16 + $0x10] sm:$0xff] }
0x14c5   : > { %5955 = vmatprep.subr.bf16.mxu0 %v8032_v3  ;;  %5998 = vmatprep.subr.bf16.mxu1 %v8035_v7 }
0x14c8   : > { %5956 = vmatpush1.bf16.msra.mxu0 %v8030_v9  ;;  %5999 = vmatpush1.bf16.msra.mxu1 %v8033_v51 }
0x14c9   : > { %5957 = vmatprep.subr.bf16.mxu0 %v8038_v2  ;;  %6000 = vmatprep.subr.bf16.mxu1 %v8041_v12  ;;  %v8313_v12 = vld [vmem:[#allocation16 + $0x30] sm:$0xff] }
0x14cc   : > { %5958 = vmatpush1.bf16.msra.mxu0 %v8036_v63  ;;  %6001 = vmatpush1.bf16.msra.mxu1 %v8039_v38 }
0x14cd   : > { %5959 = vmatprep.subr.bf16.mxu0 %v8044_v4  ;;  %6002 = vmatprep.subr.bf16.mxu1 %v8047_v55 }
0x14d0   : > { %5960 = vmatpush1.bf16.msra.mxu0 %v8042_v23  ;;  %6003 = vmatpush1.bf16.msra.mxu1 %v8045_v60 }
0x14d1   : > { %5961 = vmatprep.subr.bf16.mxu0 %v8050_v11  ;;  %6004 = vmatprep.subr.bf16.mxu1 %v8053_v13 }
0x14d4   : > { %5962 = vmatpush1.bf16.msra.mxu0 %v8048_v52  ;;  %6005 = vmatpush1.bf16.msra.mxu1 %v8051_v0 }
0x14d5   : > { %5963 = vmatprep.subr.bf16.mxu0 %v8056_v48  ;;  %6006 = vmatprep.subr.bf16.mxu1 %v8059_v26 }
0x14d8   : > { %5964 = vmatpush1.bf16.msra.mxu0 %v8054_v58  ;;  %6007 = vmatpush1.bf16.msra.mxu1 %v8057_v46 }
0x14d9   : > { %5965 = vmatprep.subr.bf16.mxu0 %v8062_v10  ;;  %6008 = vmatprep.subr.bf16.mxu1 %v8065_v44 }
0x14dc   : > { %5966 = vmatpush1.bf16.msra.mxu0 %v8060_v43  ;;  %6009 = vmatpush1.bf16.msra.mxu1 %v8063_v20 }
0x14dd   : > { %7142 = vmatprep.subr.bf16.mxu0 %v8066_v50  ;;  %7164 = vmatprep.subr.bf16.mxu1 %v8067_v24 }
0x1512   : > { %v4484_v14 = vpop.f32.mrb[56].mxu0  ;;  %v4527_v1 = vpop.f32.mrb[52].mxu1 }
0x1513   : > { %v4536_v8 = vadd.f32 %v8306_v37, %v4484_v14  ;;  %v4486_v15 = vpop.f32.mrb[57].mxu0  ;;  %v4529_v33 = vpop.f32.mrb[53].mxu1  ;;  %v4538_v61 = vadd.f32 %v8312_v62, %v4527_v1  ;;  %v8091_v62 = vld [vmem:[#allocation21 + $0xf0] sm:$0xff]  }
0x1514   : > { %v4537_v18 = vadd.f32 %v8307_v17, %v4486_v15  ;;  %v4488_v19 = vpop.f32.mrb[58].mxu0  ;;  %v4531_v22 = vpop.f32.mrb[54].mxu1  ;;  %v4539_v36 = vadd.f32 %v8310_v35, %v4529_v33  ;;  %v4592_v33 = vmax.f32 %v10360_v42, %v10452_v40  ;;  %v8074_v42 = vld [vmem:[#allocation21 + $0x50] sm:$0xff]   ;;  %v8082_v35 = vld [vmem:[#allocation21 + $0x60] sm:$0xff]  }
0x1515   : > { %v4544_v27 = vsub.f32 0.0, %v4536_v8  ;;  %v4540_v47 = vadd.f32 %v8308_v29, %v4488_v19  ;;  %v4490_v59 = vpop.f32.mrb[59].mxu0  ;;  %v4533_v25 = vpop.f32.mrb[55].mxu1  ;;  %v4542_v63 = vadd.f32 %v8313_v12, %v4531_v22  ;;  %v4593_v22 = vmax.f32 %v10362_v49, %v10454_v41  ;;  %v8068_v29 = vld [vmem:[#allocation21] sm:$0xff]   ;;  %v8075_v40 = vld [vmem:[#allocation21 + $0xd0] sm:$0xff]   ;;  %v8078_v41 = vld [vmem:[#allocation21 + $0x58] sm:$0xff]  }
0x1516   : > { %v4556_v45 = vsub.f32 0.0, %v4537_v18  ;;  %v4541_v54 = vadd.f32 %v8309_v56, %v4490_v59  ;;  %v4543_v6 = vadd.f32 %v8311_v21, %v4533_v25  ;;  %v4570_v5 = vsub.f32 0.0, %v4539_v36  ;;  %v8070_v59 = vld [vmem:[#allocation21 + $0x48] sm:$0xff]   ;;  %v8077_v49 = vld [vmem:[#allocation21 + $0x90] sm:$0xff]   ;;  %v8083_v36 = vld [vmem:[#allocation21 + $0xe0] sm:$0xff]  }
0x1517   : > { %v4546_v57 = vmul.f32 1.442695, %v4544_v27  ;;  %v4545_v30 = vsub.f32 0.0, %v4540_v47  ;;  %v8071_v25 = vld [vmem:[#allocation21 + $0xc8] sm:$0xff]   ;;  %v4602_v12 = vld [vmem:[#allocation19] sm:$0xff] }
0x1518   : > { %v4558_v31 = vmul.f32 1.442695, %v4556_v45  ;;  %v4557_v28 = vsub.f32 0.0, %v4541_v54  ;;  %v4571_v34 = vsub.f32 0.0, %v4543_v6  ;;  %v4572_v3 = vmul.f32 1.442695, %v4570_v5 }
0x1519   : > { %8274 = vpow2.f32 %v4546_v57  ;;  %v4548_v39 = vmul.f32 1.442695, %v4545_v30  ;;  %v8072_v45 = vld [vmem:[#allocation21 + $0x8] sm:$0xff]   ;;  %v8076_v54 = vld [vmem:[#allocation21 + $0x10] sm:$0xff]   ;;  %v8079_v57 = vld [vmem:[#allocation21 + $0xd8] sm:$0xff]  }
0x151a   : > { %8276 = vpow2.f32 %v4558_v31  ;;  %v4560_v16 = vmul.f32 1.442695, %v4557_v28  ;;  %v4574_v7 = vmul.f32 1.442695, %v4571_v34  ;;  %v8073_v56 = vld [vmem:[#allocation21 + $0x88] sm:$0xff]   ;;  %v8080_v30 = vld [vmem:[#allocation21 + $0x18] sm:$0xff]  }
0x151b   : > { %8278 = vpow2.f32 %v4548_v39  ;;  %v8081_v31 = vld [vmem:[#allocation21 + $0x98] sm:$0xff]   ;;  %v8084_v28 = vld [vmem:[#allocation21 + $0x20] sm:$0xff]   ;;  %v8086_v21 = vld [vmem:[#allocation21 + $0x68] sm:$0xff]  }
0x151c   : > { %8280 = vpow2.f32 %v4560_v16  ;;  %v8085_v39 = vld [vmem:[#allocation21 + $0xa0] sm:$0xff]   ;;  %v8087_v6 = vld [vmem:[#allocation21 + $0xe8] sm:$0xff]   ;;  %v8090_v34 = vld [vmem:[#allocation21 + $0x70] sm:$0xff]  }
0x151d   : > { %8282 = vtanh.f32 %v4538_v61  ;;  %v8088_v16 = vld [vmem:[#allocation21 + $0x28] sm:$0xff]   ;;  %v8092_v61 = vld [vmem:[#allocation21 + $0x30] sm:$0xff]  }
0x151e   : > { %8284 = vpow2.f32 %v4572_v3  ;;  %v8089_v5 = vld [vmem:[#allocation21 + $0xa8] sm:$0xff]   ;;  %v8093_v3 = vld [vmem:[#allocation21 + $0xb0] sm:$0xff]  }
0x151f   : > { %8286 = vpow2.f32 %v4574_v7  ;;  %v8094_v7 = vld [vmem:[#allocation21 + $0x78] sm:$0xff]  }
0x1523   : > { %v8275_v9 = vpop.eup %8274 }
0x1524   : > { %v8277_v51 = vpop.eup %8276  ;;  %v4550_v2 = vadd.f32 1.0, %v8275_v9  ;;  %v8095_v9 = vld [vmem:[#allocation21 + $0xf8] sm:$0xff]  }
0x1525   : > { %v4562_v38 = vadd.f32 1.0, %v8277_v51  ;;  %v8279_v4 = vpop.eup %8278  ;;  %v8096_v51 = vld [vmem:[#allocation21 + $0x38] sm:$0xff]  }
0x1526   : > { %8288 = vrcp.f32 %v4550_v2  ;;  %v8281_v55 = vpop.eup %8280  ;;  %v4551_v23 = vadd.f32 1.0, %v8279_v4  ;;  %v8097_v2 = vld [vmem:[#allocation21 + $0xb8] sm:$0xff]  }
0x1527   : > { %8290 = vrcp.f32 %v4562_v38  ;;  %v4563_v60 = vadd.f32 1.0, %v8281_v55  ;;  %v8283_v11 = vpop.eup %8282  ;;  %v4603_v38 = vld [vmem:[#allocation19 + $0x8] sm:$0xff]  ;;  %v4605_v4 = vld [vmem:[#allocation19 + $0x18] sm:$0xff] }
0x1528   : > { %8292 = vtanh.f32 %v4542_v63  ;;  %v8285_v13 = vpop.eup %8284  ;;  %v4604_v63 = vld [vmem:[#allocation19 + $0x10] sm:$0xff] }
0x1529   : > { %8294 = vrcp.f32 %v4551_v23  ;;  %v8287_v52 = vpop.eup %8286  ;;  %v4576_v58 = vadd.f32 1.0, %v8285_v13 }
0x152a   : > { %8296 = vrcp.f32 %v4563_v60  ;;  %v4577_v24 = vadd.f32 1.0, %v8287_v52  ;;  %v4606_v60 = vld [vmem:[#allocation19 + $0x20] sm:$0xff] }
0x152b   : > { %8298 = vrcp.f32 %v4576_v58  ;;  %v4609_v58 = vld [vmem:[#allocation19 + $0x38] sm:$0xff] }
0x1530   : > { %v8289_v0 = vpop.eup %8288 }
0x1531   : > { %v8291_v48 = vpop.eup %8290  ;;  %v4584_v26 = vmul.f32 %v8289_v0, %v8283_v11  ;;  %v4608_v11 = vld [vmem:[#allocation19 + $0x30] sm:$0xff] }
0x1532   : > { %v8293_v46 = vpop.eup %8292  ;;  %v4582_v10 = vmul.f32 %v8291_v48, %v10445_v32 }
0x1533   : > { %v8295_v44 = vpop.eup %8294 }
0x1534   : > { %v8297_v43 = vpop.eup %8296  ;;  %v4586_v20 = vadd.f32 %v4584_v26, %v4582_v10  ;;  %v4585_v50 = vmul.f32 %v8295_v44, %v8293_v46  ;;  %v4607_v26 = vld [vmem:[#allocation19 + $0x28] sm:$0xff] }
0x1535   : > { %v4583_v14 = vmul.f32 %v8297_v43, %v10449_v53  ;;  %v8299_v37 = vpop.eup %8298  ;;  %v8069_v53 = vld [vmem:[#allocation21 + $0x80] sm:$0xff]  }
0x1536   : > { %8300 = vtanh.f32 %v4586_v20 }
0x1537   : > { %v4587_v1 = vadd.f32 %v4585_v50, %v4583_v14  ;;  %8302 = vrcp.f32 %v4577_v24 }
0x1539   : > { %8304 = vtanh.f32 %v4587_v1 }
0x1540   : > { %v8301_v8 = vpop.eup %8300 }
0x1541   : > { %v4590_v15 = vmul.f32 %v8301_v8, %v8299_v37  ;;  %v8303_v17 = vpop.eup %8302 }
0x1543   : > { %v8305_v32 = vpop.eup %8304  ;;  %v4594_v18 = vmax.f32 %v4592_v33, %v4590_v15 }
0x1544   : > { %v4591_v19 = vmul.f32 %v8305_v32, %v8303_v17 }
0x1546   : > { %v4595_v27 = vmax.f32 %v4593_v22, %v4591_v19 }
0x1548   : > { %v5758_v47 = vpack.c.bf16 %v4595_v27, %v4594_v18 }
0x154a   : > { %5984 = vmatmul.mubr.bf16.vlgmr.msra.gmra.mrb[60].mxu0 %v5758_v47  ;;  %6027 = vmatmul.mubr.bf16.vlgmr.msra.gmra.mrb[56].mxu1 %v5758_v47 }
0x154b   : > { %7143 = vmatpush3.bf16.msra.mxu0 %v8068_v29  ;;  %7165 = vmatpush3.bf16.msra.mxu1 %v8069_v53 }
0x154c   : > { %7144 = vmatprep.subr.bf16.mxu0 %v8070_v59  ;;  %7166 = vmatprep.subr.bf16.mxu1 %v8071_v25 }
0x154f   : > { %7145 = vmatpush3.bf16.msra.mxu0 %v8072_v45  ;;  %7167 = vmatpush3.bf16.msra.mxu1 %v8073_v56  ;;  %v6121_v45 = vld [vmem:[#allocation22] sm:$0xff] }
0x1550   : > { %7146 = vmatprep.subr.bf16.mxu0 %v8074_v42  ;;  %7168 = vmatprep.subr.bf16.mxu1 %v8075_v40 }
0x1553   : > { %7147 = vmatpush3.bf16.msra.mxu0 %v8076_v54  ;;  %7169 = vmatpush3.bf16.msra.mxu1 %v8077_v49 }
0x1554   : > { %7148 = vmatprep.subr.bf16.mxu0 %v8078_v41  ;;  %7170 = vmatprep.subr.bf16.mxu1 %v8079_v57  ;;  %v6122_v57 = vld [vmem:[#allocation22 + $0x8] sm:$0xff] }
0x1557   : > { %7149 = vmatpush3.bf16.msra.mxu0 %v8080_v30  ;;  %7171 = vmatpush3.bf16.msra.mxu1 %v8081_v31 }
0x1558   : > { %7150 = vmatprep.subr.bf16.mxu0 %v8082_v35  ;;  %7172 = vmatprep.subr.bf16.mxu1 %v8083_v36 }
0x155b   : > { %7151 = vmatpush3.bf16.msra.mxu0 %v8084_v28  ;;  %7173 = vmatpush3.bf16.msra.mxu1 %v8085_v39 }
0x155c   : > { %7152 = vmatprep.subr.bf16.mxu0 %v8086_v21  ;;  %7174 = vmatprep.subr.bf16.mxu1 %v8087_v6 }
0x155f   : > { %7153 = vmatpush3.bf16.msra.mxu0 %v8088_v16  ;;  %7175 = vmatpush3.bf16.msra.mxu1 %v8089_v5 }
0x1560   : > { %7154 = vmatprep.subr.bf16.mxu0 %v8090_v34  ;;  %7176 = vmatprep.subr.bf16.mxu1 %v8091_v62 }
0x1563   : > { %7155 = vmatpush3.bf16.msra.mxu0 %v8092_v61  ;;  %7177 = vmatpush3.bf16.msra.mxu1 %v8093_v3 }
0x1564   : > { %7156 = vmatprep.subr.bf16.mxu0 %v8094_v7  ;;  %7178 = vmatprep.subr.bf16.mxu1 %v8095_v9 }
0x1567   : > { %7157 = vmatpush3.bf16.msra.mxu0 %v8096_v51  ;;  %7179 = vmatpush3.bf16.msra.mxu1 %v8097_v2 }
0x161d   : > { %v5985_v55 = vpop.f32.mrb[60].mxu0  ;;  %v6028_v23 = vpop.f32.mrb[56].mxu1 }
0x161e   : > { %v7344_v13 = vadd.f32 %v5985_v55, %v4602_v12  ;;  %v7348_v52 = vadd.f32 %v6028_v23, %v4604_v63  ;;  %v5987_v0 = vpop.f32.mrb[61].mxu0  ;;  %v6030_v48 = vpop.f32.mrb[57].mxu1 }
0x161f   : > { %v7345_v46 = vadd.f32 %v5987_v0, %v4603_v38  ;;  %v7349_v10 = vadd.f32 %v6030_v48, %v4605_v4  ;;  %v5989_v44 = vpop.f32.mrb[62].mxu0  ;;  %v6032_v43 = vpop.f32.mrb[58].mxu1 }
0x1620   : > { %v7346_v20 = vadd.f32 %v5989_v44, %v4606_v60  ;;  %v7350_v50 = vadd.f32 %v6032_v43, %v4608_v11  ;;  %v5991_v24 = vpop.f32.mrb[63].mxu0  ;;  %v6034_v14 = vpop.f32.mrb[59].mxu1  ;;  %v6045_v8 = vmax.f32 %v7344_v13, 0.0  ;;  %v6047_v15 = vmax.f32 %v7348_v52, 0.0 }
0x1621   : > { %v7347_v1 = vadd.f32 %v5991_v24, %v4607_v26  ;;  %v7351_v37 = vadd.f32 %v6034_v14, %v4609_v58  ;;  %v6046_v32 = vmax.f32 %v7345_v46, 0.0  ;;  %v6048_v18 = vmax.f32 %v7349_v10, 0.0 }
0x1622   : > { %v6049_v33 = vmax.f32 %v7346_v20, 0.0  ;;  %v6051_v17 = vmax.f32 %v7350_v50, 0.0 }
0x1623   : > { %v6050_v19 = vmax.f32 %v7347_v1, 0.0  ;;  %v6052_v22 = vmax.f32 %v7351_v37, 0.0 }
0x1624   : > { %v6053_v27 = vpack.c.bf16 %v6049_v33, %v6045_v8  ;;  %v6055_v29 = vpack.c.bf16 %v6051_v17, %v6047_v15 }
0x1625   : > { %v6054_v53 = vpack.c.bf16 %v6050_v19, %v6046_v32  ;;  %v6056_v47 = vpack.c.bf16 %v6052_v22, %v6048_v18 }
0x1627   : > { %6347 = vmatprep.mubr.bf16.mxu0 %v6054_v53  ;;  %6388 = vmatprep.mubr.bf16.mxu1 %v6056_v47 }
0x1628   : > { %6348 = vmatmul.mubr.bf16.vlgmr.msra.gmra.mrb[64].mxu0 %v6053_v27  ;;  %6389 = vmatmul.mubr.bf16.vlgmr.msra.gmra.mrb[60].mxu1 %v6055_v29 }
0x16fb   : > { %v7158_v59 = vpop.f32.mrb[64].mxu0  ;;  %v7180_v25 = vpop.f32.mrb[60].mxu1 }
0x16fc   : > { %v7159_v56 = vpop.f32.mrb[65].mxu0  ;;  %v7181_v42 = vpop.f32.mrb[61].mxu1 }
0x16fd   : > { %v7160_v40 = vadd.f32 %v7159_v56, %v7158_v59  ;;  %v7182_v54 = vadd.f32 %v7181_v42, %v7180_v25  ;;  %v7161_v49 = vpop.f32.mrb[66].mxu0  ;;  %v7183_v41 = vpop.f32.mrb[62].mxu1 }
0x16fe   : > { %v7162_v30 = vpop.f32.mrb[67].mxu0  ;;  %v7184_v31 = vpop.f32.mrb[63].mxu1 }
0x16ff   : > { %v6350_v35 = vadd.f32 %v7160_v40, %v6121_v45  ;;  %v7163_v36 = vadd.f32 %v7162_v30, %v7161_v49  ;;  %v7185_v28 = vadd.f32 %v7184_v31, %v7183_v41 }
0x1701   : > { %v6391_v39 = vadd.f32 %v7182_v54, %v6350_v35  ;;  %v6353_v21 = vadd.f32 %v7163_v36, %v6122_v57 }
0x1703   : > { %6397 = vst [vmem:[%s987_s28] sm:$0xff] %v6391_v39  ;;  %v6394_v6 = vadd.f32 %v7185_v28, %v6353_v21 }
0x1705   : > { %6398 = vst [vmem:[%s987_s28 + $0x8] sm:$0xff] %v6394_v6 }
0x1706 PF: > { %s10854_s3 = sld [smem:[#allocation32_spill]] }
0x170c   : > { %s40_s3 = sadd.s32 1, %s10854_s3  }
0x170d   : > { %p37_p0 = scmp.ge.s32.totalorder %s40_s3, 4  }
0x170f   :  { %39 = sbr.rel (!%p37_p0) target bundleno = 20 (0x14), region = 212 }
0x1716   :  { %6420 = vsyncpa [#allocation3], 1 }
0x1717   :  { %6422 = vsyncpa [#allocation3 + $0x1], 1 }
0x1718   :  { %6423 = vsyncpa [#allocation5], 1 }
0x1719   :  { %6424 = vsyncpa [#allocation8], 1 }
0x171a   :  { %6425 = vsyncpa [#allocation11], 1 }
0x171b   :  { %6426 = vsyncpa [#allocation14], 1 }
0x171c   :  { %6427 = vsyncpa [#allocation17], 1 }
0x171d   :  { %6428 = vsyncpa [#allocation20], 1 }
0x171e   :  { %6429 = vsyncpa [#allocation23], 1 }

</bundles_post_ra>
